<compile_context>
chip_gen: v7x
topology: tpu7x:2x2x1
jax: 0.10.0
libtpu: 0.0.40
codegen_flags: <defaults>
</compile_context>

<pallas_src>
import functools

import jax
import jax.numpy as jnp
from jax.experimental import pallas as pl
from jax.experimental.pallas import tpu as pltpu  # noqa: F401  (kept for compiler params if needed)

# ----------------------------- config (small, synthetic) ---------------------
HIDDEN = 32
NUM_HEADS = 2
HEAD_DIM = HIDDEN // NUM_HEADS
INTERMEDIATE = 64
NUM_LAYERS = 1
VOCAB = 100
COL_VOCAB = 100
MAX_POS = 64
LN_EPS = 1e-5

BATCH = 2
SEQ = 8
NUM_COLS = 3
COL_SEQ = 8


# ----------------------- in-kernel helpers (traced inline) -------------------


def _ln(x, g, b, eps):
    mu = jnp.mean(x, axis=-1, keepdims=True)
    var = jnp.mean(jnp.square(x - mu), axis=-1, keepdims=True)
    return (x - mu) * jax.lax.rsqrt(var + eps) * g + b


def _mha(x2, bias, wqkv, bqkv, B, S, H, num_heads, head_dim):
    """Multi-head self-attention on a [B*S, H] slab. Everything in VMEM/vregs.

    wqkv is the concatenated [H, 3H] Q/K/V projection (one MXU launch instead
    of three).  `bias` is an additive attention bias of shape (B, 1, S) or
    None (statically skipped)."""
    qkv = jnp.dot(x2, wqkv, preferred_element_type=jnp.float32) + bqkv  # (B*S, 3H)
    qkv3 = qkv.reshape(B, S, 3 * H)
    scale = 1.0 / (head_dim ** 0.5)
    heads = []
    for h in range(num_heads):
        qh = qkv3[:, :, h * head_dim:(h + 1) * head_dim]
        kh = qkv3[:, :, H + h * head_dim:H + (h + 1) * head_dim]
        vh = qkv3[:, :, 2 * H + h * head_dim:2 * H + (h + 1) * head_dim]
        s = jnp.einsum("bqd,bkd->bqk", qh, kh,
                       preferred_element_type=jnp.float32) * scale
        if bias is not None:
            s = s + bias
        s = s - jnp.max(s, axis=-1, keepdims=True)
        p = jnp.exp(s)
        p = p * pl.reciprocal(jnp.sum(p, axis=-1, keepdims=True), approx=True)
        heads.append(jnp.einsum("bqk,bkd->bqd", p, vh,
                                preferred_element_type=jnp.float32))
    return jnp.concatenate(heads, axis=-1).reshape(B * S, H)


# ----------------------------- Pallas kernels --------------------------------


def _fused_layer_kernel(x_ref, bias_ref, in_g_ref, in_b_ref,
                        wqkv_ref, bqkv_ref, wo_ref, bo_ref,
                        aln_g_ref, aln_b_ref,
                        w1_ref, b1_ref, w2_ref, b2_ref,
                        fln_g_ref, fln_b_ref,
                        o_ref, *, num_heads, head_dim, apply_input_ln, eps):
    """One full RoBERTa encoder layer (optionally fused with the embedding LN)."""
    B, S, H = x_ref.shape
    x = x_ref[...].reshape(B * S, H)
    if apply_input_ln:
        x = _ln(x, in_g_ref[...], in_b_ref[...], eps)
    bias = bias_ref[...]  # (B, 1, S)

    a = _mha(x, bias, wqkv_ref[...], bqkv_ref[...], B, S, H, num_heads, head_dim)
    a = jnp.dot(a, wo_ref[...], preferred_element_type=jnp.float32) + bo_ref[...]
    h1 = _ln(a + x, aln_g_ref[...], aln_b_ref[...], eps)

    f = jnp.dot(h1, w1_ref[...], preferred_element_type=jnp.float32) + b1_ref[...]
    # TODO(synk): reference uses exact (erf) gelu; tanh approximation used here.
    f = jax.nn.gelu(f, approximate=True)
    f = jnp.dot(f, w2_ref[...], preferred_element_type=jnp.float32) + b2_ref[...]
    out = _ln(f + h1, fln_g_ref[...], fln_b_ref[...], eps)
    o_ref[...] = out.reshape(B, S, H)


def _fused_fusion_kernel(h_ref, sel_ref, col_ref,
                         wcat_ref, bcat_ref,
                         wqkv_ref, bqkv_ref, wo_ref, bo_ref,
                         aln_g_ref, aln_b_ref,
                         o_ref, *, num_heads, head_dim, eps):
    """FusionLayer: column scatter + cat-dense + gelu + self-attention block."""
    B, S, H = h_ref.shape
    C = sel_ref.shape[0]
    h = h_ref[...]            # (B, S, H)
    sel = sel_ref[...]        # (C, B, S)   1.0 where value_mask==c+1 and category==1
    col = col_ref[...]        # (C, B, H)

    hc = jnp.zeros_like(h)
    for c in range(C):        # C is tiny & static -> VPU broadcast MACs
        hc = hc + sel[c][:, :, None] * col[c][:, None, :]

    cat = jnp.concatenate([h, hc], axis=-1).reshape(B * S, 2 * H)
    mixed = jnp.dot(cat, wcat_ref[...], preferred_element_type=jnp.float32) + bcat_ref[...]
    mixed = jax.nn.gelu(mixed, approximate=True)

    # Fusion self-attention has no attention mask in the reference -> bias=None.
    a = _mha(mixed, None, wqkv_ref[...], bqkv_ref[...], B, S, H, num_heads, head_dim)
    a = jnp.dot(a, wo_ref[...], preferred_element_type=jnp.float32) + bo_ref[...]
    out = _ln(a + mixed, aln_g_ref[...], aln_b_ref[...], eps)
    o_ref[...] = out.reshape(B, S, H)


def _pool_project_kernel(h_ref, m2_ref, m3_ref,
                         w_ref, b_ref, g_ref, be_ref,
                         o_ref, *, eps):
    """project(CLS) + masked mean pool (part2, part3) + concat -> (B, 3H)."""
    B, S, H = h_ref.shape
    h = h_ref[...]
    cls = jnp.sum(h[:, 0:1, :], axis=1)  # (B, H)
    p = jnp.dot(cls, w_ref[...], preferred_element_type=jnp.float32) + b_ref[...]
    part1 = _ln(p, g_ref[...], be_ref[...], eps)

    # TODO(synk): pooling_masked_part's `method` is not shown; mean pooling assumed.
    def pool(m2d):
        m = m2d[:, :, None]                                 # (B, S, 1)
        num = jnp.sum(h * m, axis=1)                        # (B, H)
        den = jnp.maximum(jnp.sum(m, axis=1), 1e-9)         # (B, 1)
        return num * pl.reciprocal(den, approx=True)

    part2 = pool(m2_ref[...])
    part3 = pool(m3_ref[...])
    o_ref[...] = jnp.concatenate([part1, part2, part3], axis=-1)


# ----------------------------- kernel wrappers --------------------------------


def fused_transformer_layer(lp, x, bias, in_ln=None):
    B, S, H = x.shape
    wqkv = jnp.concatenate([lp["q"]["w"], lp["k"]["w"], lp["v"]["w"]], axis=1)
    bqkv = jnp.concatenate([lp["q"]["b"], lp["k"]["b"], lp["v"]["b"]]).reshape(1, -1)
    apply_in = in_ln is not None
    in_g = (in_ln[0] if apply_in else jnp.ones((H,), jnp.float32)).reshape(1, -1)
    in_b = (in_ln[1] if apply_in else jnp.zeros((H,), jnp.float32)).reshape(1, -1)
    kern = functools.partial(_fused_layer_kernel, num_heads=NUM_HEADS,
                             head_dim=HEAD_DIM, apply_input_ln=apply_in, eps=LN_EPS)
    return pl.pallas_call(
        kern, out_shape=jax.ShapeDtypeStruct((B, S, H), jnp.float32),
    )(x, bias, in_g, in_b,
      wqkv, bqkv, lp["o"]["w"], lp["o"]["b"].reshape(1, -1),
      lp["attn_ln_g"].reshape(1, -1), lp["attn_ln_b"].reshape(1, -1),
      lp["ffn_in"]["w"], lp["ffn_in"]["b"].reshape(1, -1),
      lp["ffn_out"]["w"], lp["ffn_out"]["b"].reshape(1, -1),
      lp["ffn_ln_g"].reshape(1, -1), lp["ffn_ln_b"].reshape(1, -1))


def fusion_layer_forward(fp, hidden, col_embs, column_categories, value_mask):
    B, S, H = hidden.shape
    C = col_embs.shape[1]
    # sel[c, b, s] = 1 iff value_mask[b,s] == c+1 and column_categories[b,c] == 1
    sel = ((value_mask[None, :, :] ==
            jnp.arange(1, C + 1, dtype=value_mask.dtype)[:, None, None])
           & (column_categories.T[:, :, None] == 1)).astype(jnp.float32)     # (C, B, S)
    col_cbh = jnp.transpose(col_embs, (1, 0, 2))                              # (C, B, H)

    wcat = jnp.concatenate([fp["dense"]["w"], fp["dense_col"]["w"]], axis=0)  # (2H, H)
    bcat = (fp["dense"]["b"] + fp["dense_col"]["b"]).reshape(1, -1)
    ap = fp["attn"]
    wqkv = jnp.concatenate([ap["q"]["w"], ap["k"]["w"], ap["v"]["w"]], axis=1)
    bqkv = jnp.concatenate([ap["q"]["b"], ap["k"]["b"], ap["v"]["b"]]).reshape(1, -1)

    kern = functools.partial(_fused_fusion_kernel, num_heads=NUM_HEADS,
                             head_dim=HEAD_DIM, eps=LN_EPS)
    return pl.pallas_call(
        kern, out_shape=jax.ShapeDtypeStruct((B, S, H), jnp.float32),
    )(hidden, sel, col_cbh, wcat, bcat, wqkv, bqkv,
      ap["o"]["w"], ap["o"]["b"].reshape(1, -1),
      ap["attn_ln_g"].reshape(1, -1), ap["attn_ln_b"].reshape(1, -1))


def pool_project(pp, hidden, part2_mask, part3_mask):
    B, S, H = hidden.shape
    kern = functools.partial(_pool_project_kernel, eps=LN_EPS)
    return pl.pallas_call(
        kern, out_shape=jax.ShapeDtypeStruct((B, 3 * H), jnp.float32),
    )(hidden, part2_mask.astype(jnp.float32), part3_mask.astype(jnp.float32),
      pp["w"], pp["b"].reshape(1, -1),
      pp["ln_g"].reshape(1, -1), pp["ln_b"].reshape(1, -1))


# ----------------------------- model pieces -----------------------------------


def encoder_forward(params, input_ids, attention_mask):
    """Tiny RoBERTa-like encoder; one fused pallas_call per layer."""
    B, S = input_ids.shape
    x = (
        params["word_emb"][input_ids]
        + params["pos_emb"][jnp.arange(S)][None, :, :]
        + params["type_emb"][0][None, None, :]
    )
    bias = ((1.0 - attention_mask.astype(jnp.float32)) * -1e9).reshape(B, 1, S)
    for i, lp in enumerate(params["layers"]):
        in_ln = (params["emb_ln_g"], params["emb_ln_b"]) if i == 0 else None
        x = fused_transformer_layer(lp, x, bias, in_ln=in_ln)
    return x


def encode_column_embeddings(col_params, column_input_ids, column_mask, column_indices):
    B, C, Lc = column_input_ids.shape
    flat_ids = column_input_ids.reshape(B * C, Lc)
    flat_mask = column_mask.reshape(B * C, Lc)
    hs = encoder_forward(col_params, flat_ids, flat_mask)   # (B*C, Lc, H)
    # TODO(synk): columns padded with index == -1 are skipped in the reference;
    # synthetic data here contains no -1 padding, so all columns are encoded.
    idx = column_indices.reshape(B * C)
    col_embs = hs[jnp.arange(B * C), idx, :]                # csep-token gather (glue)
    return col_embs.reshape(B, C, HIDDEN)


def model_forward(params, batch):
    B = batch["c_input_ids"].shape[0]

    # --- batch the three shared-encoder passes (c / neg_c / q) into one (3B) ---
    ids_all = jnp.concatenate(
        [batch["c_input_ids"], batch["neg_input_ids"], batch["q_input_ids"]], axis=0)
    mask_all = jnp.concatenate(
        [batch["c_mask"], batch["neg_mask"], batch["q_mask"]], axis=0)
    p2_all = jnp.concatenate(
        [batch["c_part2_mask"], batch["neg_part2_mask"], batch["q_part2_mask"]], axis=0)
    p3_all = jnp.concatenate(
        [batch["c_part3_mask"], batch["neg_part3_mask"], batch["q_part3_mask"]], axis=0)

    # --- batch the two column-encoder passes (c / neg_c) into one (2B) ---
    col_ids = jnp.concatenate(
        [batch["c_column_input_ids_list"], batch["neg_column_input_ids_list"]], axis=0)
    col_mask = jnp.concatenate(
        [batch["c_column_mask_list"], batch["neg_column_mask_list"]], axis=0)
    col_idx = jnp.concatenate(
        [batch["c_column_token_indices_list"], batch["neg_column_token_indices_list"]], axis=0)
    cats = jnp.concatenate(
        [batch["c_column_categories"], batch["neg_column_categories"]], axis=0)
    vmask = jnp.concatenate(
        [batch["c_value_mask"], batch["neg_value_mask"]], axis=0)

    col_embs = encode_column_embeddings(
        params["col_encoder"], col_ids, col_mask, col_idx)            # (2B, C, H)
    hidden_all = encoder_forward(params["encoder"], ids_all, mask_all)  # (3B, S, H)

    fused = fusion_layer_forward(
        params["fusion"], hidden_all[:2 * B], col_embs, cats, vmask)  # (2B, S, H)
    final_hidden = jnp.concatenate([fused, hidden_all[2 * B:]], axis=0)  # (3B, S, H)

    vecs = pool_project(params["project"], final_hidden, p2_all, p3_all)  # (3B, 3H)
    return {"q": vecs[2 * B:], "c": vecs[:B], "neg_c": vecs[B:2 * B]}


# ----------------------------- deterministic params ---------------------------


def init_linear(key, din, dout):
    return {
        "w": jax.random.normal(key, (din, dout), jnp.float32) * 0.02,
        "b": jnp.zeros((dout,), jnp.float32),
    }


def init_encoder(key, vocab):
    keys = jax.random.split(key, 3 + NUM_LAYERS)
    params = {
        "word_emb": jax.random.normal(keys[0], (vocab, HIDDEN), jnp.float32) * 0.02,
        "pos_emb": jax.random.normal(keys[1], (MAX_POS, HIDDEN), jnp.float32) * 0.02,
        "type_emb": jax.random.normal(keys[2], (2, HIDDEN), jnp.float32) * 0.02,
        "emb_ln_g": jnp.ones((HIDDEN,), jnp.float32),
        "emb_ln_b": jnp.zeros((HIDDEN,), jnp.float32),
        "layers": [],
    }
    for i in range(NUM_LAYERS):
        lk = jax.random.split(keys[3 + i], 6)
        params["layers"].append({
            "q": init_linear(lk[0], HIDDEN, HIDDEN),
            "k": init_linear(lk[1], HIDDEN, HIDDEN),
            "v": init_linear(lk[2], HIDDEN, HIDDEN),
            "o": init_linear(lk[3], HIDDEN, HIDDEN),
            "attn_ln_g": jnp.ones((HIDDEN,), jnp.float32),
            "attn_ln_b": jnp.zeros((HIDDEN,), jnp.float32),
            "ffn_in": init_linear(lk[4], HIDDEN, INTERMEDIATE),
            "ffn_out": init_linear(lk[5], INTERMEDIATE, HIDDEN),
            "ffn_ln_g": jnp.ones((HIDDEN,), jnp.float32),
            "ffn_ln_b": jnp.zeros((HIDDEN,), jnp.float32),
        })
    return params


def init_fusion(key):
    ks = jax.random.split(key, 6)
    return {
        "dense": init_linear(ks[0], HIDDEN, HIDDEN),
        "dense_col": init_linear(ks[1], HIDDEN, HIDDEN),
        "attn": {
            "q": init_linear(ks[2], HIDDEN, HIDDEN),
            "k": init_linear(ks[3], HIDDEN, HIDDEN),
            "v": init_linear(ks[4], HIDDEN, HIDDEN),
            "o": init_linear(ks[5], HIDDEN, HIDDEN),
            "attn_ln_g": jnp.ones((HIDDEN,), jnp.float32),
            "attn_ln_b": jnp.zeros((HIDDEN,), jnp.float32),
        },
    }


def init_model(key):
    k1, k2, k3, k4 = jax.random.split(key, 4)
    proj = init_linear(k4, HIDDEN, HIDDEN)
    proj["ln_g"] = jnp.ones((HIDDEN,), jnp.float32)
    proj["ln_b"] = jnp.zeros((HIDDEN,), jnp.float32)
    return {
        "encoder": init_encoder(k1, VOCAB),          # args.shared_encoder = True
        "col_encoder": init_encoder(k2, COL_VOCAB),  # column_summary_model backbone
        "fusion": init_fusion(k3),
        "project": proj,
    }


# ----------------------------- synthetic inputs & main -------------------------


def make_side(keys, prefix):
    ids = jax.random.randint(keys[0], (BATCH, SEQ), 0, VOCAB, dtype=jnp.int32)
    p2 = (jax.random.uniform(keys[1], (BATCH, SEQ)) > 0.5).astype(jnp.int32).at[:, 1].set(1)
    p3 = (jax.random.uniform(keys[2], (BATCH, SEQ)) > 0.5).astype(jnp.int32).at[:, 2].set(1)
    col_ids = jax.random.randint(keys[3], (BATCH, NUM_COLS, COL_SEQ), 0, COL_VOCAB, dtype=jnp.int32)
    col_idx = jax.random.randint(keys[4], (BATCH, NUM_COLS), 0, COL_SEQ, dtype=jnp.int32)
    cats = jax.random.randint(keys[5], (BATCH, NUM_COLS), 0, 2, dtype=jnp.int32)
    vmask = jax.random.randint(keys[6], (BATCH, SEQ), 0, NUM_COLS + 1, dtype=jnp.int32)
    return {
        f"{prefix}_input_ids": ids,
        f"{prefix}_mask": jnp.ones((BATCH, SEQ), jnp.int32),
        f"{prefix}_part2_mask": p2,
        f"{prefix}_part3_mask": p3,
        f"{prefix}_column_input_ids_list": col_ids,
        f"{prefix}_column_mask_list": jnp.ones((BATCH, NUM_COLS, COL_SEQ), jnp.int32),
        f"{prefix}_column_token_indices_list": col_idx,
        f"{prefix}_column_categories": cats,
        f"{prefix}_value_mask": vmask,
    }


if __name__ == "__main__":
    params = init_model(jax.random.PRNGKey(0))

    dkey = jax.random.PRNGKey(0)
    keys = jax.random.split(dkey, 20)
    batch = {}
    batch.update(make_side(keys[0:7], "c"))
    batch.update(make_side(keys[7:14], "neg"))
    batch.update({
        "q_input_ids": jax.random.randint(keys[14], (BATCH, SEQ), 0, VOCAB, dtype=jnp.int32),
        "q_mask": jnp.ones((BATCH, SEQ), jnp.int32),
        "q_part2_mask": (jax.random.uniform(keys[15], (BATCH, SEQ)) > 0.5)
        .astype(jnp.int32).at[:, 1].set(1),
        "q_part3_mask": (jax.random.uniform(keys[16], (BATCH, SEQ)) > 0.5)
        .astype(jnp.int32).at[:, 2].set(1),
    })

    out = model_forward(params, batch)
    jax.block_until_ready(out)
    assert out["q"].shape == (BATCH, 3 * HIDDEN)
    assert out["c"].shape == (BATCH, 3 * HIDDEN)
    assert out["neg_c"].shape == (BATCH, 3 * HIDDEN)
    print("KERNEL_OK")
</pallas_src>

<mosaic_0001>
module attributes {stable_mosaic.version = 11 : i64} {
  func.func @_fused_layer_kernel(%arg0: memref<12x8x32xf32, #tpu.memory_space<vmem>>, %arg1: memref<12x1x8xf32, #tpu.memory_space<vmem>>, %arg2: memref<1x32xf32, #tpu.memory_space<vmem>>, %arg3: memref<1x32xf32, #tpu.memory_space<vmem>>, %arg4: memref<32x96xf32, #tpu.memory_space<vmem>>, %arg5: memref<1x96xf32, #tpu.memory_space<vmem>>, %arg6: memref<32x32xf32, #tpu.memory_space<vmem>>, %arg7: memref<1x32xf32, #tpu.memory_space<vmem>>, %arg8: memref<1x32xf32, #tpu.memory_space<vmem>>, %arg9: memref<1x32xf32, #tpu.memory_space<vmem>>, %arg10: memref<32x64xf32, #tpu.memory_space<vmem>>, %arg11: memref<1x64xf32, #tpu.memory_space<vmem>>, %arg12: memref<64x32xf32, #tpu.memory_space<vmem>>, %arg13: memref<1x32xf32, #tpu.memory_space<vmem>>, %arg14: memref<1x32xf32, #tpu.memory_space<vmem>>, %arg15: memref<1x32xf32, #tpu.memory_space<vmem>>, %arg16: memref<12x8x32xf32, #tpu.memory_space<vmem>>) attributes {dimension_semantics = [], scalar_prefetch = 0 : i64, scratch_operands = 0 : i64, tpu.core_type = #tpu.core_type<tc>} {
    %c0 = arith.constant 0 : index
    %c0_0 = arith.constant 0 : index
    %c0_1 = arith.constant 0 : index
    %0 = vector.load %arg0[%c0, %c0_0, %c0_1] : memref<12x8x32xf32, #tpu.memory_space<vmem>>, vector<12x8x32xf32>
    %1 = vector.shape_cast %0 : vector<12x8x32xf32> to vector<96x32xf32>
    %c0_2 = arith.constant 0 : index
    %c0_3 = arith.constant 0 : index
    %2 = vector.load %arg2[%c0_2, %c0_3] : memref<1x32xf32, #tpu.memory_space<vmem>>, vector<1x32xf32>
    %c0_4 = arith.constant 0 : index
    %c0_5 = arith.constant 0 : index
    %3 = vector.load %arg3[%c0_4, %c0_5] : memref<1x32xf32, #tpu.memory_space<vmem>>, vector<1x32xf32>
    %cst = arith.constant dense<0.000000e+00> : vector<96xf32>
    %4 = vector.multi_reduction <add>, %1, %cst [1] : vector<96x32xf32> to vector<96xf32>
    %5 = vector.shape_cast %4 : vector<96xf32> to vector<96x1xf32>
    %cst_6 = arith.constant 3.200000e+01 : f32
    %6 = vector.broadcast %cst_6 : f32 to vector<96x1xf32>
    %7 = arith.divf %5, %6 : vector<96x1xf32>
    %8 = vector.broadcast %7 : vector<96x1xf32> to vector<96x32xf32>
    %9 = arith.subf %1, %8 : vector<96x32xf32>
    %10 = arith.mulf %9, %9 : vector<96x32xf32>
    %cst_7 = arith.constant dense<0.000000e+00> : vector<96xf32>
    %11 = vector.multi_reduction <add>, %10, %cst_7 [1] : vector<96x32xf32> to vector<96xf32>
    %12 = vector.shape_cast %11 : vector<96xf32> to vector<96x1xf32>
    %cst_8 = arith.constant 3.200000e+01 : f32
    %13 = vector.broadcast %cst_8 : f32 to vector<96x1xf32>
    %14 = arith.divf %12, %13 : vector<96x1xf32>
    %15 = vector.broadcast %7 : vector<96x1xf32> to vector<96x32xf32>
    %16 = arith.subf %1, %15 : vector<96x32xf32>
    %cst_9 = arith.constant 9.99999974E-6 : f32
    %17 = vector.broadcast %cst_9 : f32 to vector<96x1xf32>
    %18 = arith.addf %14, %17 : vector<96x1xf32>
    %19 = math.rsqrt %18 : vector<96x1xf32>
    %20 = vector.broadcast %19 : vector<96x1xf32> to vector<96x32xf32>
    %21 = arith.mulf %16, %20 : vector<96x32xf32>
    %22 = vector.broadcast %2 : vector<1x32xf32> to vector<96x32xf32>
    %23 = arith.mulf %21, %22 : vector<96x32xf32>
    %24 = vector.broadcast %3 : vector<1x32xf32> to vector<96x32xf32>
    %25 = arith.addf %23, %24 : vector<96x32xf32>
    %c0_10 = arith.constant 0 : index
    %c0_11 = arith.constant 0 : index
    %c0_12 = arith.constant 0 : index
    %26 = vector.load %arg1[%c0_10, %c0_11, %c0_12] : memref<12x1x8xf32, #tpu.memory_space<vmem>>, vector<12x1x8xf32>
    %c0_13 = arith.constant 0 : index
    %c0_14 = arith.constant 0 : index
    %27 = vector.load %arg4[%c0_13, %c0_14] : memref<32x96xf32, #tpu.memory_space<vmem>>, vector<32x96xf32>
    %c0_15 = arith.constant 0 : index
    %c0_16 = arith.constant 0 : index
    %28 = vector.load %arg5[%c0_15, %c0_16] : memref<1x96xf32, #tpu.memory_space<vmem>>, vector<1x96xf32>
    %cst_17 = arith.constant dense<0.000000e+00> : vector<96x96xf32>
    %29 = tpu.matmul %25, %27, %cst_17 {dimension_numbers = #tpu.dot_dimension_numbers<[1], [0], [0], [1], [0, 0, 1, 1], [], []>} : vector<96x32xf32>, vector<32x96xf32>, vector<96x96xf32> -> vector<96x96xf32>
    %30 = vector.broadcast %28 : vector<1x96xf32> to vector<96x96xf32>
    %31 = arith.addf %29, %30 : vector<96x96xf32>
    %32 = vector.shape_cast %31 : vector<96x96xf32> to vector<12x8x96xf32>
    %33 = vector.extract_strided_slice %32 {offsets = [0, 0, 0], sizes = [12, 8, 16], strides = [1, 1, 1]} : vector<12x8x96xf32> to vector<12x8x16xf32>
    %34 = vector.extract_strided_slice %32 {offsets = [0, 0, 32], sizes = [12, 8, 16], strides = [1, 1, 1]} : vector<12x8x96xf32> to vector<12x8x16xf32>
    %35 = vector.extract_strided_slice %32 {offsets = [0, 0, 64], sizes = [12, 8, 16], strides = [1, 1, 1]} : vector<12x8x96xf32> to vector<12x8x16xf32>
    "tpu.trace_start"() <{level = 10 : i32, message = "bqd,bkd->bqk"}> : () -> ()
    %cst_18 = arith.constant dense<0.000000e+00> : vector<12x8x8xf32>
    %36 = tpu.matmul %33, %34, %cst_18 {dimension_numbers = #tpu.dot_dimension_numbers<[2], [2], [1], [1], [0, 0, 0, 1, 1, 1], [0], [0]>} : vector<12x8x16xf32>, vector<12x8x16xf32>, vector<12x8x8xf32> -> vector<12x8x8xf32>
    "tpu.trace_stop"() : () -> ()
    %cst_19 = arith.constant 2.500000e-01 : f32
    %37 = vector.broadcast %cst_19 : f32 to vector<12x8x8xf32>
    %38 = arith.mulf %36, %37 : vector<12x8x8xf32>
    %39 = vector.broadcast %26 : vector<12x1x8xf32> to vector<12x8x8xf32>
    %40 = arith.addf %38, %39 : vector<12x8x8xf32>
    %cst_20 = arith.constant dense<0xFF800000> : vector<12x8xf32>
    %41 = vector.multi_reduction <maximumf>, %40, %cst_20 [2] : vector<12x8x8xf32> to vector<12x8xf32>
    %42 = vector.shape_cast %41 : vector<12x8xf32> to vector<12x8x1xf32>
    %43 = vector.broadcast %42 : vector<12x8x1xf32> to vector<12x8x8xf32>
    %44 = arith.subf %40, %43 : vector<12x8x8xf32>
    %45 = math.exp %44 : vector<12x8x8xf32>
    %cst_21 = arith.constant dense<0.000000e+00> : vector<12x8xf32>
    %46 = vector.multi_reduction <add>, %45, %cst_21 [2] : vector<12x8x8xf32> to vector<12x8xf32>
    %47 = vector.shape_cast %46 : vector<12x8xf32> to vector<12x8x1xf32>
    %48 = tpu.reciprocal %47 {approx = true} : vector<12x8x1xf32> -> vector<12x8x1xf32>
    %49 = vector.broadcast %48 : vector<12x8x1xf32> to vector<12x8x8xf32>
    %50 = arith.mulf %45, %49 : vector<12x8x8xf32>
    "tpu.trace_start"() <{level = 10 : i32, message = "bqk,bkd->bqd"}> : () -> ()
    %cst_22 = arith.constant dense<0.000000e+00> : vector<12x8x16xf32>
    %51 = tpu.matmul %50, %35, %cst_22 {dimension_numbers = #tpu.dot_dimension_numbers<[2], [1], [1], [2], [0, 0, 0, 1, 1, 2], [0], [0]>} : vector<12x8x8xf32>, vector<12x8x16xf32>, vector<12x8x16xf32> -> vector<12x8x16xf32>
    "tpu.trace_stop"() : () -> ()
    %52 = vector.extract_strided_slice %32 {offsets = [0, 0, 16], sizes = [12, 8, 16], strides = [1, 1, 1]} : vector<12x8x96xf32> to vector<12x8x16xf32>
    %53 = vector.extract_strided_slice %32 {offsets = [0, 0, 48], sizes = [12, 8, 16], strides = [1, 1, 1]} : vector<12x8x96xf32> to vector<12x8x16xf32>
    %54 = vector.extract_strided_slice %32 {offsets = [0, 0, 80], sizes = [12, 8, 16], strides = [1, 1, 1]} : vector<12x8x96xf32> to vector<12x8x16xf32>
    "tpu.trace_start"() <{level = 10 : i32, message = "bqd,bkd->bqk"}> : () -> ()
    %cst_23 = arith.constant dense<0.000000e+00> : vector<12x8x8xf32>
    %55 = tpu.matmul %52, %53, %cst_23 {dimension_numbers = #tpu.dot_dimension_numbers<[2], [2], [1], [1], [0, 0, 0, 1, 1, 1], [0], [0]>} : vector<12x8x16xf32>, vector<12x8x16xf32>, vector<12x8x8xf32> -> vector<12x8x8xf32>
    "tpu.trace_stop"() : () -> ()
    %cst_24 = arith.constant 2.500000e-01 : f32
    %56 = vector.broadcast %cst_24 : f32 to vector<12x8x8xf32>
    %57 = arith.mulf %55, %56 : vector<12x8x8xf32>
    %58 = vector.broadcast %26 : vector<12x1x8xf32> to vector<12x8x8xf32>
    %59 = arith.addf %57, %58 : vector<12x8x8xf32>
    %cst_25 = arith.constant dense<0xFF800000> : vector<12x8xf32>
    %60 = vector.multi_reduction <maximumf>, %59, %cst_25 [2] : vector<12x8x8xf32> to vector<12x8xf32>
    %61 = vector.shape_cast %60 : vector<12x8xf32> to vector<12x8x1xf32>
    %62 = vector.broadcast %61 : vector<12x8x1xf32> to vector<12x8x8xf32>
    %63 = arith.subf %59, %62 : vector<12x8x8xf32>
    %64 = math.exp %63 : vector<12x8x8xf32>
    %cst_26 = arith.constant dense<0.000000e+00> : vector<12x8xf32>
    %65 = vector.multi_reduction <add>, %64, %cst_26 [2] : vector<12x8x8xf32> to vector<12x8xf32>
    %66 = vector.shape_cast %65 : vector<12x8xf32> to vector<12x8x1xf32>
    %67 = tpu.reciprocal %66 {approx = true} : vector<12x8x1xf32> -> vector<12x8x1xf32>
    %68 = vector.broadcast %67 : vector<12x8x1xf32> to vector<12x8x8xf32>
    %69 = arith.mulf %64, %68 : vector<12x8x8xf32>
    "tpu.trace_start"() <{level = 10 : i32, message = "bqk,bkd->bqd"}> : () -> ()
    %cst_27 = arith.constant dense<0.000000e+00> : vector<12x8x16xf32>
    %70 = tpu.matmul %69, %54, %cst_27 {dimension_numbers = #tpu.dot_dimension_numbers<[2], [1], [1], [2], [0, 0, 0, 1, 1, 2], [0], [0]>} : vector<12x8x8xf32>, vector<12x8x16xf32>, vector<12x8x16xf32> -> vector<12x8x16xf32>
    "tpu.trace_stop"() : () -> ()
    %71 = tpu.concatenate %51, %70 in 2 : vector<12x8x16xf32>, vector<12x8x16xf32> -> vector<12x8x32xf32>
    %72 = vector.shape_cast %71 : vector<12x8x32xf32> to vector<96x32xf32>
    %c0_28 = arith.constant 0 : index
    %c0_29 = arith.constant 0 : index
    %73 = vector.load %arg6[%c0_28, %c0_29] : memref<32x32xf32, #tpu.memory_space<vmem>>, vector<32x32xf32>
    %cst_30 = arith.constant dense<0.000000e+00> : vector<96x32xf32>
    %74 = tpu.matmul %72, %73, %cst_30 {dimension_numbers = #tpu.dot_dimension_numbers<[1], [0], [0], [1], [0, 0, 1, 1], [], []>} : vector<96x32xf32>, vector<32x32xf32>, vector<96x32xf32> -> vector<96x32xf32>
    %c0_31 = arith.constant 0 : index
    %c0_32 = arith.constant 0 : index
    %75 = vector.load %arg7[%c0_31, %c0_32] : memref<1x32xf32, #tpu.memory_space<vmem>>, vector<1x32xf32>
    %76 = vector.broadcast %75 : vector<1x32xf32> to vector<96x32xf32>
    %77 = arith.addf %74, %76 : vector<96x32xf32>
    %78 = arith.addf %77, %25 : vector<96x32xf32>
    %c0_33 = arith.constant 0 : index
    %c0_34 = arith.constant 0 : index
    %79 = vector.load %arg8[%c0_33, %c0_34] : memref<1x32xf32, #tpu.memory_space<vmem>>, vector<1x32xf32>
    %c0_35 = arith.constant 0 : index
    %c0_36 = arith.constant 0 : index
    %80 = vector.load %arg9[%c0_35, %c0_36] : memref<1x32xf32, #tpu.memory_space<vmem>>, vector<1x32xf32>
    %cst_37 = arith.constant dense<0.000000e+00> : vector<96xf32>
    %81 = vector.multi_reduction <add>, %78, %cst_37 [1] : vector<96x32xf32> to vector<96xf32>
    %82 = vector.shape_cast %81 : vector<96xf32> to vector<96x1xf32>
    %cst_38 = arith.constant 3.200000e+01 : f32
    %83 = vector.broadcast %cst_38 : f32 to vector<96x1xf32>
    %84 = arith.divf %82, %83 : vector<96x1xf32>
    %85 = vector.broadcast %84 : vector<96x1xf32> to vector<96x32xf32>
    %86 = arith.subf %78, %85 : vector<96x32xf32>
    %87 = arith.mulf %86, %86 : vector<96x32xf32>
    %cst_39 = arith.constant dense<0.000000e+00> : vector<96xf32>
    %88 = vector.multi_reduction <add>, %87, %cst_39 [1] : vector<96x32xf32> to vector<96xf32>
    %89 = vector.shape_cast %88 : vector<96xf32> to vector<96x1xf32>
    %cst_40 = arith.constant 3.200000e+01 : f32
    %90 = vector.broadcast %cst_40 : f32 to vector<96x1xf32>
    %91 = arith.divf %89, %90 : vector<96x1xf32>
    %92 = vector.broadcast %84 : vector<96x1xf32> to vector<96x32xf32>
    %93 = arith.subf %78, %92 : vector<96x32xf32>
    %cst_41 = arith.constant 9.99999974E-6 : f32
    %94 = vector.broadcast %cst_41 : f32 to vector<96x1xf32>
    %95 = arith.addf %91, %94 : vector<96x1xf32>
    %96 = math.rsqrt %95 : vector<96x1xf32>
    %97 = vector.broadcast %96 : vector<96x1xf32> to vector<96x32xf32>
    %98 = arith.mulf %93, %97 : vector<96x32xf32>
    %99 = vector.broadcast %79 : vector<1x32xf32> to vector<96x32xf32>
    %100 = arith.mulf %98, %99 : vector<96x32xf32>
    %101 = vector.broadcast %80 : vector<1x32xf32> to vector<96x32xf32>
    %102 = arith.addf %100, %101 : vector<96x32xf32>
    %c0_42 = arith.constant 0 : index
    %c0_43 = arith.constant 0 : index
    %103 = vector.load %arg10[%c0_42, %c0_43] : memref<32x64xf32, #tpu.memory_space<vmem>>, vector<32x64xf32>
    %cst_44 = arith.constant dense<0.000000e+00> : vector<96x64xf32>
    %104 = tpu.matmul %102, %103, %cst_44 {dimension_numbers = #tpu.dot_dimension_numbers<[1], [0], [0], [1], [0, 0, 1, 1], [], []>} : vector<96x32xf32>, vector<32x64xf32>, vector<96x64xf32> -> vector<96x64xf32>
    %c0_45 = arith.constant 0 : index
    %c0_46 = arith.constant 0 : index
    %105 = vector.load %arg11[%c0_45, %c0_46] : memref<1x64xf32, #tpu.memory_space<vmem>>, vector<1x64xf32>
    %106 = vector.broadcast %105 : vector<1x64xf32> to vector<96x64xf32>
    %107 = arith.addf %104, %106 : vector<96x64xf32>
    %108 = arith.mulf %107, %107 : vector<96x64xf32>
    %109 = arith.mulf %107, %108 : vector<96x64xf32>
    %cst_47 = arith.constant 4.471500e-02 : f32
    %110 = vector.broadcast %cst_47 : f32 to vector<96x64xf32>
    %111 = arith.mulf %110, %109 : vector<96x64xf32>
    %112 = arith.addf %107, %111 : vector<96x64xf32>
    %cst_48 = arith.constant 0.797884583 : f32
    %113 = vector.broadcast %cst_48 : f32 to vector<96x64xf32>
    %114 = arith.mulf %113, %112 : vector<96x64xf32>
    %115 = math.tanh %114 : vector<96x64xf32>
    %cst_49 = arith.constant 1.000000e+00 : f32
    %116 = vector.broadcast %cst_49 : f32 to vector<96x64xf32>
    %117 = arith.addf %116, %115 : vector<96x64xf32>
    %cst_50 = arith.constant 5.000000e-01 : f32
    %118 = vector.broadcast %cst_50 : f32 to vector<96x64xf32>
    %119 = arith.mulf %118, %117 : vector<96x64xf32>
    %120 = arith.mulf %107, %119 : vector<96x64xf32>
    %c0_51 = arith.constant 0 : index
    %c0_52 = arith.constant 0 : index
    %121 = vector.load %arg12[%c0_51, %c0_52] : memref<64x32xf32, #tpu.memory_space<vmem>>, vector<64x32xf32>
    %cst_53 = arith.constant dense<0.000000e+00> : vector<96x32xf32>
    %122 = tpu.matmul %120, %121, %cst_53 {dimension_numbers = #tpu.dot_dimension_numbers<[1], [0], [0], [1], [0, 0, 1, 1], [], []>} : vector<96x64xf32>, vector<64x32xf32>, vector<96x32xf32> -> vector<96x32xf32>
    %c0_54 = arith.constant 0 : index
    %c0_55 = arith.constant 0 : index
    %123 = vector.load %arg13[%c0_54, %c0_55] : memref<1x32xf32, #tpu.memory_space<vmem>>, vector<1x32xf32>
    %124 = vector.broadcast %123 : vector<1x32xf32> to vector<96x32xf32>
    %125 = arith.addf %122, %124 : vector<96x32xf32>
    %126 = arith.addf %125, %102 : vector<96x32xf32>
    %c0_56 = arith.constant 0 : index
    %c0_57 = arith.constant 0 : index
    %127 = vector.load %arg14[%c0_56, %c0_57] : memref<1x32xf32, #tpu.memory_space<vmem>>, vector<1x32xf32>
    %c0_58 = arith.constant 0 : index
    %c0_59 = arith.constant 0 : index
    %128 = vector.load %arg15[%c0_58, %c0_59] : memref<1x32xf32, #tpu.memory_space<vmem>>, vector<1x32xf32>
    %cst_60 = arith.constant dense<0.000000e+00> : vector<96xf32>
    %129 = vector.multi_reduction <add>, %126, %cst_60 [1] : vector<96x32xf32> to vector<96xf32>
    %130 = vector.shape_cast %129 : vector<96xf32> to vector<96x1xf32>
    %cst_61 = arith.constant 3.200000e+01 : f32
    %131 = vector.broadcast %cst_61 : f32 to vector<96x1xf32>
    %132 = arith.divf %130, %131 : vector<96x1xf32>
    %133 = vector.broadcast %132 : vector<96x1xf32> to vector<96x32xf32>
    %134 = arith.subf %126, %133 : vector<96x32xf32>
    %135 = arith.mulf %134, %134 : vector<96x32xf32>
    %cst_62 = arith.constant dense<0.000000e+00> : vector<96xf32>
    %136 = vector.multi_reduction <add>, %135, %cst_62 [1] : vector<96x32xf32> to vector<96xf32>
    %137 = vector.shape_cast %136 : vector<96xf32> to vector<96x1xf32>
    %cst_63 = arith.constant 3.200000e+01 : f32
    %138 = vector.broadcast %cst_63 : f32 to vector<96x1xf32>
    %139 = arith.divf %137, %138 : vector<96x1xf32>
    %140 = vector.broadcast %132 : vector<96x1xf32> to vector<96x32xf32>
    %141 = arith.subf %126, %140 : vector<96x32xf32>
    %cst_64 = arith.constant 9.99999974E-6 : f32
    %142 = vector.broadcast %cst_64 : f32 to vector<96x1xf32>
    %143 = arith.addf %139, %142 : vector<96x1xf32>
    %144 = math.rsqrt %143 : vector<96x1xf32>
    %145 = vector.broadcast %144 : vector<96x1xf32> to vector<96x32xf32>
    %146 = arith.mulf %141, %145 : vector<96x32xf32>
    %147 = vector.broadcast %127 : vector<1x32xf32> to vector<96x32xf32>
    %148 = arith.mulf %146, %147 : vector<96x32xf32>
    %149 = vector.broadcast %128 : vector<1x32xf32> to vector<96x32xf32>
    %150 = arith.addf %148, %149 : vector<96x32xf32>
    %151 = vector.shape_cast %150 : vector<96x32xf32> to vector<12x8x32xf32>
    %c0_65 = arith.constant 0 : index
    %c0_66 = arith.constant 0 : index
    %c0_67 = arith.constant 0 : index
    %152 = vector.load %arg16[%c0_65, %c0_66, %c0_67] : memref<12x8x32xf32, #tpu.memory_space<vmem>>, vector<12x8x32xf32>
    tpu.vector_store %arg16[%c0_65, %c0_66, %c0_67], %151 {strides = array<i32>} : memref<12x8x32xf32, #tpu.memory_space<vmem>>, vector<12x8x32xf32>,
    return
  }
}

</mosaic_0001>

<bundles_post_ra>
// kernel: tpu_custom_call.1
= control target key start
LH: loop header
LB: loop body
LE: loop exit
PB: predicated region body
PF: predicated region fallthrough
CT: control target
= control target key end

     0   :  { %s8632_s0 = inlined_call_operand.vmem [shape: f32[12,8,32], index: 0, kind: input, shape index: {}]   ;;  %s8633_s1 = inlined_call_operand.vmem [shape: f32[12,1,8], index: 1, kind: input, shape index: {}]   ;;  %s8634_s2 = inlined_call_operand.vmem [shape: f32[1,32], index: 2, kind: input, shape index: {}]   ;;  %s8635_s3 = inlined_call_operand.hbm [shape: f32[1,32], index: 3, kind: input, shape index: {}]   ;;  %s8636_s4 = inlined_call_operand.vmem [shape: f32[32,96], index: 4, kind: input, shape index: {}]   ;;  %s8637_s5 = inlined_call_operand.hbm [shape: f32[1,96], index: 5, kind: input, shape index: {}]   ;;  %s8638_s6 = inlined_call_operand.hbm [shape: f32[32,32], index: 6, kind: input, shape index: {}]   ;;  %s8639_s7 = inlined_call_operand.hbm [shape: f32[1,32], index: 7, kind: input, shape index: {}]   ;;  %s8640_s8 = inlined_call_operand.hbm [shape: f32[1,32], index: 8, kind: input, shape index: {}]   ;;  %s8641_s9 = inlined_call_operand.hbm [shape: f32[1,32], index: 9, kind: input, shape index: {}]   ;;  %s8642_s10 = inlined_call_operand.hbm [shape: f32[32,64], index: 10, kind: input, shape index: {}]   ;;  %s8643_s11 = inlined_call_operand.hbm [shape: f32[1,64], index: 11, kind: input, shape index: {}]   ;;  %s8644_s12 = inlined_call_operand.vmem [shape: f32[64,32], index: 12, kind: input, shape index: {}]   ;;  %s8645_s13 = inlined_call_operand.vmem [shape: f32[1,32], index: 13, kind: input, shape index: {}]   ;;  %s8646_s14 = inlined_call_operand.vmem [shape: f32[1,32], index: 14, kind: input, shape index: {}]   ;;  %s8647_s15 = inlined_call_operand.vmem [shape: f32[1,32], index: 15, kind: input, shape index: {}]   ;;  %s8648_s16 = inlined_call_operand.hbm [shape: f32[12,8,32], index: 16, kind: output, shape index: {}]  }
   0x1   :  { %8662 = sst [smem:[#allocation33_spill]] %s8632_s0 }
   0x2   :  { %21 = vsyncpa [#allocation3], 0 }
   0x3   :  { %22 = vsyncpa [#allocation6], 0 }
   0x4   :  { %23 = vsyncpa [#allocation9], 0 }
   0x5   :  { %24 = vsyncpa [#allocation12], 0 }
   0x6   :  { %25 = vsyncpa [#allocation15], 0 }
   0x7   :  { %26 = vsyncpa [#allocation4], 0  ;;  %s6870_s21 = smov [#allocation5]   ;;  %s6871_s23 = smov [#allocation8]  }
   0x8   :  { %s51_s22 = sshll.u32 %s6870_s21, 4  ;;  %s73_s24 = sshll.u32 %s6871_s23, 4  ;;  %s52_s22 = int_to_ptr.vmem [resolvable:$true] %s51_s22  ;;  %s74_s24 = int_to_ptr.vmem [resolvable:$true] %s73_s24 }
   0x9   :  { %s6660_s27 = scalar_lea.hbm %s8637_s5, 16 }
   0xa   :  { %p6661_p0 = scmp.ne.s32.totalorder %s8637_s5, %s6660_s27  ;;  %p6664_p1 = scmp.lt.u32.totalorder %s6660_s27, %s8637_s5 }
   0xc   :  { %p6666_p2 = pnand %p6664_p1, %p6661_p0 }
   0xe   :  { %6669 = shalt.err (!%p6666_p2)
}
   0xf   :  { %s6670_s17 = scalar_lea.vmem %s52_s22, 16  ;;  %s6674_s18 = scalar_lea.vmem %s52_s22, 32 }
  0x10   :  { %p6671_p3 = scmp.ne.s32.totalorder %s52_s22, %s6670_s17  ;;  %p6675_p4 = scmp.lt.s32.totalorder %s52_s22, %s52_s22 }
  0x11   :  { %p6676_p5 = scmp.lt.s32.totalorder %s6674_s18, %s6670_s17 }
  0x13   :  { %p6677_p6 = por %p6676_p5, %p6675_p4 }
  0x15   :  { %p6678_p7 = pnand %p6677_p6, %p6671_p3 }
  0x17   :  { %6681 = shalt.err (!%p6678_p7)
}
  0x18   :  { %54 = dma.hbm_to_vmem [thread:$0]  %s8637_s5, 16, %s52_s22, [#allocation6]  }
  0x19   :  { %s6682_s25 = scalar_lea.hbm %s8639_s7, 16 }
  0x1a   :  { %p6683_p8 = scmp.ne.s32.totalorder %s8639_s7, %s6682_s25  ;;  %p6686_p9 = scmp.lt.u32.totalorder %s6682_s25, %s8639_s7 }
  0x1c   :  { %p6688_p10 = pnand %p6686_p9, %p6683_p8 }
  0x1e   :  { %6691 = shalt.err (!%p6688_p10)
}
  0x1f   :  { %s6692_s30 = scalar_lea.vmem %s74_s24, 16  ;;  %s6696_s0 = scalar_lea.vmem %s74_s24, 32 }
  0x20   :  { %p6693_p11 = scmp.ne.s32.totalorder %s74_s24, %s6692_s30  ;;  %p6697_p12 = scmp.lt.s32.totalorder %s74_s24, %s74_s24 }
  0x21   :  { %p6698_p13 = scmp.lt.s32.totalorder %s6696_s0, %s6692_s30 }
  0x23   :  { %p6699_p0 = por %p6698_p13, %p6697_p12 }
  0x25   :  { %p6700_p1 = pnand %p6699_p0, %p6693_p11 }
  0x27   :  { %6703 = shalt.err (!%p6700_p1)
}
  0x28   :  { %76 = dma.hbm_to_vmem [thread:$0]  %s8639_s7, 16, %s74_s24, [#allocation9]  }
  0x29   :  { %s6872_s17 = smov [#allocation11]   ;;  %s6873_s19 = smov [#allocation2]  }
  0x2a   :  { %s93_s18 = sshll.u32 %s6872_s17, 4  ;;  %s39_s20 = sshll.u32 %s6873_s19, 4  ;;  %s94_s18 = int_to_ptr.vmem [resolvable:$true] %s93_s18  ;;  %s40_s20 = int_to_ptr.vmem [resolvable:$true] %s39_s20 }
  0x2b   :  { %s6704_s25 = scalar_lea.hbm %s8641_s9, 16 }
  0x2c   :  { %p6705_p2 = scmp.ne.s32.totalorder %s8641_s9, %s6704_s25  ;;  %p6708_p3 = scmp.lt.u32.totalorder %s6704_s25, %s8641_s9 }
  0x2e   :  { %p6710_p4 = pnand %p6708_p3, %p6705_p2 }
  0x30   :  { %6713 = shalt.err (!%p6710_p4)
}
  0x31   :  { %s6714_s7 = scalar_lea.vmem %s94_s18, 16  ;;  %s6718_s24 = scalar_lea.vmem %s94_s18, 32 }
  0x32   :  { %p6715_p5 = scmp.ne.s32.totalorder %s94_s18, %s6714_s7  ;;  %p6719_p6 = scmp.lt.s32.totalorder %s94_s18, %s94_s18 }
  0x33   :  { %p6720_p7 = scmp.lt.s32.totalorder %s6718_s24, %s6714_s7 }
  0x35   :  { %p6721_p8 = por %p6720_p7, %p6719_p6 }
  0x37   :  { %p6722_p9 = pnand %p6721_p8, %p6715_p5 }
  0x39   :  { %6725 = shalt.err (!%p6722_p9)
}
  0x3a   :  { %96 = dma.hbm_to_vmem [thread:$0]  %s8641_s9, 16, %s94_s18, [#allocation12]  }
  0x3b   :  { %s6726_s17 = scalar_lea.hbm %s8635_s3, 16 }
  0x3c   :  { %p6727_p10 = scmp.ne.s32.totalorder %s8635_s3, %s6726_s17  ;;  %p6730_p11 = scmp.lt.u32.totalorder %s6726_s17, %s8635_s3 }
  0x3e   :  { %p6732_p12 = pnand %p6730_p11, %p6727_p10 }
  0x40   :  { %6735 = shalt.err (!%p6732_p12)
}
  0x41   :  { %s6736_s26 = scalar_lea.vmem %s40_s20, 16  ;;  %s6740_s27 = scalar_lea.vmem %s40_s20, 32 }
  0x42   :  { %p6737_p13 = scmp.ne.s32.totalorder %s40_s20, %s6736_s26  ;;  %p6741_p0 = scmp.lt.s32.totalorder %s40_s20, %s40_s20 }
  0x43   :  { %p6742_p1 = scmp.lt.s32.totalorder %s6740_s27, %s6736_s26 }
  0x45   :  { %p6743_p2 = por %p6742_p1, %p6741_p0 }
  0x47   :  { %p6744_p3 = pnand %p6743_p2, %p6737_p13 }
  0x49   :  { %6747 = shalt.err (!%p6744_p3)
}
  0x4a   :  { %42 = dma.hbm_to_vmem [thread:$0]  %s8635_s3, 16, %s40_s20, [#allocation3]  }
  0x4b   :  { %s6874_s28 = smov [#allocation7]   ;;  %s6748_s30 = scalar_lea.hbm %s8638_s6, 512 }
  0x4c   :  { %s60_s29 = sshll.u32 %s6874_s28, 4  ;;  %p6749_p4 = scmp.ne.s32.totalorder %s8638_s6, %s6748_s30  ;;  %s61_s29 = int_to_ptr.vmem [resolvable:$true] %s60_s29 }
  0x4d   :  { %p6752_p5 = scmp.lt.u32.totalorder %s6748_s30, %s8638_s6 }
  0x4f   :  { %p6754_p6 = pnand %p6752_p5, %p6749_p4 }
  0x51   :  { %6757 = shalt.err (!%p6754_p6)
}
  0x52   :  { %s6758_s19 = scalar_lea.vmem %s61_s29, 512  ;;  %p6763_p8 = scmp.lt.s32.totalorder %s61_s29, %s61_s29 }
  0x53   :  { %p6759_p7 = scmp.ne.s32.totalorder %s61_s29, %s6758_s19  ;;  %p6764_p9 = scmp.lt.s32.totalorder %s6758_s19, %s6758_s19 }
  0x55   :  { %p6765_p10 = por %p6764_p9, %p6763_p8 }
  0x57   :  { %p6766_p11 = pnand %p6765_p10, %p6759_p7 }
  0x59   :  { %6769 = shalt.err (!%p6766_p11)
}
  0x5a   :  { %s6875_s3 = smov 128   ;;  %s6876_s20 = smov 8  }
  0x5b   :  { %66 = dma.hbm_to_vmem [thread:$0]  %s8638_s6, 512, %s61_s29, [#allocation6], %s6875_s3, %s6875_s3, %s6876_s20  }
  0x5c   :  { %s6877_s25 = smov [#allocation10]   ;;  %s6878_s27 = smov [#allocation13]  }
  0x5d   :  { %s83_s26 = sshll.u32 %s6877_s25, 4  ;;  %s102_s9 = sshll.u32 %s6878_s27, 4  ;;  %s84_s26 = int_to_ptr.vmem [resolvable:$true] %s83_s26  ;;  %s103_s9 = int_to_ptr.vmem [resolvable:$true] %s102_s9 }
  0x5e   :  { %s6770_s7 = scalar_lea.hbm %s8640_s8, 16 }
  0x5f   :  { %p6771_p12 = scmp.ne.s32.totalorder %s8640_s8, %s6770_s7  ;;  %p6774_p13 = scmp.lt.u32.totalorder %s6770_s7, %s8640_s8 }
  0x61   :  { %p6776_p0 = pnand %p6774_p13, %p6771_p12 }
  0x63   :  { %6779 = shalt.err (!%p6776_p0)
}
  0x64   :  { %s6780_s6 = scalar_lea.vmem %s84_s26, 16  ;;  %s6784_s29 = scalar_lea.vmem %s84_s26, 32 }
  0x65   :  { %p6781_p1 = scmp.ne.s32.totalorder %s84_s26, %s6780_s6  ;;  %p6785_p2 = scmp.lt.s32.totalorder %s84_s26, %s84_s26 }
  0x66   :  { %p6786_p3 = scmp.lt.s32.totalorder %s6784_s29, %s6780_s6 }
  0x68   :  { %p6787_p4 = por %p6786_p3, %p6785_p2 }
  0x6a   :  { %p6788_p5 = pnand %p6787_p4, %p6781_p1 }
  0x6c   :  { %6791 = shalt.err (!%p6788_p5)
}
  0x6d   :  { %86 = dma.hbm_to_vmem [thread:$0]  %s8640_s8, 16, %s84_s26, [#allocation9]  }
  0x6e   :  { %s6792_s23 = scalar_lea.hbm %s8642_s10, 512 }
  0x6f   :  { %p6793_p6 = scmp.ne.s32.totalorder %s8642_s10, %s6792_s23  ;;  %p6796_p7 = scmp.lt.u32.totalorder %s6792_s23, %s8642_s10 }
  0x71   :  { %p6798_p8 = pnand %p6796_p7, %p6793_p6 }
  0x73   :  { %6801 = shalt.err (!%p6798_p8)
}
  0x74   :  { %s6802_s7 = scalar_lea.vmem %s103_s9, 512  ;;  %p6807_p10 = scmp.lt.s32.totalorder %s103_s9, %s103_s9 }
  0x75   :  { %p6803_p9 = scmp.ne.s32.totalorder %s103_s9, %s6802_s7  ;;  %p6808_p11 = scmp.lt.s32.totalorder %s6802_s7, %s6802_s7 }
  0x77   :  { %p6809_p12 = por %p6808_p11, %p6807_p10 }
  0x79   :  { %p6810_p13 = pnand %p6809_p12, %p6803_p9 }
  0x7b   :  { %6813 = shalt.err (!%p6810_p13)
}
  0x7c   :  { %108 = dma.hbm_to_vmem [thread:$0]  %s8642_s10, 512, %s103_s9, [#allocation12], %s6875_s3, %s6875_s3, %s6876_s20  }
  0x7d   :  { %s6879_s24 = smov [#allocation14]   ;;  %s6814_s6 = scalar_lea.hbm %s8643_s11, 16 }
  0x7e   :  { %s115_s30 = sshll.u32 %s6879_s24, 4  ;;  %p6815_p0 = scmp.ne.s32.totalorder %s8643_s11, %s6814_s6  ;;  %s116_s30 = int_to_ptr.vmem [resolvable:$true] %s115_s30 }
  0x7f   :  { %p6818_p1 = scmp.lt.u32.totalorder %s6814_s6, %s8643_s11 }
  0x81   :  { %p6820_p2 = pnand %p6818_p1, %p6815_p0 }
  0x83   :  { %6823 = shalt.err (!%p6820_p2)
}
  0x84   :  { %s6824_s21 = scalar_lea.vmem %s116_s30, 16  ;;  %s6828_s10 = scalar_lea.vmem %s116_s30, 32 }
  0x85   :  { %p6825_p3 = scmp.ne.s32.totalorder %s116_s30, %s6824_s21  ;;  %p6829_p4 = scmp.lt.s32.totalorder %s116_s30, %s116_s30 }
  0x86   :  { %p6830_p5 = scmp.lt.s32.totalorder %s6828_s10, %s6824_s21 }
  0x88   :  { %p6831_p6 = por %p6830_p5, %p6829_p4 }
  0x8a   :  { %p6832_p7 = pnand %p6831_p6, %p6825_p3 }
  0x8c   :  { %6835 = shalt.err (!%p6832_p7)
}
  0x8d   :  { %118 = dma.hbm_to_vmem [thread:$0]  %s8643_s11, 16, %s116_s30, [#allocation15]  }
  0x8e   :  { %6858 = dma.done.wait [#allocation3], 16  }
  0x8f   :  { %6859 = vsyncadd [#allocation3], 4294967280 }
  0x90   :  { %6860 = dma.done.wait [#allocation6], 528  }
  0x91   :  { %6861 = vsyncadd [#allocation6], 4294966768 }
  0x92   :  { %6862 = dma.done.wait [#allocation9], 32  }
  0x93   :  { %6863 = vsyncadd [#allocation9], 4294967264 }
  0x94   :  { %6864 = dma.done.wait [#allocation12], 528  }
  0x95   :  { %6865 = vsyncadd [#allocation12], 4294966768 }
  0x96   :  { %6866 = dma.done.wait [#allocation15], 16  }
  0x97   :  { %6867 = vsyncadd [#allocation15], 4294967280  ;;  %vm165_vm0 = vcmask 261120   ;;  %s8663_s18 = sld [smem:[#allocation33_spill]]  ;;  %vm6881_vm1 = vmmov 0   ;;  %s6883_s29 = smov 64  }
  0x98   :  { %vm546_vm2 = vcmask 130048   ;;  %vm1564_vm3 = vcmask 64512   ;;  %s6884_s5 = smov 80   ;;  %s6887_s21 = smov 16   ;;  %vm5346_vm4 = vcmask 523264  }
  0x9d   :  { %v151_v0 = vld [vmem:[%s8663_s18] sm:$0xff]  ;;  %v153_v1 = vld [vmem:[%s8663_s18 + $0x10] sm:$0xff]  ;;  %v152_v2 = vld [vmem:[%s8663_s18 + $0x8] sm:$0xff] }
  0x9e   :  { %v166_v3 = vsel %vm165_vm0, %v151_v0, 0.0  ;;  %v172_v4 = vsel %vm165_vm0, %v153_v1, 0.0  ;;  %v154_v5 = vld [vmem:[%s8663_s18 + $0x18] sm:$0xff]  ;;  %v169_v6 = vsel %vm165_vm0, %v152_v2, 0.0  ;;  %v155_v8 = vld [vmem:[%s8663_s18 + $0x20] sm:$0xff]  ;;  %v156_v9 = vld [vmem:[%s8663_s18 + $0x28] sm:$0xff] }
  0x9f   :  { %167 = vadd.xlane.f32.xlu0 %v166_v3  ;;  %173 = vadd.xlane.f32.xlu1 %v172_v4  ;;  %v175_v7 = vsel %vm165_vm0, %v154_v5, 0.0  ;;  %v178_v10 = vsel %vm165_vm0, %v155_v8, 0.0  ;;  %v181_v11 = vsel %vm165_vm0, %v156_v9, 0.0  ;;  %v157_v12 = vld [vmem:[%s8663_s18 + $0x30] sm:$0xff]  ;;  %v158_v13 = vld [vmem:[%s8663_s18 + $0x38] sm:$0xff]  ;;  %v159_v16 = vld [vmem:[%s8663_s18 + $0x40] sm:$0xff] }
  0xa0   :  { %v184_v14 = vsel %vm165_vm0, %v157_v12, 0.0  ;;  %v187_v15 = vsel %vm165_vm0, %v158_v13, 0.0  ;;  %v160_v17 = vld [vmem:[%s8663_s18 + $0x48] sm:$0xff]  ;;  %v190_v18 = vsel %vm165_vm0, %v159_v16, 0.0  ;;  %v7119_v20 = vld [vmem:[%s8663_s18 + $0x50] sm:$0xff]  ;;  %v7124_v21 = vld [vmem:[%s8663_s18 + $0x58] sm:$0xff] }
  0xa1   :  { %v193_v19 = vsel %vm165_vm0, %v160_v17, 0.0  ;;  %v196_v22 = vsel %vm165_vm0, %v7119_v20, 0.0  ;;  %v199_v23 = vsel %vm165_vm0, %v7124_v21, 0.0 }
  0xa3   :  { %170 = vadd.xlane.f32.xlu0 %v169_v6  ;;  %176 = vadd.xlane.f32.xlu1 %v175_v7 }
  0xa7   :  { %179 = vadd.xlane.f32.xlu0 %v178_v10  ;;  %182 = vadd.xlane.f32.xlu1 %v181_v11 }
  0xab   :  { %185 = vadd.xlane.f32.xlu0 %v184_v14  ;;  %188 = vadd.xlane.f32.xlu1 %v187_v15 }
  0xaf   :  { %191 = vadd.xlane.f32.xlu0 %v190_v18  ;;  %194 = vadd.xlane.f32.xlu1 %v193_v19 }
  0xb3   :  { %197 = vadd.xlane.f32.xlu0 %v196_v22  ;;  %200 = vadd.xlane.f32.xlu1 %v199_v23  ;;  %v373_v23 = vld [vmem:[%s8636_s4 + $0x10] sm:$0xff] }
 0x12c   :  { %v168_v24 = vpop.xlane.xlu0 %167  ;;  %v174_v25 = vpop.xlane.xlu1 %173 }
 0x12d   :  { %v203_v26 = vmul.f32 0.03125, %v168_v24  ;;  %v205_v27 = vmul.f32 0.03125, %v174_v25  ;;  %v374_v24 = vld [vmem:[%s8636_s4 + $0x18] sm:$0xff] }
 0x12e   :  { %v6409_v25 = vpack.c.bf16 %v374_v24, %v373_v23 }
 0x12f   :  { %v7130_v28 = vsub.f32 %v151_v0, %v203_v26  ;;  %v7132_v29 = vsub.f32 %v153_v1, %v205_v27 }
 0x130   :  { %v171_v30 = vpop.xlane.xlu0 %170  ;;  %v177_v31 = vpop.xlane.xlu1 %176 }
 0x131   :  { %v204_v32 = vmul.f32 0.03125, %v171_v30  ;;  %v206_v33 = vmul.f32 0.03125, %v177_v31  ;;  %v227_v34 = vmul.f32 %v7130_v28, %v7130_v28  ;;  %v229_v35 = vmul.f32 %v7132_v29, %v7132_v29 }
 0x133   :  { %v7138_v36 = vsub.f32 %v152_v2, %v204_v32  ;;  %v7140_v37 = vsub.f32 %v154_v5, %v206_v33  ;;  %v239_v38 = vsel %vm165_vm0, %v227_v34, 0.0  ;;  %v245_v41 = vsel %vm165_vm0, %v229_v35, 0.0 }
 0x134   :  { %240 = vadd.xlane.f32.xlu0 %v239_v38  ;;  %v180_v39 = vpop.xlane.xlu0 %179  ;;  %v183_v40 = vpop.xlane.xlu1 %182 }
 0x135   :  { %v207_v42 = vmul.f32 0.03125, %v180_v39  ;;  %v208_v43 = vmul.f32 0.03125, %v183_v40  ;;  %v228_v44 = vmul.f32 %v7138_v36, %v7138_v36  ;;  %v230_v45 = vmul.f32 %v7140_v37, %v7140_v37 }
 0x137   :  { %v7148_v46 = vsub.f32 %v155_v8, %v207_v42  ;;  %v7150_v47 = vsub.f32 %v156_v9, %v208_v43  ;;  %v242_v48 = vsel %vm165_vm0, %v228_v44, 0.0  ;;  %v248_v51 = vsel %vm165_vm0, %v230_v45, 0.0 }
 0x138   :  { %246 = vadd.xlane.f32.xlu0 %v245_v41  ;;  %243 = vadd.xlane.f32.xlu1 %v242_v48  ;;  %v186_v49 = vpop.xlane.xlu0 %185  ;;  %v189_v50 = vpop.xlane.xlu1 %188 }
 0x139   :  { %v209_v52 = vmul.f32 0.03125, %v186_v49  ;;  %v210_v53 = vmul.f32 0.03125, %v189_v50  ;;  %v231_v54 = vmul.f32 %v7148_v46, %v7148_v46  ;;  %v232_v55 = vmul.f32 %v7150_v47, %v7150_v47 }
 0x13b   :  { %v7158_v56 = vsub.f32 %v157_v12, %v209_v52  ;;  %v7160_v57 = vsub.f32 %v158_v13, %v210_v53  ;;  %v251_v58 = vsel %vm165_vm0, %v231_v54, 0.0  ;;  %v254_v61 = vsel %vm165_vm0, %v232_v55, 0.0  ;;  %v7207_v54 = vld [vmem:[%s8634_s2] ss:$0 sm:$0xff]  ;;  %s6882_s2 = smov 96  }
 0x13c   :  { %249 = vadd.xlane.f32.xlu1 %v248_v51  ;;  %252 = vadd.xlane.f32.xlu0 %v251_v58  ;;  %v192_v59 = vpop.xlane.xlu0 %191  ;;  %v195_v60 = vpop.xlane.xlu1 %194 }
 0x13d   :  { %v211_v62 = vmul.f32 0.03125, %v192_v59  ;;  %v212_v63 = vmul.f32 0.03125, %v195_v60  ;;  %v233_v0 = vmul.f32 %v7158_v56, %v7158_v56  ;;  %v234_v1 = vmul.f32 %v7160_v57, %v7160_v57 }
 0x13f   :  { %v7168_v2 = vsub.f32 %v159_v16, %v211_v62  ;;  %v7170_v3 = vsub.f32 %v160_v17, %v212_v63  ;;  %v257_v4 = vsel %vm165_vm0, %v233_v0, 0.0  ;;  %v260_v7 = vsel %vm165_vm0, %v234_v1, 0.0  ;;  %v7210_v62 = vld [vmem:[#allocation2] ss:$0 sm:$0xff] }
 0x140   :  { %255 = vadd.xlane.f32.xlu1 %v254_v61  ;;  %258 = vadd.xlane.f32.xlu0 %v257_v4  ;;  %v198_v5 = vpop.xlane.xlu0 %197  ;;  %v201_v6 = vpop.xlane.xlu1 %200 }
 0x141   :  { %v213_v8 = vmul.f32 0.03125, %v198_v5  ;;  %v214_v9 = vmul.f32 0.03125, %v201_v6  ;;  %v235_v10 = vmul.f32 %v7168_v2, %v7168_v2  ;;  %v236_v11 = vmul.f32 %v7170_v3, %v7170_v3 }
 0x143   :  { %v7179_v12 = vsub.f32 %v7119_v20, %v213_v8  ;;  %v7182_v13 = vsub.f32 %v7124_v21, %v214_v9  ;;  %v263_v14 = vsel %vm165_vm0, %v235_v10, 0.0  ;;  %v266_v15 = vsel %vm165_vm0, %v236_v11, 0.0  ;;  %v371_v20 = vld [vmem:[%s8636_s4] sm:$0xff]  ;;  %v372_v21 = vld [vmem:[%s8636_s4 + $0x8] sm:$0xff]  ;;  %s6885_s4 = smov 112  }
 0x144   :  { %261 = vadd.xlane.f32.xlu1 %v260_v7  ;;  %264 = vadd.xlane.f32.xlu0 %v263_v14  ;;  %v6405_v22 = vpack.c.bf16 %v372_v21, %v371_v20 }
 0x145   :  { %v237_v16 = vmul.f32 %v7179_v12, %v7179_v12  ;;  %v238_v17 = vmul.f32 %v7182_v13, %v7182_v13 }
 0x146   :  { %6406 = vmatprep.subr.bf16.mxu0 %v6405_v22 }
 0x147   :  { %v269_v18 = vsel %vm165_vm0, %v237_v16, 0.0  ;;  %v272_v19 = vsel %vm165_vm0, %v238_v17, 0.0  ;;  %6408 = vmatpush3.bf16.msra.mxu0 %v6405_v22 }
 0x148   :  { %267 = vadd.xlane.f32.xlu1 %v266_v15  ;;  %270 = vadd.xlane.f32.xlu0 %v269_v18 }
 0x149   :  { %6410 = vmatprep.subr.bf16.mxu0 %v6409_v25 }
 0x14b   :  { %6412 = vmatpush3.bf16.msra.mxu0 %v6409_v25 }
 0x14c   :  { %273 = vadd.xlane.f32.xlu1 %v272_v19 }
 0x1c1   :  { %v241_v26 = vpop.xlane.xlu0 %240 }
 0x1c2   :  { %v275_v27 = vmul.f32 0.03125, %v241_v26 }
 0x1c4   :  { %v287_v30 = vadd.f32 1e-05, %v275_v27 }
 0x1c5   :  { %v244_v31 = vpop.xlane.xlu1 %243  ;;  %v247_v32 = vpop.xlane.xlu0 %246 }
 0x1c6   :  { %6468 = vrsqrt.f32 %v287_v30  ;;  %v276_v33 = vmul.f32 0.03125, %v244_v31  ;;  %v277_v34 = vmul.f32 0.03125, %v247_v32 }
 0x1c8   :  { %v288_v35 = vadd.f32 1e-05, %v276_v33  ;;  %v289_v38 = vadd.f32 1e-05, %v277_v34 }
 0x1c9   :  { %v250_v39 = vpop.xlane.xlu1 %249  ;;  %v253_v40 = vpop.xlane.xlu0 %252 }
 0x1ca   :  { %6470 = vrsqrt.f32 %v288_v35  ;;  %v278_v41 = vmul.f32 0.03125, %v250_v39  ;;  %v279_v42 = vmul.f32 0.03125, %v253_v40 }
 0x1cb   :  { %6472 = vrsqrt.f32 %v289_v38 }
 0x1cc   :  { %v290_v43 = vadd.f32 1e-05, %v278_v41  ;;  %v291_v44 = vadd.f32 1e-05, %v279_v42 }
 0x1cd   :  { %v256_v45 = vpop.xlane.xlu1 %255  ;;  %v259_v48 = vpop.xlane.xlu0 %258 }
 0x1ce   :  { %6474 = vrsqrt.f32 %v290_v43  ;;  %v280_v49 = vmul.f32 0.03125, %v256_v45  ;;  %v281_v50 = vmul.f32 0.03125, %v259_v48 }
 0x1cf   :  { %6476 = vrsqrt.f32 %v291_v44 }
 0x1d0   :  { %v6469_v51 = vpop.eup %6468  ;;  %v292_v52 = vadd.f32 1e-05, %v280_v49  ;;  %v293_v53 = vadd.f32 1e-05, %v281_v50 }
 0x1d1   :  { %v262_v55 = vpop.xlane.xlu1 %261  ;;  %v265_v58 = vpop.xlane.xlu0 %264  ;;  %v311_v59 = vmul.f32 %v6469_v51, %v7130_v28 }
 0x1d2   :  { %6478 = vrsqrt.f32 %v292_v52  ;;  %v282_v60 = vmul.f32 0.03125, %v262_v55  ;;  %v283_v61 = vmul.f32 0.03125, %v265_v58  ;;  %v8650_v58 = vmov 0.0  }
 0x1d3   :  { %6480 = vrsqrt.f32 %v293_v53  ;;  %v329_v63 = vmul.f32 %v7207_v54, %v311_v59  ;;  %6079 = vmatprep.subr.mxu1 %v8650_v58  ;;  %6114 = vmatprep.subr.mxu0 %v8650_v58 }
 0x1d4   :  { %v6471_v0 = vpop.eup %6470  ;;  %v294_v1 = vadd.f32 1e-05, %v282_v60  ;;  %v295_v4 = vadd.f32 1e-05, %v283_v61  ;;  %6081 = vmatprep.mubr.msk.f32.mxu1 %vm6881_vm1, %v8650_v58 }
 0x1d5   :  { %v6473_v5 = vpop.eup %6472  ;;  %v268_v6 = vpop.xlane.xlu1 %267  ;;  %v7214_v8 = vadd.f32 %v7210_v62, %v329_v63  ;;  %v312_v9 = vmul.f32 %v6471_v0, %v7138_v36 }
 0x1d6   :  { %v271_v7 = vpop.xlane.xlu0 %270  ;;  %6482 = vrsqrt.f32 %v294_v1  ;;  %v284_v28 = vmul.f32 0.03125, %v268_v6  ;;  %v313_v11 = vmul.f32 %v6473_v5, %v7132_v29 }
 0x1d7   :  { %v285_v10 = vmul.f32 0.03125, %v271_v7  ;;  %6484 = vrsqrt.f32 %v295_v4  ;;  %6061 = vmatprep.mubr.msk.f32.mxu0 %vm165_vm0, %v7214_v8  ;;  %v330_v14 = vmul.f32 %v7207_v54, %v312_v9 }
 0x1d8   :  { %v6475_v15 = vpop.eup %6474  ;;  %v296_v16 = vadd.f32 1e-05, %v284_v28  ;;  %v331_v18 = vmul.f32 %v7207_v54, %v313_v11 }
 0x1d9   :  { %v297_v17 = vadd.f32 1e-05, %v285_v10  ;;  %v6477_v19 = vpop.eup %6476  ;;  %v274_v20 = vpop.xlane.xlu1 %273  ;;  %v7223_v36 = vadd.f32 %v7210_v62, %v330_v14  ;;  %v314_v21 = vmul.f32 %v6475_v15, %v7140_v37 }
 0x1da   :  { %6486 = vrsqrt.f32 %v296_v16  ;;  %v286_v29 = vmul.f32 0.03125, %v274_v20  ;;  %v7227_v22 = vadd.f32 %v7210_v62, %v331_v18  ;;  %v315_v23 = vmul.f32 %v6477_v19, %v7148_v46 }
 0x1db   :  { %6488 = vrsqrt.f32 %v297_v17  ;;  %6062 = vmatmul.mubr.msk.f32.vlgmr.msra.gmra.mrb[0].mxu0 %vm165_vm0, %v7223_v36  ;;  %v332_v24 = vmul.f32 %v7207_v54, %v314_v21 }
 0x1dc   :  { %8664 = vst [vmem:[#allocation23_spill] sm:$0xff] %v7227_v22  ;;  %v6479_v25 = vpop.eup %6478  ;;  %v298_v26 = vadd.f32 1e-05, %v286_v29  ;;  %6064 = vmatprep.mubr.msk.f32.mxu0 %vm165_vm0, %v7227_v22  ;;  %v333_v37 = vmul.f32 %v7207_v54, %v315_v23  ;;  %v8674_v22 = vmov 0.0  }
 0x1dd   :  { %v6481_v27 = vpop.eup %6480  ;;  %v7237_v30 = vadd.f32 %v7210_v62, %v332_v24  ;;  %v316_v31 = vmul.f32 %v6479_v25, %v7150_v47 }
 0x1de   :  { %6490 = vrsqrt.f32 %v298_v26  ;;  %v7241_v46 = vadd.f32 %v7210_v62, %v333_v37  ;;  %v317_v32 = vmul.f32 %v6481_v27, %v7158_v56 }
 0x1df   :  { %8665 = vst [vmem:[#allocation24_spill] sm:$0xff] %v7237_v30  ;;  %6065 = vmatmul.mubr.msk.f32.gmra.mrb[2].mxu0 %vm165_vm0, %v7237_v30  ;;  %v334_v33 = vmul.f32 %v7207_v54, %v316_v31 }
 0x1e0   :  { %8666 = vst [vmem:[#allocation25_spill] sm:$0xff] %v7241_v46  ;;  %v6483_v34 = vpop.eup %6482  ;;  %6067 = vmatprep.mubr.msk.f32.mxu0 %vm165_vm0, %v7241_v46  ;;  %v335_v35 = vmul.f32 %v7207_v54, %v317_v32 }
 0x1e1   :  { %v6485_v38 = vpop.eup %6484  ;;  %v7251_v47 = vadd.f32 %v7210_v62, %v334_v33  ;;  %v318_v39 = vmul.f32 %v6483_v34, %v7160_v57 }
 0x1e2   :  { %v7255_v40 = vadd.f32 %v7210_v62, %v335_v35  ;;  %v319_v56 = vmul.f32 %v6485_v38, %v7168_v2 }
 0x1e3   :  { %8667 = vst [vmem:[#allocation26_spill] sm:$0xff] %v7251_v47  ;;  %6068 = vmatmul.mubr.msk.f32.gmra.mrb[4].mxu0 %vm165_vm0, %v7251_v47  ;;  %v336_v41 = vmul.f32 %v7207_v54, %v318_v39 }
 0x1e4   :  { %8668 = vst [vmem:[#allocation27_spill] sm:$0xff] %v7255_v40  ;;  %v6487_v42 = vpop.eup %6486  ;;  %6070 = vmatprep.mubr.msk.f32.mxu0 %vm165_vm0, %v7255_v40  ;;  %v337_v43 = vmul.f32 %v7207_v54, %v319_v56 }
 0x1e5   :  { %v6489_v44 = vpop.eup %6488  ;;  %v7265_v45 = vadd.f32 %v7210_v62, %v336_v41  ;;  %v320_v57 = vmul.f32 %v6487_v42, %v7170_v3  ;;  %v7448_v41 = vld [vmem:[%s8633_s1] ss:$0 sm:$0xff] }
 0x1e6   :  { %v7269_v48 = vadd.f32 %v7210_v62, %v337_v43  ;;  %v321_v2 = vmul.f32 %v6489_v44, %v7179_v12 }
 0x1e7   :  { %8669 = vst [vmem:[#allocation28_spill] sm:$0xff] %v7265_v45  ;;  %6071 = vmatmul.mubr.msk.f32.gmra.mrb[6].mxu0 %vm165_vm0, %v7265_v45  ;;  %v338_v49 = vmul.f32 %v7207_v54, %v320_v57 }
 0x1e8   :  { %8670 = vst [vmem:[#allocation29_spill] sm:$0xff] %v7269_v48  ;;  %v6491_v50 = vpop.eup %6490  ;;  %6073 = vmatprep.mubr.msk.f32.mxu0 %vm165_vm0, %v7269_v48  ;;  %v339_v51 = vmul.f32 %v7207_v54, %v321_v2  ;;  %v7456_v2 = vld [vmem:[%s8633_s1 + $0x1] ss:$0 sm:$0xff] }
 0x1e9   :  { %v7279_v52 = vadd.f32 %v7210_v62, %v338_v49  ;;  %v322_v3 = vmul.f32 %v6491_v50, %v7182_v13  ;;  %v5749_v13 = vld [vmem:[#allocation5] ss:$0 sm:$0xff] }
 0x1ea   :  { %v7283_v53 = vadd.f32 %v7210_v62, %v339_v51 }
 0x1eb   :  { %8671 = vst [vmem:[#allocation30_spill] sm:$0xff] %v7279_v52  ;;  %6074 = vmatmul.mubr.msk.f32.gmra.mrb[8].mxu0 %vm165_vm0, %v7279_v52  ;;  %v340_v12 = vmul.f32 %v7207_v54, %v322_v3 }
 0x1ec   :  { %8672 = vst [vmem:[#allocation31_spill] sm:$0xff] %v7283_v53  ;;  %6076 = vmatprep.mubr.msk.f32.mxu0 %vm165_vm0, %v7283_v53 }
 0x1ed   :  { %v7291_v55 = vadd.f32 %v7210_v62, %v340_v12 }
 0x1ef   :  { %8673 = vst [vmem:[#allocation32_spill] sm:$0xff] %v7291_v55  ;;  %6077 = vmatmul.mubr.msk.f32.gmra.mrb[10].mxu0 %vm165_vm0, %v7291_v55 }
 0x1f0   :  { %6116 = vmatprep.mubr.msk.f32.mxu0 %vm6881_vm1, %v8650_v58 }
 0x2ae   :  { %v6063_v54 = vpop.f32.mrb[0].mxu0 }
 0x2af   :  { %v7301_v59 = vadd.f32 %v6063_v54, %v5749_v13  ;;  %v484_v60 = vpop.f32.mrb[1].mxu0 }
 0x2b0   :  { %v7303_v61 = vadd.f32 %v5749_v13, %v484_v60 }
 0x2b1   :  { %622 = vrot.lane.b32.xlu1 %v7301_v59, %s6882_s2 }
 0x2b2   :  { %544 = vrot.lane.b32.xlu0 %v7303_v61, %s6882_s2  ;;  %v6066_v62 = vpop.f32.mrb[2].mxu0 }
 0x2b3   :  { %v494_v63 = vpop.f32.mrb[3].mxu0  ;;  %v7313_v5 = vadd.f32 %v6066_v62, %v5749_v13 }
 0x2b4   :  { %v7309_v0 = vadd.f32 %v5749_v13, %v494_v63 }
 0x2b6   :  { %699 = vrot.lane.b32.xlu1 %v7309_v0, %s6882_s2  ;;  %v6069_v1 = vpop.f32.mrb[4].mxu0 }
 0x2b7   :  { %v504_v4 = vpop.f32.mrb[5].mxu0  ;;  %v7321_v28 = vadd.f32 %v6069_v1, %v5749_v13 }
 0x2b8   :  { %v7315_v6 = vadd.f32 %v5749_v13, %v504_v4  ;;  %v7476_v4 = vld [vmem:[%s8633_s1 + $0x3] ss:$0 sm:$0xff] }
 0x2ba   :  { %776 = vrot.lane.b32.xlu1 %v7313_v5, %s6882_s2  ;;  %853 = vrot.lane.b32.xlu0 %v7315_v6, %s6882_s2  ;;  %v6072_v7 = vpop.f32.mrb[6].mxu0 }
 0x2bb   :  { %v514_v9 = vpop.f32.mrb[7].mxu0  ;;  %v7329_v15 = vadd.f32 %v6072_v7, %v5749_v13 }
 0x2bc   :  { %v7323_v10 = vadd.f32 %v5749_v13, %v514_v9 }
 0x2be   :  { %930 = vrot.lane.b32.xlu1 %v7321_v28, %s6882_s2  ;;  %1007 = vrot.lane.b32.xlu0 %v7323_v10, %s6882_s2  ;;  %v6075_v11 = vpop.f32.mrb[8].mxu0 }
 0x2bf   :  { %v524_v14 = vpop.f32.mrb[9].mxu0  ;;  %v7337_v19 = vadd.f32 %v6075_v11, %v5749_v13 }
 0x2c0   :  { %v7331_v16 = vadd.f32 %v5749_v13, %v524_v14 }
 0x2c2   :  { %1084 = vrot.lane.b32.xlu1 %v7329_v15, %s6882_s2  ;;  %1161 = vrot.lane.b32.xlu0 %v7331_v16, %s6882_s2  ;;  %v6078_v17 = vpop.f32.mrb[10].mxu0 }
 0x2c3   :  { %v534_v18 = vpop.f32.mrb[11].mxu0  ;;  %v7345_v21 = vadd.f32 %v6078_v17, %v5749_v13 }
 0x2c4   :  { %v7339_v20 = vadd.f32 %v5749_v13, %v534_v18  ;;  %v7466_v13 = vld [vmem:[%s8633_s1 + $0x2] ss:$0 sm:$0xff] }
 0x2c6   :  { %1238 = vrot.lane.b32.xlu1 %v7337_v19, %s6882_s2  ;;  %1315 = vrot.lane.b32.xlu0 %v7339_v20, %s6882_s2 }
 0x2ca   :  { %1392 = vrot.lane.b32.xlu1 %v7345_v21, %s6882_s2  ;;  %1697 = vrot.lane.b32.xlu0 %v7303_v61, %s6883_s29 }
 0x2ce   :  { %1773 = vrot.lane.b32.xlu1 %v7301_v59, %s6883_s29  ;;  %2001 = vrot.lane.b32.xlu0 %v7315_v6, %s6883_s29 }
 0x2d2   :  { %1849 = vrot.lane.b32.xlu1 %v7309_v0, %s6883_s29  ;;  %2153 = vrot.lane.b32.xlu0 %v7323_v10, %s6883_s29 }
 0x2d6   :  { %1925 = vrot.lane.b32.xlu1 %v7313_v5, %s6883_s29  ;;  %2305 = vrot.lane.b32.xlu0 %v7331_v16, %s6883_s29 }
 0x2da   :  { %2077 = vrot.lane.b32.xlu1 %v7321_v28, %s6883_s29  ;;  %2457 = vrot.lane.b32.xlu0 %v7339_v20, %s6883_s29 }
 0x2de   :  { %2229 = vrot.lane.b32.xlu1 %v7329_v15, %s6883_s29 }
 0x2e2   :  { %2381 = vrot.lane.b32.xlu1 %v7337_v19, %s6883_s29 }
 0x323   :  { %v623_v29 = vpop.permute.xlu1 %622 }
 0x324   :  { %v545_v23 = vpop.permute.xlu0 %544 }
 0x325   :  { %6080 = vmatpush3.xpose.msk.msra.mxu1 %vm546_vm2, %v545_v23  ;;  %v7491_v23 = vld [vmem:[%s8633_s1 + $0x4] ss:$0 sm:$0xff] }
 0x326   :  { %6084 = vmatprep.subr.mxu1 %v8650_v58 }
 0x328   :  { %v700_v24 = vpop.permute.xlu1 %699  ;;  %6082 = vmatmul.mubr.msk.f32.vlgmr.msra.gmra.mrb[0].mxu1 %vm546_vm2, %v7303_v61 }
 0x329   :  { %6085 = vmatpush3.xpose.msk.msra.mxu1 %vm546_vm2, %v623_v29  ;;  %6086 = vmatprep.mubr.msk.f32.mxu1 %vm6881_vm1, %v8650_v58  ;;  %v7486_v29 = vld [vmem:[%s8633_s1 + $0x7] ss:$0 sm:$0xff] }
 0x32a   :  { %6089 = vmatprep.subr.mxu1 %v8650_v58 }
 0x32c   :  { %v777_v25 = vpop.permute.xlu1 %776  ;;  %6087 = vmatmul.mubr.msk.f32.vlgmr.msra.gmra.mrb[2].mxu1 %vm546_vm2, %v7301_v59  ;;  %v854_v26 = vpop.permute.xlu0 %853 }
 0x32d   :  { %6090 = vmatpush3.xpose.msk.msra.mxu1 %vm546_vm2, %v700_v24  ;;  %6091 = vmatprep.mubr.msk.f32.mxu1 %vm6881_vm1, %v8650_v58 }
 0x32e   :  { %6094 = vmatprep.subr.mxu1 %v8650_v58 }
 0x330   :  { %v931_v37 = vpop.permute.xlu1 %930  ;;  %6092 = vmatmul.mubr.msk.f32.vlgmr.msra.gmra.mrb[4].mxu1 %vm546_vm2, %v7309_v0  ;;  %v1008_v31 = vpop.permute.xlu0 %1007 }
 0x331   :  { %6095 = vmatpush3.xpose.msk.msra.mxu1 %vm546_vm2, %v777_v25  ;;  %6096 = vmatprep.mubr.msk.f32.mxu1 %vm6881_vm1, %v8650_v58 }
 0x332   :  { %6099 = vmatprep.subr.mxu1 %v8650_v58 }
 0x334   :  { %v1085_v27 = vpop.permute.xlu1 %1084  ;;  %6097 = vmatmul.mubr.msk.f32.vlgmr.msra.gmra.mrb[6].mxu1 %vm546_vm2, %v7313_v5  ;;  %v1162_v33 = vpop.permute.xlu0 %1161 }
 0x335   :  { %6100 = vmatpush3.xpose.msk.msra.mxu1 %vm546_vm2, %v854_v26  ;;  %6115 = vmatpush3.xpose.msk.msra.mxu0 %vm546_vm2, %v1085_v27 }
 0x336   :  { %6101 = vmatprep.mubr.msk.f32.mxu1 %vm6881_vm1, %v8650_v58  ;;  %6124 = vmatprep.subr.mxu0 %v8650_v58 }
 0x337   :  { %6104 = vmatprep.subr.mxu1 %v8650_v58 }
 0x338   :  { %v1239_v32 = vpop.permute.xlu1 %1238  ;;  %6102 = vmatmul.mubr.msk.f32.vlgmr.msra.gmra.mrb[8].mxu1 %vm546_vm2, %v7315_v6  ;;  %6117 = vmatmul.mubr.msk.f32.vlgmr.msra.gmra.mrb[12].mxu0 %vm546_vm2, %v7329_v15  ;;  %v1316_v38 = vpop.permute.xlu0 %1315 }
 0x339   :  { %6105 = vmatpush3.xpose.msk.msra.mxu1 %vm546_vm2, %v931_v37  ;;  %6125 = vmatpush3.xpose.msk.msra.mxu0 %vm546_vm2, %v1239_v32 }
 0x33a   :  { %6106 = vmatprep.mubr.msk.f32.mxu1 %vm6881_vm1, %v8650_v58  ;;  %6126 = vmatprep.mubr.msk.f32.mxu0 %vm6881_vm1, %v8650_v58 }
 0x33b   :  { %6134 = vmatprep.subr.mxu0 %v8650_v58  ;;  %6109 = vmatprep.subr.mxu1 %v8650_v58 }
 0x33c   :  { %6127 = vmatmul.mubr.msk.f32.vlgmr.msra.gmra.mrb[14].mxu0 %vm546_vm2, %v7337_v19  ;;  %v1393_v34 = vpop.permute.xlu1 %1392  ;;  %6107 = vmatmul.mubr.msk.f32.vlgmr.msra.gmra.mrb[10].mxu1 %vm546_vm2, %v7321_v28  ;;  %v1698_v39 = vpop.permute.xlu0 %1697 }
 0x33d   :  { %6110 = vmatpush3.xpose.msk.msra.mxu1 %vm546_vm2, %v1008_v31  ;;  %6135 = vmatpush3.xpose.msk.msra.mxu0 %vm546_vm2, %v1393_v34 }
 0x33e   :  { %6111 = vmatprep.mubr.msk.f32.mxu1 %vm6881_vm1, %v8650_v58  ;;  %6136 = vmatprep.mubr.msk.f32.mxu0 %vm6881_vm1, %v8650_v58 }
 0x33f   :  { %6144 = vmatprep.subr.mxu0 %v8650_v58  ;;  %6119 = vmatprep.subr.mxu1 %v8650_v58 }
 0x340   :  { %6137 = vmatmul.mubr.msk.f32.vlgmr.msra.gmra.mrb[16].mxu0 %vm546_vm2, %v7345_v21  ;;  %v1774_v35 = vpop.permute.xlu1 %1773  ;;  %6112 = vmatmul.mubr.msk.f32.vlgmr.msra.gmra.mrb[12].mxu1 %vm546_vm2, %v7323_v10 }
 0x341   :  { %6120 = vmatpush3.xpose.msk.msra.mxu1 %vm546_vm2, %v1162_v33  ;;  %6145 = vmatpush3.msra.mxu0 %v1774_v35  ;;  %v7504_v35 = vld [vmem:[%s8633_s1 + $0x9] ss:$0 sm:$0xff] }
 0x342   :  { %6121 = vmatprep.mubr.msk.f32.mxu1 %vm6881_vm1, %v8650_v58  ;;  %6129 = vmatprep.subr.mxu1 %v8650_v58 }
 0x343   :  { %6146 = vmatprep.mubr.msk.f32.mxu0 %vm6881_vm1, %v8650_v58  ;;  %6154 = vmatprep.subr.mxu0 %v8650_v58 }
 0x344   :  { %6122 = vmatmul.mubr.msk.f32.vlgmr.msra.gmra.mrb[14].mxu1 %vm546_vm2, %v7331_v16 }
 0x345   :  { %6130 = vmatpush3.xpose.msk.msra.mxu1 %vm546_vm2, %v1316_v38  ;;  %6131 = vmatprep.mubr.msk.f32.mxu1 %vm6881_vm1, %v8650_v58 }
 0x346   :  { %6139 = vmatprep.subr.mxu1 %v8650_v58 }
 0x348   :  { %6132 = vmatmul.mubr.msk.f32.vlgmr.msra.gmra.mrb[16].mxu1 %vm546_vm2, %v7339_v20 }
 0x349   :  { %6140 = vmatpush3.msra.mxu1 %v1698_v39  ;;  %6141 = vmatprep.mubr.msk.f32.mxu1 %vm6881_vm1, %v8650_v58 }
 0x34a   :  { %6149 = vmatprep.subr.mxu1 %v8650_v58 }
 0x3fb   :  { %v617_v56 = vpop.f32.mrb[0].mxu1 }
 0x3fc   :  { %v1468_v42 = vmul.f32 0.25, %v617_v56  ;;  %v6083_v43 = vpop.f32.mrb[1].mxu1 }
 0x3fe   :  { %v7451_v44 = vadd.f32 %v7448_v41, %v1468_v42 }
 0x3ff   :  { %v694_v57 = vpop.f32.mrb[2].mxu1 }
 0x400   :  { %v1469_v49 = vmul.f32 0.25, %v694_v57  ;;  %v6088_v50 = vpop.f32.mrb[3].mxu1  ;;  %v1565_v51 = vsel %vm1564_vm3, %v7451_v44, -inf }
 0x401   :  { %1566 = vmax.xlane.f32.xlu0 %v1565_v51  ;;  %v7516_v51 = vld [vmem:[%s8633_s1 + $0xb] ss:$0 sm:$0xff] }
 0x402   :  { %v7461_v3 = vadd.f32 %v7456_v2, %v1469_v49 }
 0x403   :  { %v771_v12 = vpop.f32.mrb[4].mxu1 }
 0x404   :  { %v1470_v54 = vmul.f32 0.25, %v771_v12  ;;  %v6093_v60 = vpop.f32.mrb[5].mxu1  ;;  %v1568_v62 = vsel %vm1564_vm3, %v7461_v3, -inf }
 0x405   :  { %1569 = vmax.xlane.f32.xlu1 %v1568_v62 }
 0x406   :  { %v7471_v63 = vadd.f32 %v7466_v13, %v1470_v54 }
 0x407   :  { %v848_v1 = vpop.f32.mrb[6].mxu1 }
 0x408   :  { %v1471_v7 = vmul.f32 0.25, %v848_v1  ;;  %v6098_v9 = vpop.f32.mrb[7].mxu1  ;;  %v1571_v11 = vsel %vm1564_vm3, %v7471_v63, -inf }
 0x409   :  { %1572 = vmax.xlane.f32.xlu0 %v1571_v11 }
 0x40a   :  { %v7481_v14 = vadd.f32 %v7476_v4, %v1471_v7  ;;  %v7523_v7 = vld [vmem:[%s8633_s1 + $0x5] ss:$0 sm:$0xff] }
 0x40b   :  { %v925_v17 = vpop.f32.mrb[8].mxu1  ;;  %v1156_v18 = vpop.f32.mrb[12].mxu0 }
 0x40c   :  { %v1472_v24 = vmul.f32 0.25, %v925_v17  ;;  %v1475_v25 = vmul.f32 0.25, %v1156_v18  ;;  %v6103_v26 = vpop.f32.mrb[9].mxu1  ;;  %v6118_v37 = vpop.f32.mrb[13].mxu0  ;;  %v1574_v27 = vsel %vm1564_vm3, %v7481_v14, -inf }
 0x40d   :  { %1575 = vmax.xlane.f32.xlu0 %v1574_v27 }
 0x40e   :  { %v7496_v31 = vadd.f32 %v7486_v29, %v1475_v25  ;;  %v7499_v32 = vadd.f32 %v7491_v23, %v1472_v24 }
 0x40f   :  { %v1002_v33 = vpop.f32.mrb[10].mxu1  ;;  %v1310_v34 = vpop.f32.mrb[14].mxu0 }
 0x410   :  { %v1477_v38 = vmul.f32 0.25, %v1310_v34  ;;  %v6108_v39 = vpop.f32.mrb[11].mxu1  ;;  %v6128_v56 = vpop.f32.mrb[15].mxu0  ;;  %v1586_v42 = vsel %vm1564_vm3, %v7496_v31, -inf  ;;  %v1577_v43 = vsel %vm1564_vm3, %v7499_v32, -inf  ;;  %v1473_v12 = vmul.f32 0.25, %v1002_v33 }
 0x411   :  { %1587 = vmax.xlane.f32.xlu1 %v1586_v42  ;;  %1578 = vmax.xlane.f32.xlu0 %v1577_v43  ;;  %v7554_v33 = vld [vmem:[%s8633_s1 + $0x6] ss:$0 sm:$0xff]  ;;  %v7562_v39 = vld [vmem:[%s8633_s1 + $0x8] ss:$0 sm:$0xff] }
 0x412   :  { %v7511_v57 = vadd.f32 %v7504_v35, %v1477_v38  ;;  %v7531_v24 = vadd.f32 %v7523_v7, %v1473_v12 }
 0x413   :  { %v1079_v49 = vpop.f32.mrb[12].mxu1  ;;  %v1464_v50 = vpop.f32.mrb[16].mxu0 }
 0x414   :  { %v1479_v54 = vmul.f32 0.25, %v1464_v50  ;;  %v6113_v60 = vpop.f32.mrb[13].mxu1  ;;  %v6138_v62 = vpop.f32.mrb[17].mxu0  ;;  %v1592_v1 = vsel %vm1564_vm3, %v7511_v57, -inf  ;;  %v1580_v37 = vsel %vm1564_vm3, %v7531_v24, -inf  ;;  %v1474_v27 = vmul.f32 0.25, %v1079_v49 }
 0x415   :  { %1593 = vmax.xlane.f32.xlu1 %v1592_v1  ;;  %v7572_v49 = vld [vmem:[%s8633_s1 + $0xa] ss:$0 sm:$0xff]  ;;  %v7581_v60 = vpop.permute.xlu1 %1849  ;;  %v7583_v62 = vpop.permute.xlu0 %2001  ;;  %s6886_s1 = smov 48  }
 0x416   :  { %v7526_v9 = vadd.f32 %v7516_v51, %v1479_v54  ;;  %v7557_v38 = vadd.f32 %v7554_v33, %v1474_v27 }
 0x417   :  { %v1233_v11 = vpop.f32.mrb[14].mxu1 }
 0x418   :  { %v6123_v17 = vpop.f32.mrb[15].mxu1  ;;  %v1598_v18 = vsel %vm1564_vm3, %v7526_v9, -inf  ;;  %v1476_v34 = vmul.f32 0.25, %v1233_v11  ;;  %v1583_v42 = vsel %vm1564_vm3, %v7557_v38, -inf }
 0x419   :  { %1599 = vmax.xlane.f32.xlu1 %v1598_v18  ;;  %v7585_v1 = vpop.permute.xlu1 %1925  ;;  %v7587_v11 = vpop.permute.xlu0 %2153 }
 0x41a   :  { %v7567_v43 = vadd.f32 %v7562_v39, %v1476_v34 }
 0x41b   :  { %v1387_v25 = vpop.f32.mrb[16].mxu1 }
 0x41c   :  { %v6133_v26 = vpop.f32.mrb[17].mxu1  ;;  %v1478_v56 = vmul.f32 0.25, %v1387_v25  ;;  %v1589_v50 = vsel %vm1564_vm3, %v7567_v43, -inf }
 0x41d   :  { %1581 = vmax.xlane.f32.xlu1 %v1580_v37  ;;  %v7589_v17 = vpop.permute.xlu1 %2077  ;;  %v7591_v18 = vpop.permute.xlu0 %2305 }
 0x41e   :  { %v7577_v12 = vadd.f32 %v7572_v49, %v1478_v56 }
 0x420   :  { %v1595_v54 = vsel %vm1564_vm3, %v7577_v12, -inf }
 0x421   :  { %v7593_v25 = vpop.permute.xlu1 %2229  ;;  %v7595_v26 = vpop.permute.xlu0 %2457 }
 0x425   :  { %v7597_v37 = vpop.permute.xlu1 %2381 }
 0x427   :  { %2611 = vrot.lane.b32.xlu0 %v7303_v61, %s6884_s5 }
 0x42b   :  { %2609 = vrot.lane.b32.xlu0 %v7303_v61, %s6885_s4 }
 0x42e   :  { %2533 = vrot.lane.b32.xlu1 %v7345_v21, %s6883_s29 }
 0x42f   :  { %2767 = vrot.lane.b32.xlu0 %v7309_v0, %s6884_s5 }
 0x432   :  { %2689 = vrot.lane.b32.xlu1 %v7301_v59, %s6884_s5 }
 0x433   :  { %2765 = vrot.lane.b32.xlu0 %v7309_v0, %s6885_s4 }
 0x436   :  { %2687 = vrot.lane.b32.xlu1 %v7301_v59, %s6885_s4 }
 0x43a   :  { %2845 = vrot.lane.b32.xlu1 %v7313_v5, %s6884_s5 }
 0x452   :  { %1584 = vmax.xlane.f32.xlu0 %v1583_v42 }
 0x456   :  { %1590 = vmax.xlane.f32.xlu0 %v1589_v50 }
 0x45a   :  { %1596 = vmax.xlane.f32.xlu0 %v1595_v54 }
 0x48e   :  { %v1567_v27 = vpop.xlane.xlu0 %1566 }
 0x48f   :  { %v1601_v34 = vsub.f32 %v7451_v44, %v1567_v27 }
 0x491   :  { %v1613_v56 = vmul.f32 1.442695, %v1601_v34 }
 0x492   :  { %v1570_v42 = vpop.xlane.xlu1 %1569 }
 0x493   :  { %6492 = vpow2.f32 %v1613_v56  ;;  %v1602_v50 = vsub.f32 %v7461_v3, %v1570_v42 }
 0x495   :  { %v1615_v54 = vmul.f32 1.442695, %v1602_v50 }
 0x496   :  { %v1573_v58 = vpop.xlane.xlu0 %1572 }
 0x497   :  { %6494 = vpow2.f32 %v1615_v54  ;;  %v1603_v53 = vsub.f32 %v7471_v63, %v1573_v58 }
 0x499   :  { %v1617_v55 = vmul.f32 1.442695, %v1603_v53 }
 0x49a   :  { %v1576_v48 = vpop.xlane.xlu0 %1575 }
 0x49b   :  { %6496 = vpow2.f32 %v1617_v55  ;;  %v1604_v40 = vsub.f32 %v7481_v14, %v1576_v48 }
 0x49d   :  { %v7602_v52 = vpop.eup %6492  ;;  %v1619_v58 = vmul.f32 1.442695, %v1604_v40 }
 0x49e   :  { %v1588_v45 = vpop.xlane.xlu1 %1587  ;;  %v1579_v46 = vpop.xlane.xlu0 %1578  ;;  %v1637_v44 = vsel %vm1564_vm3, %v7602_v52, 0.0 }
 0x49f   :  { %v1608_v27 = vsub.f32 %v7496_v31, %v1588_v45  ;;  %v1605_v3 = vsub.f32 %v7499_v32, %v1579_v46  ;;  %1638 = vadd.xlane.f32.xlu0 %v1637_v44 }
 0x4a1   :  { %v7609_v34 = vpop.eup %6494  ;;  %v1627_v53 = vmul.f32 1.442695, %v1608_v27  ;;  %v1621_v63 = vmul.f32 1.442695, %v1605_v3 }
 0x4a2   :  { %v1594_v55 = vpop.xlane.xlu1 %1593  ;;  %v1640_v56 = vsel %vm1564_vm3, %v7609_v34, 0.0 }
 0x4a3   :  { %6498 = vpow2.f32 %v1627_v53  ;;  %v1610_v48 = vsub.f32 %v7511_v57, %v1594_v55  ;;  %1641 = vadd.xlane.f32.xlu1 %v1640_v56 }
 0x4a4   :  { %6500 = vpow2.f32 %v1621_v63 }
 0x4a5   :  { %v7614_v14 = vpop.eup %6496  ;;  %6502 = vpow2.f32 %v1619_v58  ;;  %v1631_v45 = vmul.f32 1.442695, %v1610_v48 }
 0x4a6   :  { %v1600_v46 = vpop.xlane.xlu1 %1599  ;;  %v1643_v31 = vsel %vm1564_vm3, %v7614_v14, 0.0 }
 0x4a7   :  { %v1612_v40 = vsub.f32 %v7526_v9, %v1600_v46  ;;  %1644 = vadd.xlane.f32.xlu0 %v1643_v31  ;;  %6504 = vpow2.f32 %v1631_v45  ;;  %v7646_v45 = vpop.permute.xlu0 %2611 }
 0x4a9   :  { %v1635_v32 = vmul.f32 1.442695, %v1612_v40 }
 0x4aa   :  { %v1582_v42 = vpop.xlane.xlu1 %1581 }
 0x4ab   :  { %v1606_v50 = vsub.f32 %v7531_v24, %v1582_v42  ;;  %6506 = vpow2.f32 %v1635_v32  ;;  %v7648_v46 = vpop.permute.xlu0 %2609 }
 0x4ad   :  { %v7620_v54 = vpop.eup %6498  ;;  %v1623_v57 = vmul.f32 1.442695, %v1606_v50 }
 0x4ae   :  { %v7622_v44 = vpop.eup %6500  ;;  %v1658_v27 = vsel %vm1564_vm3, %v7620_v54, 0.0 }
 0x4af   :  { %v7626_v3 = vpop.eup %6502  ;;  %1659 = vadd.xlane.f32.xlu1 %v1658_v27  ;;  %v1649_v9 = vsel %vm1564_vm3, %v7622_v44, 0.0  ;;  %6508 = vpow2.f32 %v1623_v57  ;;  %v7654_v31 = vpop.permute.xlu0 %2767 }
 0x4b0   :  { %1650 = vadd.xlane.f32.xlu0 %v1649_v9  ;;  %v1646_v24 = vsel %vm1564_vm3, %v7626_v3, 0.0 }
 0x4b1   :  { %v7632_v58 = vpop.eup %6504 }
 0x4b2   :  { %v1664_v53 = vsel %vm1564_vm3, %v7632_v58, 0.0 }
 0x4b3   :  { %1647 = vadd.xlane.f32.xlu1 %v1646_v24  ;;  %v7658_v40 = vpop.permute.xlu0 %2765 }
 0x4b5   :  { %v7636_v63 = vpop.eup %6506 }
 0x4b6   :  { %v1670_v55 = vsel %vm1564_vm3, %v7636_v63, 0.0 }
 0x4b7   :  { %1665 = vadd.xlane.f32.xlu1 %v1664_v53 }
 0x4b9   :  { %v7640_v56 = vpop.eup %6508 }
 0x4ba   :  { %v1652_v48 = vsel %vm1564_vm3, %v7640_v56, 0.0 }
 0x4bb   :  { %1671 = vadd.xlane.f32.xlu1 %v1670_v55 }
 0x4bf   :  { %1653 = vadd.xlane.f32.xlu1 %v1652_v48 }
 0x4c6   :  { %2923 = vrot.lane.b32.xlu0 %v7315_v6, %s6884_s5 }
 0x4d0   :  { %2843 = vrot.lane.b32.xlu1 %v7313_v5, %s6885_s4 }
 0x4d4   :  { %3001 = vrot.lane.b32.xlu1 %v7321_v28, %s6884_s5 }
 0x4d8   :  { %2999 = vrot.lane.b32.xlu1 %v7321_v28, %s6885_s4 }
 0x4dc   :  { %3157 = vrot.lane.b32.xlu1 %v7329_v15, %s6884_s5 }
 0x4df   :  { %v1585_v32 = vpop.xlane.xlu0 %1584 }
 0x4e0   :  { %v1607_v42 = vsub.f32 %v7557_v38, %v1585_v32  ;;  %3155 = vrot.lane.b32.xlu1 %v7329_v15, %s6885_s4 }
 0x4e2   :  { %v1625_v50 = vmul.f32 1.442695, %v1607_v42  ;;  %v7685_v42 = vpop.permute.xlu1 %2533 }
 0x4e3   :  { %v1591_v57 = vpop.xlane.xlu0 %1590 }
 0x4e4   :  { %6510 = vpow2.f32 %v1625_v50  ;;  %v1609_v27 = vsub.f32 %v7567_v43, %v1591_v57  ;;  %3313 = vrot.lane.b32.xlu1 %v7337_v19, %s6884_s5 }
 0x4e6   :  { %v1629_v9 = vmul.f32 1.442695, %v1609_v27  ;;  %v7687_v50 = vpop.permute.xlu1 %2689 }
 0x4e7   :  { %v1597_v55 = vpop.xlane.xlu0 %1596 }
 0x4e8   :  { %6512 = vpow2.f32 %v1629_v9  ;;  %3311 = vrot.lane.b32.xlu1 %v7337_v19, %s6885_s4  ;;  %v1611_v48 = vsub.f32 %v7577_v12, %v1597_v55 }
 0x4ea   :  { %v1633_v32 = vmul.f32 1.442695, %v1611_v48  ;;  %v7691_v27 = vpop.permute.xlu1 %2687 }
 0x4ec   :  { %3469 = vrot.lane.b32.xlu1 %v7345_v21, %s6884_s5  ;;  %6514 = vpow2.f32 %v1633_v32 }
 0x4ee   :  { %v7672_v38 = vpop.eup %6510 }
 0x4ef   :  { %v1655_v24 = vsel %vm1564_vm3, %v7672_v38, 0.0 }
 0x4f0   :  { %3467 = vrot.lane.b32.xlu1 %v7345_v21, %s6885_s4  ;;  %1656 = vadd.xlane.f32.xlu0 %v1655_v24  ;;  %v7695_v24 = vpop.permute.xlu1 %2845 }
 0x4f2   :  { %v7678_v43 = vpop.eup %6512 }
 0x4f3   :  { %v1661_v53 = vsel %vm1564_vm3, %v7678_v43, 0.0 }
 0x4f4   :  { %1662 = vadd.xlane.f32.xlu0 %v1661_v53 }
 0x4f6   :  { %v7689_v57 = vpop.eup %6514 }
 0x4f7   :  { %v1667_v9 = vsel %vm1564_vm3, %v7689_v57, 0.0 }
 0x50a   :  { %2921 = vrot.lane.b32.xlu0 %v7315_v6, %s6885_s4 }
 0x529   :  { %1668 = vadd.xlane.f32.xlu0 %v1667_v9 }
 0x52c   :  { %v1639_v53 = vpop.xlane.xlu0 %1638 }
 0x52d   :  { %6516 = vrcp.f32 %v1639_v53 }
 0x530   :  { %v1642_v47 = vpop.xlane.xlu1 %1641 }
 0x531   :  { %6518 = vrcp.f32 %v1642_v47 }
 0x534   :  { %v1645_v12 = vpop.xlane.xlu0 %1644 }
 0x535   :  { %6520 = vrcp.f32 %v1645_v12 }
 0x537   :  { %v6517_v55 = vpop.eup %6516 }
 0x538   :  { %v1685_v48 = vmul.f32 %v6517_v55, %v7602_v52 }
 0x53a   :  { %6142 = vmatmul.mubr.msk.f32.vlgmr.msra.gmra.mrb[18].mxu1 %vm1564_vm3, %v1685_v48 }
 0x53b   :  { %v6519_v32 = vpop.eup %6518  ;;  %6150 = vmatpush3.msra.mxu1 %v7581_v60  ;;  %6151 = vmatprep.mubr.msk.f32.mxu1 %vm6881_vm1, %v8674_v22 }
 0x53c   :  { %v1660_v9 = vpop.xlane.xlu1 %1659  ;;  %v1686_v30 = vmul.f32 %v6519_v32, %v7609_v34  ;;  %6159 = vmatprep.subr.mxu1 %v8674_v22 }
 0x53d   :  { %v1651_v53 = vpop.xlane.xlu0 %1650 }
 0x53e   :  { %6522 = vrcp.f32 %v1651_v53  ;;  %6147 = vmatmul.mubr.msk.f32.vlgmr.msra.gmra.mrb[18].mxu0 %vm1564_vm3, %v1686_v30 }
 0x53f   :  { %v6521_v47 = vpop.eup %6520  ;;  %6155 = vmatpush3.msra.mxu0 %v7585_v1  ;;  %3079 = vrot.lane.b32.xlu0 %v7323_v10, %s6884_s5 }
 0x540   :  { %v1648_v52 = vpop.xlane.xlu1 %1647  ;;  %v1687_v60 = vmul.f32 %v6521_v47, %v7614_v14  ;;  %6156 = vmatprep.mubr.msk.f32.mxu0 %vm6881_vm1, %v8674_v22  ;;  %6164 = vmatprep.subr.mxu0 %v8674_v22 }
 0x541   :  { %6524 = vrcp.f32 %v1648_v52 }
 0x542   :  { %6152 = vmatmul.mubr.msk.f32.vlgmr.msra.gmra.mrb[20].mxu1 %vm1564_vm3, %v1687_v60 }
 0x543   :  { %6160 = vmatpush3.msra.mxu1 %v7583_v62  ;;  %3077 = vrot.lane.b32.xlu0 %v7323_v10, %s6885_s4 }
 0x544   :  { %v1666_v30 = vpop.xlane.xlu1 %1665  ;;  %6161 = vmatprep.mubr.msk.f32.mxu1 %vm6881_vm1, %v8674_v22  ;;  %6169 = vmatprep.subr.mxu1 %v8674_v22 }
 0x547   :  { %3235 = vrot.lane.b32.xlu0 %v7331_v16, %s6884_s5 }
 0x548   :  { %v6523_v1 = vpop.eup %6522  ;;  %v1672_v34 = vpop.xlane.xlu1 %1671 }
 0x549   :  { %v1689_v14 = vmul.f32 %v6523_v1, %v7622_v44 }
 0x54b   :  { %v6525_v12 = vpop.eup %6524  ;;  %6162 = vmatmul.mubr.msk.f32.vlgmr.msra.gmra.mrb[22].mxu1 %vm1564_vm3, %v1689_v14  ;;  %3233 = vrot.lane.b32.xlu0 %v7331_v16, %s6885_s4 }
 0x54c   :  { %6170 = vmatpush3.msra.mxu1 %v7587_v11  ;;  %v1654_v62 = vpop.xlane.xlu1 %1653  ;;  %v1688_v55 = vmul.f32 %v6525_v12, %v7626_v3  ;;  %6171 = vmatprep.mubr.msk.f32.mxu1 %vm6881_vm1, %v8674_v22 }
 0x54d   :  { %6526 = vrcp.f32 %v1654_v62  ;;  %6179 = vmatprep.subr.mxu1 %v8674_v22 }
 0x54e   :  { %6157 = vmatmul.mubr.msk.f32.vlgmr.msra.gmra.mrb[20].mxu0 %vm1564_vm3, %v1688_v55  ;;  %6528 = vrcp.f32 %v1660_v9 }
 0x54f   :  { %6165 = vmatpush3.msra.mxu0 %v7589_v17  ;;  %3391 = vrot.lane.b32.xlu0 %v7339_v20, %s6884_s5  ;;  %6530 = vrcp.f32 %v1666_v30 }
 0x550   :  { %v2844_v44 = vpop.permute.xlu1 %2843  ;;  %6166 = vmatprep.mubr.msk.f32.mxu0 %vm6881_vm1, %v8674_v22  ;;  %6174 = vmatprep.subr.mxu0 %v8674_v22  ;;  %6532 = vrcp.f32 %v1672_v34 }
 0x553   :  { %3389 = vrot.lane.b32.xlu0 %v7339_v20, %s6885_s4 }
 0x554   :  { %v3002_v11 = vpop.permute.xlu1 %3001 }
 0x557   :  { %v6527_v3 = vpop.eup %6526 }
 0x558   :  { %v1690_v48 = vmul.f32 %v6527_v3, %v7640_v56  ;;  %v6529_v32 = vpop.eup %6528  ;;  %v3000_v17 = vpop.permute.xlu1 %2999 }
 0x559   :  { %v1692_v9 = vmul.f32 %v6529_v32, %v7620_v54  ;;  %v6531_v53 = vpop.eup %6530 }
 0x55a   :  { %6167 = vmatmul.mubr.msk.f32.vlgmr.msra.gmra.mrb[22].mxu0 %vm1564_vm3, %v1690_v48  ;;  %v6533_v56 = vpop.eup %6532 }
 0x55b   :  { %6175 = vmatpush3.msra.mxu0 %v7593_v25  ;;  %6176 = vmatprep.mubr.msk.f32.mxu0 %vm6881_vm1, %v8674_v22  ;;  %v1694_v25 = vmul.f32 %v6531_v53, %v7632_v58  ;;  %v1696_v54 = vmul.f32 %v6533_v56, %v7636_v63 }
 0x55c   :  { %6184 = vmatprep.subr.mxu0 %v8674_v22  ;;  %v3158_v47 = vpop.permute.xlu1 %3157 }
 0x55e   :  { %6177 = vmatmul.mubr.msk.f32.vlgmr.msra.gmra.mrb[24].mxu0 %vm1564_vm3, %v1692_v9 }
 0x55f   :  { %6185 = vmatpush3.msra.mxu0 %v7597_v37  ;;  %6186 = vmatprep.mubr.msk.f32.mxu0 %vm6881_vm1, %v8674_v22 }
 0x560   :  { %6194 = vmatprep.subr.mxu0 %v8674_v22  ;;  %v3156_v37 = vpop.permute.xlu1 %3155 }
 0x562   :  { %6187 = vmatmul.mubr.msk.f32.vlgmr.msra.gmra.mrb[26].mxu0 %vm1564_vm3, %v1694_v25 }
 0x563   :  { %6195 = vmatpush3.msra.mxu0 %v7685_v42  ;;  %6196 = vmatprep.mubr.msk.f32.mxu0 %vm6881_vm1, %v8674_v22  ;;  %v2924_v42 = vpop.permute.xlu0 %2923 }
 0x564   :  { %6204 = vmatprep.subr.mxu0 %v8674_v22  ;;  %v3314_v58 = vpop.permute.xlu1 %3313 }
 0x566   :  { %6197 = vmatmul.mubr.msk.f32.vlgmr.msra.gmra.mrb[28].mxu0 %vm1564_vm3, %v1696_v54 }
 0x567   :  { %6206 = vmatprep.mubr.msk.f32.mxu0 %vm6881_vm1, %v8674_v22 }
 0x568   :  { %v3312_v63 = vpop.permute.xlu1 %3311 }
 0x56a   :  { %6205 = vmatpush3.xpose.msk.msra.mxu0 %vm546_vm2, %v7687_v50 }
 0x56b   :  { %6214 = vmatprep.subr.mxu0 %v8674_v22 }
 0x56c   :  { %v3470_v50 = vpop.permute.xlu1 %3469 }
 0x56d   :  { %6207 = vmatmul.mubr.msk.f32.vlgmr.msra.gmra.mrb[30].mxu0 %vm546_vm2, %v7691_v27 }
 0x56e   :  { %6215 = vmatpush3.xpose.msk.msra.mxu0 %vm546_vm2, %v7695_v24  ;;  %6216 = vmatprep.mubr.msk.f32.mxu0 %vm6881_vm1, %v8674_v22 }
 0x56f   :  { %6224 = vmatprep.subr.mxu0 %v8674_v22 }
 0x570   :  { %v3468_v24 = vpop.permute.xlu1 %3467 }
 0x571   :  { %6217 = vmatmul.mubr.msk.f32.vlgmr.msra.gmra.mrb[32].mxu0 %vm546_vm2, %v2844_v44 }
 0x572   :  { %6225 = vmatpush3.xpose.msk.msra.mxu0 %vm546_vm2, %v3002_v11  ;;  %6226 = vmatprep.mubr.msk.f32.mxu0 %vm6881_vm1, %v8674_v22 }
 0x573   :  { %6234 = vmatprep.subr.mxu0 %v8674_v22 }
 0x575   :  { %6227 = vmatmul.mubr.msk.f32.vlgmr.msra.gmra.mrb[34].mxu0 %vm546_vm2, %v3000_v17 }
 0x576   :  { %6235 = vmatpush3.xpose.msk.msra.mxu0 %vm546_vm2, %v3158_v47  ;;  %6236 = vmatprep.mubr.msk.f32.mxu0 %vm6881_vm1, %v8674_v22 }
 0x577   :  { %6244 = vmatprep.subr.mxu0 %v8674_v22 }
 0x579   :  { %6237 = vmatmul.mubr.msk.f32.vlgmr.msra.gmra.mrb[36].mxu0 %vm546_vm2, %v3156_v37 }
 0x57a   :  { %6245 = vmatpush3.xpose.msk.msra.mxu0 %vm546_vm2, %v3314_v58  ;;  %6246 = vmatprep.mubr.msk.f32.mxu0 %vm6881_vm1, %v8674_v22 }
 0x57b   :  { %6254 = vmatprep.subr.mxu0 %v8674_v22 }
 0x57d   :  { %6247 = vmatmul.mubr.msk.f32.vlgmr.msra.gmra.mrb[38].mxu0 %vm546_vm2, %v3312_v63  ;;  %v1657_v27 = vpop.xlane.xlu0 %1656 }
 0x57e   :  { %6255 = vmatpush3.xpose.msk.msra.mxu0 %vm546_vm2, %v3470_v50  ;;  %6534 = vrcp.f32 %v1657_v27  ;;  %6256 = vmatprep.mubr.msk.f32.mxu0 %vm6881_vm1, %v8674_v22 }
 0x57f   :  { %6264 = vmatprep.subr.mxu0 %v8674_v22 }
 0x581   :  { %6257 = vmatmul.mubr.msk.f32.vlgmr.msra.gmra.mrb[40].mxu0 %vm546_vm2, %v3468_v24  ;;  %v1663_v52 = vpop.xlane.xlu0 %1662 }
 0x582   :  { %6536 = vrcp.f32 %v1663_v52  ;;  %6266 = vmatprep.mubr.msk.f32.mxu0 %vm6881_vm1, %v8674_v22 }
 0x588   :  { %v6535_v60 = vpop.eup %6534 }
 0x589   :  { %v1691_v30 = vmul.f32 %v6535_v60, %v7672_v38  ;;  %v2922_v38 = vpop.permute.xlu0 %2921 }
 0x58b   :  { %6172 = vmatmul.mubr.msk.f32.vlgmr.msra.gmra.mrb[24].mxu1 %vm1564_vm3, %v1691_v30 }
 0x58c   :  { %v6537_v1 = vpop.eup %6536  ;;  %6180 = vmatpush3.msra.mxu1 %v7591_v18  ;;  %6181 = vmatprep.mubr.msk.f32.mxu1 %vm6881_vm1, %v8674_v22 }
 0x58d   :  { %6189 = vmatprep.subr.mxu1 %v8674_v22  ;;  %v1693_v34 = vmul.f32 %v6537_v1, %v7678_v43 }
 0x58f   :  { %6182 = vmatmul.mubr.msk.f32.vlgmr.msra.gmra.mrb[26].mxu1 %vm1564_vm3, %v1693_v34 }
 0x590   :  { %6190 = vmatpush3.msra.mxu1 %v7595_v26  ;;  %6191 = vmatprep.mubr.msk.f32.mxu1 %vm6881_vm1, %v8674_v22 }
 0x591   :  { %6199 = vmatprep.subr.mxu1 %v8674_v22 }
 0x5b6   :  { %v1669_v14 = vpop.xlane.xlu0 %1668 }
 0x5b7   :  { %6538 = vrcp.f32 %v1669_v14 }
 0x5ba   :  { %v3080_v18 = vpop.permute.xlu0 %3079 }
 0x5be   :  { %v3078_v55 = vpop.permute.xlu0 %3077 }
 0x5c1   :  { %v6539_v12 = vpop.eup %6538 }
 0x5c2   :  { %v1695_v62 = vmul.f32 %v6539_v12, %v7689_v57  ;;  %v3236_v26 = vpop.permute.xlu0 %3235 }
 0x5c4   :  { %6192 = vmatmul.mubr.msk.f32.vlgmr.msra.gmra.mrb[28].mxu1 %vm1564_vm3, %v1695_v62 }
 0x5c5   :  { %6200 = vmatpush3.xpose.msk.msra.mxu1 %vm546_vm2, %v7646_v45  ;;  %6201 = vmatprep.mubr.msk.f32.mxu1 %vm6881_vm1, %v8674_v22 }
 0x5c6   :  { %6209 = vmatprep.subr.mxu1 %v8674_v22  ;;  %v3234_v45 = vpop.permute.xlu0 %3233 }
 0x5c8   :  { %6202 = vmatmul.mubr.msk.f32.vlgmr.msra.gmra.mrb[30].mxu1 %vm546_vm2, %v7648_v46 }
 0x5c9   :  { %6210 = vmatpush3.xpose.msk.msra.mxu1 %vm546_vm2, %v7654_v31  ;;  %6211 = vmatprep.mubr.msk.f32.mxu1 %vm6881_vm1, %v8674_v22 }
 0x5ca   :  { %6219 = vmatprep.subr.mxu1 %v8674_v22  ;;  %v3392_v46 = vpop.permute.xlu0 %3391 }
 0x5cc   :  { %6212 = vmatmul.mubr.msk.f32.vlgmr.msra.gmra.mrb[32].mxu1 %vm546_vm2, %v7658_v40 }
 0x5cd   :  { %6220 = vmatpush3.xpose.msk.msra.mxu1 %vm546_vm2, %v2924_v42  ;;  %6221 = vmatprep.mubr.msk.f32.mxu1 %vm6881_vm1, %v8674_v22 }
 0x5ce   :  { %6229 = vmatprep.subr.mxu1 %v8674_v22  ;;  %v3390_v31 = vpop.permute.xlu0 %3389 }
 0x5d0   :  { %6222 = vmatmul.mubr.msk.f32.vlgmr.msra.gmra.mrb[34].mxu1 %vm546_vm2, %v2922_v38 }
 0x5d1   :  { %6230 = vmatpush3.xpose.msk.msra.mxu1 %vm546_vm2, %v3080_v18  ;;  %6231 = vmatprep.mubr.msk.f32.mxu1 %vm6881_vm1, %v8674_v22 }
 0x5d2   :  { %6239 = vmatprep.subr.mxu1 %v8674_v22 }
 0x5d4   :  { %6232 = vmatmul.mubr.msk.f32.vlgmr.msra.gmra.mrb[36].mxu1 %vm546_vm2, %v3078_v55 }
 0x5d5   :  { %6240 = vmatpush3.xpose.msk.msra.mxu1 %vm546_vm2, %v3236_v26  ;;  %6241 = vmatprep.mubr.msk.f32.mxu1 %vm6881_vm1, %v8674_v22 }
 0x5d6   :  { %6249 = vmatprep.subr.mxu1 %v8674_v22 }
 0x5d8   :  { %6242 = vmatmul.mubr.msk.f32.vlgmr.msra.gmra.mrb[38].mxu1 %vm546_vm2, %v3234_v45 }
 0x5d9   :  { %6250 = vmatpush3.xpose.msk.msra.mxu1 %vm546_vm2, %v3392_v46  ;;  %6251 = vmatprep.mubr.msk.f32.mxu1 %vm6881_vm1, %v8674_v22 }
 0x5da   :  { %6259 = vmatprep.subr.mxu1 %v8674_v22 }
 0x5dc   :  { %6252 = vmatmul.mubr.msk.f32.vlgmr.msra.gmra.mrb[40].mxu1 %vm546_vm2, %v3390_v31 }
 0x5dd   :  { %6261 = vmatprep.mubr.msk.f32.mxu1 %vm6881_vm1, %v8674_v22 }
 0x60d   :  { %v7844_v40 = vpop.f32.mrb[18].mxu1 }
 0x60e   :  { %v6143_v43 = vpop.f32.mrb[19].mxu1 }
 0x611   :  { %v7846_v57 = vpop.f32.mrb[18].mxu0 }
 0x612   :  { %v6148_v44 = vpop.f32.mrb[19].mxu0 }
 0x615   :  { %v7848_v11 = vpop.f32.mrb[20].mxu1 }
 0x616   :  { %v6153_v3 = vpop.f32.mrb[21].mxu1 }
 0x61e   :  { %v7850_v48 = vpop.f32.mrb[22].mxu1 }
 0x61f   :  { %v6163_v32 = vpop.f32.mrb[23].mxu1 }
 0x621   :  { %v7852_v17 = vpop.f32.mrb[20].mxu0 }
 0x622   :  { %v6158_v9 = vpop.f32.mrb[21].mxu0 }
 0x62d   :  { %v7854_v53 = vpop.f32.mrb[22].mxu0 }
 0x62e   :  { %v6168_v25 = vpop.f32.mrb[23].mxu0 }
 0x631   :  { %v7856_v56 = vpop.f32.mrb[24].mxu0 }
 0x632   :  { %v6178_v47 = vpop.f32.mrb[25].mxu0 }
 0x635   :  { %v7858_v54 = vpop.f32.mrb[26].mxu0 }
 0x636   :  { %v6188_v37 = vpop.f32.mrb[27].mxu0 }
 0x639   :  { %v7860_v58 = vpop.f32.mrb[28].mxu0 }
 0x63a   :  { %v6198_v63 = vpop.f32.mrb[29].mxu0 }
 0x640   :  { %v2761_v42 = vpop.f32.mrb[30].mxu0 }
 0x641   :  { %v3546_v50 = vmul.f32 0.25, %v2761_v42  ;;  %v6208_v27 = vpop.f32.mrb[31].mxu0 }
 0x643   :  { %v7863_v24 = vadd.f32 %v7456_v2, %v3546_v50 }
 0x644   :  { %v2917_v52 = vpop.f32.mrb[32].mxu0 }
 0x645   :  { %v6218_v60 = vpop.f32.mrb[33].mxu0  ;;  %v3572_v30 = vsel %vm1564_vm3, %v7863_v24, -inf }
 0x646   :  { %3573 = vmax.xlane.f32.xlu1 %v3572_v30  ;;  %v3548_v30 = vmul.f32 0.25, %v2917_v52 }
 0x648   :  { %v3073_v1 = vpop.f32.mrb[34].mxu0 }
 0x649   :  { %v3550_v34 = vmul.f32 0.25, %v3073_v1  ;;  %v6228_v38 = vpop.f32.mrb[35].mxu0 }
 0x64b   :  { %v7868_v14 = vadd.f32 %v7523_v7, %v3550_v34 }
 0x64c   :  { %v3229_v18 = vpop.f32.mrb[36].mxu0 }
 0x64d   :  { %v3552_v12 = vmul.f32 0.25, %v3229_v18  ;;  %v6238_v62 = vpop.f32.mrb[37].mxu0  ;;  %v3584_v55 = vsel %vm1564_vm3, %v7868_v14, -inf  ;;  %v3560_v18 = vadd.f32 %v7476_v4, %v3548_v30 }
 0x64e   :  { %3585 = vmax.xlane.f32.xlu1 %v3584_v55 }
 0x64f   :  { %v7873_v2 = vadd.f32 %v7486_v29, %v3552_v12 }
 0x650   :  { %v3385_v26 = vpop.f32.mrb[38].mxu0 }
 0x651   :  { %v3554_v45 = vmul.f32 0.25, %v3385_v26  ;;  %v6248_v46 = vpop.f32.mrb[39].mxu0  ;;  %v3590_v31 = vsel %vm1564_vm3, %v7873_v2, -inf }
 0x652   :  { %3591 = vmax.xlane.f32.xlu1 %v3590_v31 }
 0x653   :  { %v7878_v7 = vadd.f32 %v7504_v35, %v3554_v45  ;;  %v3578_v45 = vsel %vm1564_vm3, %v3560_v18, -inf }
 0x654   :  { %v3541_v43 = vpop.f32.mrb[40].mxu0 }
 0x655   :  { %v6258_v44 = vpop.f32.mrb[41].mxu0  ;;  %v3596_v3 = vsel %vm1564_vm3, %v7878_v7, -inf  ;;  %v3556_v35 = vmul.f32 0.25, %v3541_v43 }
 0x656   :  { %3597 = vmax.xlane.f32.xlu1 %v3596_v3 }
 0x657   :  { %v7893_v47 = vadd.f32 %v7516_v51, %v3556_v35 }
 0x659   :  { %v3602_v37 = vsel %vm1564_vm3, %v7893_v47, -inf }
 0x65e   :  { %v7882_v32 = vpop.f32.mrb[24].mxu1 }
 0x65f   :  { %v6173_v29 = vpop.f32.mrb[25].mxu1 }
 0x662   :  { %v7884_v9 = vpop.f32.mrb[26].mxu1 }
 0x663   :  { %v6183_v25 = vpop.f32.mrb[27].mxu1 }
 0x667   :  { %3777 = vrot.lane.b32.xlu1 %v7301_v59, %s6886_s1 }
 0x66b   :  { %3853 = vrot.lane.b32.xlu1 %v7309_v0, %s6886_s1 }
 0x66f   :  { %3929 = vrot.lane.b32.xlu1 %v7313_v5, %s6886_s1 }
 0x693   :  { %3603 = vmax.xlane.f32.xlu1 %v3602_v37 }
 0x697   :  { %v7897_v63 = vpop.f32.mrb[28].mxu1 }
 0x698   :  { %v6193_v42 = vpop.f32.mrb[29].mxu1 }
 0x69b   :  { %v2683_v50 = vpop.f32.mrb[30].mxu1 }
 0x69c   :  { %v3545_v27 = vmul.f32 0.25, %v2683_v50  ;;  %v6203_v59 = vpop.f32.mrb[31].mxu1 }
 0x69e   :  { %v3557_v60 = vadd.f32 %v7448_v41, %v3545_v27 }
 0x69f   :  { %v2839_v0 = vpop.f32.mrb[32].mxu1 }
 0x6a0   :  { %v3547_v1 = vmul.f32 0.25, %v2839_v0  ;;  %v6213_v5 = vpop.f32.mrb[33].mxu1  ;;  %v3569_v34 = vsel %vm1564_vm3, %v3557_v60, -inf }
 0x6a1   :  { %3570 = vmax.xlane.f32.xlu0 %v3569_v34 }
 0x6a2   :  { %v3559_v51 = vadd.f32 %v7466_v13, %v3547_v1 }
 0x6a3   :  { %v2995_v38 = vpop.f32.mrb[34].mxu1 }
 0x6a4   :  { %4081 = vrot.lane.b32.xlu1 %v7321_v28, %s6886_s1  ;;  %v3549_v12 = vmul.f32 0.25, %v2995_v38  ;;  %v6223_v62 = vpop.f32.mrb[35].mxu1  ;;  %v3575_v55 = vsel %vm1564_vm3, %v3559_v51, -inf }
 0x6a5   :  { %3576 = vmax.xlane.f32.xlu0 %v3575_v55 }
 0x6a6   :  { %v7907_v52 = vadd.f32 %v7491_v23, %v3549_v12 }
 0x6a7   :  { %v3151_v41 = vpop.f32.mrb[36].mxu1 }
 0x6a8   :  { %4233 = vrot.lane.b32.xlu1 %v7329_v15, %s6886_s1  ;;  %v3551_v26 = vmul.f32 0.25, %v3151_v41  ;;  %v6233_v13 = vpop.f32.mrb[37].mxu1  ;;  %v3581_v23 = vsel %vm1564_vm3, %v7907_v52, -inf }
 0x6a9   :  { %3579 = vmax.xlane.f32.xlu0 %v3578_v45 }
 0x6aa   :  { %v7913_v28 = vadd.f32 %v7554_v33, %v3551_v26 }
 0x6ab   :  { %v3307_v4 = vpop.f32.mrb[38].mxu1 }
 0x6ac   :  { %4385 = vrot.lane.b32.xlu1 %v7337_v19, %s6886_s1  ;;  %v3553_v46 = vmul.f32 0.25, %v3307_v4  ;;  %v6243_v31 = vpop.f32.mrb[39].mxu1  ;;  %v3587_v29 = vsel %vm1564_vm3, %v7913_v28, -inf }
 0x6ad   :  { %3582 = vmax.xlane.f32.xlu0 %v3581_v23 }
 0x6ae   :  { %v7920_v15 = vadd.f32 %v7562_v39, %v3553_v46 }
 0x6af   :  { %v3463_v43 = vpop.f32.mrb[40].mxu1 }
 0x6b0   :  { %v3555_v44 = vmul.f32 0.25, %v3463_v43  ;;  %v6253_v3 = vpop.f32.mrb[41].mxu1  ;;  %v3593_v19 = vsel %vm1564_vm3, %v7920_v15, -inf }
 0x6b1   :  { %3588 = vmax.xlane.f32.xlu0 %v3587_v29 }
 0x6b2   :  { %v7925_v33 = vadd.f32 %v7572_v49, %v3555_v44 }
 0x6b4   :  { %v3599_v25 = vsel %vm1564_vm3, %v7925_v33, -inf }
 0x6b5   :  { %3594 = vmax.xlane.f32.xlu0 %v3593_v19 }
 0x6b9   :  { %3600 = vmax.xlane.f32.xlu0 %v3599_v25 }
 0x6cf   :  { %3701 = vrot.lane.b32.xlu0 %v7303_v61, %s6886_s1 }
 0x6d3   :  { %v3574_v39 = vpop.xlane.xlu1 %3573  ;;  %4005 = vrot.lane.b32.xlu0 %v7315_v6, %s6886_s1 }
 0x6d4   :  { %v3606_v35 = vsub.f32 %v7863_v24, %v3574_v39 }
 0x6d6   :  { %v3619_v37 = vmul.f32 1.442695, %v3606_v35 }
 0x6d7   :  { %4157 = vrot.lane.b32.xlu0 %v7323_v10, %s6886_s1 }
 0x6d8   :  { %6540 = vpow2.f32 %v3619_v37 }
 0x6db   :  { %v3586_v49 = vpop.xlane.xlu1 %3585  ;;  %4309 = vrot.lane.b32.xlu0 %v7331_v16, %s6886_s1 }
 0x6dc   :  { %v3610_v16 = vsub.f32 %v7868_v14, %v3586_v49 }
 0x6de   :  { %v3627_v12 = vmul.f32 1.442695, %v3610_v16 }
 0x6df   :  { %v3592_v42 = vpop.xlane.xlu1 %3591 }
 0x6e0   :  { %v3612_v62 = vsub.f32 %v7873_v2, %v3592_v42 }
 0x6e2   :  { %v7940_v50 = vpop.eup %6540 }
 0x6e3   :  { %v3598_v27 = vpop.xlane.xlu1 %3597  ;;  %v3644_v61 = vsel %vm1564_vm3, %v7940_v50, 0.0 }
 0x6e4   :  { %3645 = vadd.xlane.f32.xlu1 %v3644_v61  ;;  %v3614_v14 = vsub.f32 %v7878_v7, %v3598_v27 }
 0x6e7   :  { %v3778_v6 = vpop.permute.xlu1 %3777 }
 0x6e8   :  { %6265 = vmatpush3.msra.mxu0 %v3778_v6 }
 0x6e9   :  { %6274 = vmatprep.subr.mxu0 %v8674_v22 }
 0x6eb   :  { %v7945_v1 = vpop.permute.xlu1 %3853 }
 0x6ef   :  { %v7949_v41 = vpop.permute.xlu1 %3929 }
 0x720   :  { %v3604_v4 = vpop.xlane.xlu1 %3603 }
 0x721   :  { %v3616_v23 = vsub.f32 %v7893_v47, %v3604_v4 }
 0x72e   :  { %v3571_v24 = vpop.xlane.xlu0 %3570 }
 0x72f   :  { %v3605_v59 = vsub.f32 %v3557_v60, %v3571_v24 }
 0x731   :  { %v3617_v10 = vmul.f32 1.442695, %v3605_v59 }
 0x732   :  { %v3577_v0 = vpop.xlane.xlu0 %3576 }
 0x733   :  { %6542 = vpow2.f32 %v3617_v10  ;;  %v3607_v30 = vsub.f32 %v3559_v51, %v3577_v0  ;;  %v3631_v51 = vmul.f32 1.442695, %v3612_v62 }
 0x735   :  { %v3621_v5 = vmul.f32 1.442695, %v3607_v30 }
 0x736   :  { %v3580_v34 = vpop.xlane.xlu0 %3579 }
 0x737   :  { %6544 = vpow2.f32 %v3621_v5  ;;  %v3608_v38 = vsub.f32 %v3560_v18, %v3580_v34 }
 0x739   :  { %v3623_v55 = vmul.f32 1.442695, %v3608_v38 }
 0x73a   :  { %v3583_v26 = vpop.xlane.xlu0 %3582 }
 0x73b   :  { %6546 = vpow2.f32 %v3623_v55  ;;  %v3609_v60 = vsub.f32 %v7907_v52, %v3583_v26  ;;  %v3635_v52 = vmul.f32 1.442695, %v3614_v14 }
 0x73c   :  { %6548 = vpow2.f32 %v3627_v12  ;;  %v4082_v12 = vpop.permute.xlu1 %4081 }
 0x73d   :  { %v7952_v13 = vpop.eup %6542  ;;  %v3625_v45 = vmul.f32 1.442695, %v3609_v60 }
 0x73e   :  { %v3589_v46 = vpop.xlane.xlu0 %3588  ;;  %v3641_v18 = vsel %vm1564_vm3, %v7952_v13, 0.0 }
 0x73f   :  { %6550 = vpow2.f32 %v3625_v45  ;;  %v3611_v2 = vsub.f32 %v7913_v28, %v3589_v46  ;;  %3642 = vadd.xlane.f32.xlu0 %v3641_v18  ;;  %v3639_v28 = vmul.f32 1.442695, %v3616_v23 }
 0x740   :  { %6552 = vpow2.f32 %v3631_v51  ;;  %v4234_v62 = vpop.permute.xlu1 %4233 }
 0x741   :  { %v7958_v31 = vpop.eup %6544  ;;  %v3629_v43 = vmul.f32 1.442695, %v3611_v2 }
 0x742   :  { %v3595_v44 = vpop.xlane.xlu0 %3594  ;;  %v3647_v7 = vsel %vm1564_vm3, %v7958_v31, 0.0 }
 0x743   :  { %6554 = vpow2.f32 %v3629_v43  ;;  %v3613_v3 = vsub.f32 %v7920_v15, %v3595_v44  ;;  %3648 = vadd.xlane.f32.xlu0 %v3647_v7 }
 0x744   :  { %6556 = vpow2.f32 %v3635_v52  ;;  %v8004_v55 = vpop.permute.xlu1 %4385 }
 0x745   :  { %v7964_v29 = vpop.eup %6546  ;;  %v3633_v19 = vmul.f32 1.442695, %v3613_v3 }
 0x746   :  { %v3601_v25 = vpop.xlane.xlu0 %3600  ;;  %v3650_v39 = vsel %vm1564_vm3, %v7964_v29, 0.0  ;;  %v7968_v35 = vpop.eup %6548 }
 0x747   :  { %6558 = vpow2.f32 %v3633_v19  ;;  %v3615_v47 = vsub.f32 %v7925_v33, %v3601_v25  ;;  %3651 = vadd.xlane.f32.xlu1 %v3650_v39  ;;  %v3656_v42 = vsel %vm1564_vm3, %v7968_v35, 0.0 }
 0x748   :  { %6560 = vpow2.f32 %v3639_v28 }
 0x749   :  { %v7971_v37 = vpop.eup %6550  ;;  %v3637_v15 = vmul.f32 1.442695, %v3615_v47 }
 0x74a   :  { %v3702_v49 = vpop.permute.xlu0 %3701  ;;  %v3653_v27 = vsel %vm1564_vm3, %v7971_v37, 0.0  ;;  %v7977_v61 = vpop.eup %6552 }
 0x74b   :  { %6562 = vpow2.f32 %v3637_v15  ;;  %3657 = vadd.xlane.f32.xlu1 %v3656_v42  ;;  %3654 = vadd.xlane.f32.xlu0 %v3653_v27  ;;  %v3662_v33 = vsel %vm1564_vm3, %v7977_v61, 0.0 }
 0x74c   :  { %6260 = vmatpush3.msra.mxu1 %v3702_v49 }
 0x74d   :  { %v7979_v6 = vpop.eup %6554  ;;  %6269 = vmatprep.subr.mxu1 %v8674_v22 }
 0x74e   :  { %v3659_v24 = vsel %vm1564_vm3, %v7979_v6, 0.0  ;;  %v7986_v59 = vpop.eup %6556 }
 0x74f   :  { %3663 = vadd.xlane.f32.xlu1 %v3662_v33  ;;  %3660 = vadd.xlane.f32.xlu0 %v3659_v24  ;;  %v3668_v0 = vsel %vm1564_vm3, %v7986_v59, 0.0 }
 0x751   :  { %v7988_v10 = vpop.eup %6558 }
 0x752   :  { %v3665_v30 = vsel %vm1564_vm3, %v7988_v10, 0.0  ;;  %v7994_v16 = vpop.eup %6560 }
 0x753   :  { %3669 = vadd.xlane.f32.xlu1 %v3668_v0  ;;  %3666 = vadd.xlane.f32.xlu0 %v3665_v30  ;;  %v3674_v34 = vsel %vm1564_vm3, %v7994_v16, 0.0  ;;  %v4673_v30 = vld [vmem:[#allocation7] sm:$0xff] }
 0x755   :  { %v7996_v5 = vpop.eup %6562 }
 0x756   :  { %v3671_v38 = vsel %vm1564_vm3, %v7996_v5, 0.0 }
 0x757   :  { %3675 = vadd.xlane.f32.xlu1 %v3674_v34  ;;  %3672 = vadd.xlane.f32.xlu0 %v3671_v38  ;;  %v4674_v34 = vld [vmem:[#allocation7 + $0x8] sm:$0xff]  ;;  %v4675_v38 = vld [vmem:[#allocation7 + $0x10] sm:$0xff] }
 0x768   :  { %4537 = vrot.lane.b32.xlu1 %v7345_v21, %s6886_s1  ;;  %v4006_v21 = vpop.permute.xlu0 %4005 }
 0x76c   :  { %v4158_v14 = vpop.permute.xlu0 %4157 }
 0x76d   :  { %4461 = vrot.lane.b32.xlu0 %v7339_v20, %s6886_s1 }
 0x770   :  { %v8014_v45 = vpop.permute.xlu0 %4309 }
 0x771   :  { %v3646_v26 = vpop.xlane.xlu1 %3645 }
 0x772   :  { %6564 = vrcp.f32 %v3646_v26 }
 0x77c   :  { %v6565_v60 = vpop.eup %6564 }
 0x77d   :  { %v3690_v51 = vmul.f32 %v6565_v60, %v7940_v50 }
 0x77f   :  { %6267 = vmatmul.mubr.msk.f32.vlgmr.msra.gmra.mrb[42].mxu0 %vm1564_vm3, %v3690_v51 }
 0x780   :  { %6275 = vmatpush3.msra.mxu0 %v7949_v41  ;;  %6276 = vmatprep.mubr.msk.f32.mxu0 %vm6881_vm1, %v8674_v22 }
 0x781   :  { %6284 = vmatprep.subr.mxu0 %v8674_v22 }
 0x7cc   :  { %v3643_v4 = vpop.xlane.xlu0 %3642 }
 0x7cd   :  { %6566 = vrcp.f32 %v3643_v4 }
 0x7d0   :  { %v3649_v20 = vpop.xlane.xlu0 %3648 }
 0x7d1   :  { %6568 = vrcp.f32 %v3649_v20 }
 0x7d4   :  { %v3652_v46 = vpop.xlane.xlu1 %3651 }
 0x7d5   :  { %6570 = vrcp.f32 %v3652_v46 }
 0x7d7   :  { %v6567_v50 = vpop.eup %6566 }
 0x7d8   :  { %v3689_v18 = vmul.f32 %v6567_v50, %v7952_v13  ;;  %v3658_v2 = vpop.xlane.xlu1 %3657  ;;  %v3655_v41 = vpop.xlane.xlu0 %3654 }
 0x7d9   :  { %6572 = vrcp.f32 %v3658_v2 }
 0x7da   :  { %6574 = vrcp.f32 %v3655_v41  ;;  %6262 = vmatmul.mubr.msk.f32.vlgmr.msra.gmra.mrb[42].mxu1 %vm1564_vm3, %v3689_v18 }
 0x7db   :  { %v6569_v52 = vpop.eup %6568  ;;  %6270 = vmatpush3.msra.mxu1 %v7945_v1  ;;  %6271 = vmatprep.mubr.msk.f32.mxu1 %vm6881_vm1, %v8674_v22 }
 0x7dc   :  { %v3691_v23 = vmul.f32 %v6569_v52, %v7958_v31  ;;  %v3664_v43 = vpop.xlane.xlu1 %3663  ;;  %v3661_v44 = vpop.xlane.xlu0 %3660  ;;  %6279 = vmatprep.subr.mxu1 %v8674_v22 }
 0x7dd   :  { %6576 = vrcp.f32 %v3664_v43 }
 0x7de   :  { %6578 = vrcp.f32 %v3661_v44  ;;  %6272 = vmatmul.mubr.msk.f32.vlgmr.msra.gmra.mrb[44].mxu1 %vm1564_vm3, %v3691_v23 }
 0x7df   :  { %v6571_v13 = vpop.eup %6570  ;;  %6280 = vmatpush3.msra.mxu1 %v4006_v21  ;;  %6281 = vmatprep.mubr.msk.f32.mxu1 %vm6881_vm1, %v8674_v22 }
 0x7e0   :  { %v3692_v1 = vmul.f32 %v6571_v13, %v7964_v29  ;;  %v3670_v7 = vpop.xlane.xlu1 %3669  ;;  %v3667_v3 = vpop.xlane.xlu0 %3666  ;;  %6289 = vmatprep.subr.mxu1 %v8674_v22 }
 0x7e1   :  { %6580 = vrcp.f32 %v3670_v7 }
 0x7e2   :  { %6582 = vrcp.f32 %v3667_v3  ;;  %6277 = vmatmul.mubr.msk.f32.vlgmr.msra.gmra.mrb[44].mxu0 %vm1564_vm3, %v3692_v1 }
 0x7e3   :  { %v6573_v31 = vpop.eup %6572  ;;  %6285 = vmatpush3.msra.mxu0 %v4082_v12  ;;  %6286 = vmatprep.mubr.msk.f32.mxu0 %vm6881_vm1, %v8674_v22  ;;  %v6413_v12 = vpack.c.bf16 %v4674_v34, %v4673_v30 }
 0x7e4   :  { %v6575_v28 = vpop.eup %6574  ;;  %v3694_v19 = vmul.f32 %v6573_v31, %v7968_v35  ;;  %v3676_v25 = vpop.xlane.xlu1 %3675  ;;  %6294 = vmatprep.subr.mxu0 %v8674_v22 }
 0x7e5   :  { %v3673_v39 = vpop.xlane.xlu0 %3672  ;;  %v3693_v29 = vmul.f32 %v6575_v28, %v7971_v37  ;;  %6584 = vrcp.f32 %v3676_v25 }
 0x7e6   :  { %6586 = vrcp.f32 %v3673_v39  ;;  %6287 = vmatmul.mubr.msk.f32.vlgmr.msra.gmra.mrb[46].mxu0 %vm1564_vm3, %v3694_v19 }
 0x7e7   :  { %v6577_v47 = vpop.eup %6576  ;;  %6282 = vmatmul.mubr.msk.f32.vlgmr.msra.gmra.mrb[46].mxu1 %vm1564_vm3, %v3693_v29  ;;  %6295 = vmatpush3.msra.mxu0 %v4234_v62  ;;  %v4676_v62 = vld [vmem:[#allocation7 + $0x18] sm:$0xff] }
 0x7e8   :  { %v6579_v15 = vpop.eup %6578  ;;  %v3696_v49 = vmul.f32 %v6577_v47, %v7977_v61  ;;  %6290 = vmatpush3.msra.mxu1 %v4158_v14  ;;  %6291 = vmatprep.mubr.msk.f32.mxu1 %vm6881_vm1, %v8674_v22 }
 0x7e9   :  { %v3695_v35 = vmul.f32 %v6579_v15, %v7979_v6  ;;  %6296 = vmatprep.mubr.msk.f32.mxu0 %vm6881_vm1, %v8674_v22  ;;  %6299 = vmatprep.subr.mxu1 %v8674_v22  ;;  %v4538_v6 = vpop.permute.xlu1 %4537  ;;  %v4462_v24 = vpop.permute.xlu0 %4461 }
 0x7ea   :  { %6304 = vmatprep.subr.mxu0 %v8674_v22  ;;  %6297 = vmatmul.mubr.msk.f32.vlgmr.msra.gmra.mrb[48].mxu0 %vm1564_vm3, %v3696_v49 }
 0x7eb   :  { %v6581_v37 = vpop.eup %6580  ;;  %6292 = vmatmul.mubr.msk.f32.vlgmr.msra.gmra.mrb[48].mxu1 %vm1564_vm3, %v3695_v35  ;;  %6305 = vmatpush3.msra.mxu0 %v8004_v55  ;;  %v6417_v55 = vpack.c.bf16 %v4676_v62, %v4675_v38 }
 0x7ec   :  { %v6583_v42 = vpop.eup %6582  ;;  %v3698_v27 = vmul.f32 %v6581_v37, %v7986_v59  ;;  %6300 = vmatpush3.msra.mxu1 %v8014_v45  ;;  %6301 = vmatprep.mubr.msk.f32.mxu1 %vm6881_vm1, %v8674_v22 }
 0x7ed   :  { %v3697_v61 = vmul.f32 %v6583_v42, %v7988_v10  ;;  %6306 = vmatprep.mubr.msk.f32.mxu0 %vm6881_vm1, %v8674_v22  ;;  %6309 = vmatprep.subr.mxu1 %v8674_v22 }
 0x7ee   :  { %6314 = vmatprep.subr.mxu0 %v8674_v22  ;;  %6307 = vmatmul.mubr.msk.f32.vlgmr.msra.gmra.mrb[50].mxu0 %vm1564_vm3, %v3698_v27 }
 0x7ef   :  { %v6585_v33 = vpop.eup %6584  ;;  %6302 = vmatmul.mubr.msk.f32.vlgmr.msra.gmra.mrb[50].mxu1 %vm1564_vm3, %v3697_v61  ;;  %6315 = vmatpush3.msra.mxu0 %v4538_v6 }
 0x7f0   :  { %v6587_v59 = vpop.eup %6586  ;;  %v3700_v0 = vmul.f32 %v6585_v33, %v7994_v16  ;;  %6310 = vmatpush3.msra.mxu1 %v4462_v24  ;;  %6311 = vmatprep.mubr.msk.f32.mxu1 %vm6881_vm1, %v8674_v22 }
 0x7f1   :  { %v3699_v10 = vmul.f32 %v6587_v59, %v7996_v5  ;;  %6316 = vmatprep.mubr.msk.f32.mxu0 %vm6881_vm1, %v8674_v22  ;;  %6414 = vmatprep.subr.bf16.mxu0 %v6413_v12 }
 0x7f2   :  { %6317 = vmatmul.mubr.msk.f32.vlgmr.msra.gmra.mrb[52].mxu0 %vm1564_vm3, %v3700_v0  ;;  %6445 = vmatprep.subr.bf16.mxu1 %v6413_v12 }
 0x7f3   :  { %6312 = vmatmul.mubr.msk.f32.vlgmr.msra.gmra.mrb[52].mxu1 %vm1564_vm3, %v3699_v10  ;;  %6416 = vmatpush3.bf16.msra.mxu0 %v6413_v12 }
 0x7f4   :  { %6447 = vmatpush3.bf16.msra.mxu1 %v6413_v12  ;;  %6418 = vmatprep.subr.bf16.mxu0 %v6417_v55 }
 0x7f5   :  { %6446 = vmatprep.subr.bf16.mxu1 %v6417_v55 }
 0x7f7   :  { %6420 = vmatpush3.bf16.msra.mxu0 %v6417_v55 }
 0x7f8   :  { %6448 = vmatpush3.bf16.msra.mxu1 %v6417_v55  ;;  %v8675_v55 = vld [vmem:[#allocation24_spill] sm:$0xff] }
 0x852   :  { %v3849_v16 = vpop.f32.mrb[42].mxu0 }
 0x853   :  { %v6268_v22 = vpop.f32.mrb[43].mxu0  ;;  %4627 = vrot.lane.b32.xlu1 %v3849_v16, %s6887_s21 }
 0x854   :  { %v8676_v22 = vld [vmem:[#allocation23_spill] sm:$0xff] }
 0x8ad   :  { %v3773_v5 = vpop.f32.mrb[42].mxu1 }
 0x8ae   :  { %4625 = vrot.lane.b32.xlu0 %v3773_v5, %s6887_s21  ;;  %v6263_v26 = vpop.f32.mrb[43].mxu1 }
 0x8b1   :  { %v3925_v60 = vpop.f32.mrb[44].mxu1 }
 0x8b2   :  { %4629 = vrot.lane.b32.xlu0 %v3925_v60, %s6887_s21  ;;  %v6273_v51 = vpop.f32.mrb[45].mxu1 }
 0x8b5   :  { %v4001_v21 = vpop.f32.mrb[44].mxu0 }
 0x8b6   :  { %4631 = vrot.lane.b32.xlu1 %v4001_v21, %s6887_s21  ;;  %v6278_v14 = vpop.f32.mrb[45].mxu0  ;;  %v8677_v21 = vld [vmem:[#allocation26_spill] sm:$0xff] }
 0x8b9   :  { %v4153_v45 = vpop.f32.mrb[46].mxu0 }
 0x8ba   :  { %v4077_v4 = vpop.f32.mrb[46].mxu1  ;;  %4635 = vrot.lane.b32.xlu1 %v4153_v45, %s6887_s21  ;;  %v6288_v20 = vpop.f32.mrb[47].mxu0 }
 0x8bb   :  { %4633 = vrot.lane.b32.xlu0 %v4077_v4, %s6887_s21  ;;  %v6283_v46 = vpop.f32.mrb[47].mxu1  ;;  %v8678_v4 = vld [vmem:[#allocation25_spill] sm:$0xff] }
 0x8bd   :  { %v4305_v50 = vpop.f32.mrb[48].mxu0 }
 0x8be   :  { %v4229_v18 = vpop.f32.mrb[48].mxu1  ;;  %4639 = vrot.lane.b32.xlu1 %v4305_v50, %s6887_s21  ;;  %v6298_v2 = vpop.f32.mrb[49].mxu0 }
 0x8bf   :  { %4637 = vrot.lane.b32.xlu0 %v4229_v18, %s6887_s21  ;;  %v6293_v41 = vpop.f32.mrb[49].mxu1 }
 0x8c1   :  { %v4457_v52 = vpop.f32.mrb[50].mxu0 }
 0x8c2   :  { %v4381_v23 = vpop.f32.mrb[50].mxu1  ;;  %4643 = vrot.lane.b32.xlu1 %v4457_v52, %s6887_s21  ;;  %v6308_v43 = vpop.f32.mrb[51].mxu0  ;;  %v8679_v52 = vld [vmem:[#allocation28_spill] sm:$0xff] }
 0x8c3   :  { %4641 = vrot.lane.b32.xlu0 %v4381_v23, %s6887_s21  ;;  %v6303_v44 = vpop.f32.mrb[51].mxu1 }
 0x8c4   :  { %v8680_v44 = vld [vmem:[#allocation27_spill] sm:$0xff] }
 0x8c5   :  { %v4609_v13 = vpop.f32.mrb[52].mxu0  ;;  %v4628_v31 = vpop.permute.xlu1 %4627 }
 0x8c6   :  { %v4533_v1 = vpop.f32.mrb[52].mxu1  ;;  %4647 = vrot.lane.b32.xlu1 %v4609_v13, %s6887_s21  ;;  %v6318_v7 = vpop.f32.mrb[53].mxu0  ;;  %v4662_v25 = vsel %vm546_vm2, %v7846_v57, %v4628_v31 }
 0x8c7   :  { %4645 = vrot.lane.b32.xlu0 %v4533_v1, %s6887_s21  ;;  %v6313_v3 = vpop.f32.mrb[53].mxu1 }
 0x920   :  { %v4626_v28 = vpop.permute.xlu0 %4625 }
 0x921   :  { %v4661_v19 = vsel %vm546_vm2, %v7844_v40, %v4626_v28 }
 0x922   :  { %6327 = vmatprep.mubr.msk.f32.mxu0 %vm165_vm0, %v4661_v19  ;;  %v8681_v19 = vld [vmem:[#allocation30_spill] sm:$0xff] }
 0x923   :  { %6328 = vmatmul.mubr.msk.f32.vlgmr.msra.gmra.mrb[54].mxu0 %vm165_vm0, %v4662_v25 }
 0x924   :  { %v4630_v39 = vpop.permute.xlu0 %4629 }
 0x925   :  { %v4663_v29 = vsel %vm546_vm2, %v7848_v11, %v4630_v39 }
 0x926   :  { %6330 = vmatprep.mubr.msk.f32.mxu0 %vm165_vm0, %v4663_v29  ;;  %v8682_v29 = vld [vmem:[#allocation29_spill] sm:$0xff] }
 0x928   :  { %v4632_v47 = vpop.permute.xlu1 %4631 }
 0x929   :  { %v4664_v15 = vsel %vm546_vm2, %v7852_v17, %v4632_v47 }
 0x92a   :  { %6331 = vmatmul.mubr.msk.f32.gmra.mrb[56].mxu0 %vm165_vm0, %v4664_v15 }
 0x92c   :  { %v4636_v40 = vpop.permute.xlu1 %4635 }
 0x92d   :  { %v4666_v57 = vsel %vm546_vm2, %v7854_v53, %v4636_v40  ;;  %v4634_v49 = vpop.permute.xlu0 %4633 }
 0x92e   :  { %v4665_v35 = vsel %vm546_vm2, %v7850_v48, %v4634_v49 }
 0x92f   :  { %6333 = vmatprep.mubr.msk.f32.mxu1 %vm165_vm0, %v4665_v35 }
 0x930   :  { %6334 = vmatmul.mubr.msk.f32.vlgmr.msra.gmra.mrb[54].mxu1 %vm165_vm0, %v4666_v57  ;;  %v4640_v11 = vpop.permute.xlu1 %4639 }
 0x931   :  { %v4668_v37 = vsel %vm546_vm2, %v7856_v56, %v4640_v11  ;;  %v4638_v42 = vpop.permute.xlu0 %4637  ;;  %v8683_v11 = vld [vmem:[#allocation32_spill] sm:$0xff] }
 0x932   :  { %v4667_v17 = vsel %vm546_vm2, %v7882_v32, %v4638_v42 }
 0x933   :  { %6336 = vmatprep.mubr.msk.f32.mxu1 %vm165_vm0, %v4667_v17  ;;  %v8684_v17 = vld [vmem:[#allocation31_spill] sm:$0xff] }
 0x934   :  { %6337 = vmatmul.mubr.msk.f32.gmra.mrb[56].mxu1 %vm165_vm0, %v4668_v37  ;;  %v4644_v53 = vpop.permute.xlu1 %4643 }
 0x935   :  { %v4670_v48 = vsel %vm546_vm2, %v7858_v54, %v4644_v53  ;;  %v4642_v27 = vpop.permute.xlu0 %4641  ;;  %v5846_v54 = vld [vmem:[#allocation8] ss:$0 sm:$0xff] }
 0x936   :  { %v4669_v61 = vsel %vm546_vm2, %v7884_v9, %v4642_v27 }
 0x937   :  { %6339 = vmatprep.mubr.msk.f32.mxu1 %vm165_vm0, %v4669_v61 }
 0x938   :  { %6340 = vmatmul.mubr.msk.f32.gmra.mrb[58].mxu1 %vm165_vm0, %v4670_v48  ;;  %v4648_v56 = vpop.permute.xlu1 %4647 }
 0x939   :  { %v4672_v32 = vsel %vm546_vm2, %v7860_v58, %v4648_v56  ;;  %v4646_v6 = vpop.permute.xlu0 %4645 }
 0x93a   :  { %v4671_v33 = vsel %vm546_vm2, %v7897_v63, %v4646_v6 }
 0x93b   :  { %6342 = vmatprep.mubr.msk.f32.mxu1 %vm165_vm0, %v4671_v33 }
 0x93c   :  { %6343 = vmatmul.mubr.msk.f32.gmra.mrb[60].mxu1 %vm165_vm0, %v4672_v32 }
 0x9f6   :  { %v6329_v24 = vpop.f32.mrb[54].mxu0 }
 0x9f7   :  { %v4792_v59 = vadd.f32 %v6329_v24, %v5846_v54  ;;  %v4786_v9 = vpop.f32.mrb[55].mxu0 }
 0x9f8   :  { %v4787_v0 = vadd.f32 %v5846_v54, %v4786_v9 }
 0x9f9   :  { %v4846_v10 = vadd.f32 %v4792_v59, %v7223_v36 }
 0x9fa   :  { %v4845_v30 = vadd.f32 %v4787_v0, %v7214_v8 }
 0x9fb   :  { %v4862_v34 = vsel %vm165_vm0, %v4846_v10, 0.0 }
 0x9fc   :  { %4863 = vadd.xlane.f32.xlu1 %v4862_v34  ;;  %v4859_v58 = vsel %vm165_vm0, %v4845_v30, 0.0 }
 0x9fd   :  { %4860 = vadd.xlane.f32.xlu0 %v4859_v58  ;;  %v6332_v63 = vpop.f32.mrb[56].mxu0 }
 0x9fe   :  { %v4802_v38 = vadd.f32 %v6332_v63, %v5846_v54  ;;  %v4796_v12 = vpop.f32.mrb[57].mxu0 }
 0x9ff   :  { %v4797_v62 = vadd.f32 %v5846_v54, %v4796_v12 }
 0xa00   :  { %v4848_v16 = vadd.f32 %v4802_v38, %v8675_v55 }
 0xa01   :  { %v8120_v5 = vadd.f32 %v4797_v62, %v8676_v22 }
 0xa02   :  { %v4868_v26 = vsel %vm165_vm0, %v4848_v16, 0.0 }
 0xa03   :  { %v6335_v36 = vpop.f32.mrb[54].mxu1  ;;  %4869 = vadd.xlane.f32.xlu0 %v4868_v26  ;;  %v4865_v45 = vsel %vm165_vm0, %v8120_v5, 0.0 }
 0xa04   :  { %v4812_v8 = vadd.f32 %v6335_v36, %v5846_v54  ;;  %v4806_v60 = vpop.f32.mrb[55].mxu1 }
 0xa05   :  { %v4807_v51 = vadd.f32 %v5846_v54, %v4806_v60 }
 0xa06   :  { %v4850_v14 = vadd.f32 %v4812_v8, %v8677_v21 }
 0xa07   :  { %v8127_v20 = vadd.f32 %v4807_v51, %v8678_v4  ;;  %v6338_v46 = vpop.f32.mrb[56].mxu1  ;;  %4866 = vadd.xlane.f32.xlu0 %v4865_v45 }
 0xa08   :  { %v4822_v50 = vadd.f32 %v6338_v46, %v5846_v54  ;;  %v4816_v18 = vpop.f32.mrb[57].mxu1  ;;  %v4874_v2 = vsel %vm165_vm0, %v4850_v14, 0.0 }
 0xa09   :  { %v4817_v41 = vadd.f32 %v5846_v54, %v4816_v18  ;;  %4875 = vadd.xlane.f32.xlu1 %v4874_v2  ;;  %v4871_v43 = vsel %vm165_vm0, %v8127_v20, 0.0 }
 0xa0a   :  { %v4852_v23 = vadd.f32 %v4822_v50, %v8679_v52 }
 0xa0b   :  { %v8134_v13 = vadd.f32 %v4817_v41, %v8680_v44  ;;  %v6341_v1 = vpop.f32.mrb[58].mxu1  ;;  %4872 = vadd.xlane.f32.xlu0 %v4871_v43 }
 0xa0c   :  { %v4832_v7 = vadd.f32 %v6341_v1, %v5846_v54  ;;  %v4826_v3 = vpop.f32.mrb[59].mxu1  ;;  %v4880_v31 = vsel %vm165_vm0, %v4852_v23, 0.0 }
 0xa0d   :  { %v4827_v28 = vadd.f32 %v5846_v54, %v4826_v3  ;;  %4881 = vadd.xlane.f32.xlu1 %v4880_v31  ;;  %v4877_v39 = vsel %vm165_vm0, %v8134_v13, 0.0 }
 0xa0e   :  { %v8138_v25 = vadd.f32 %v4832_v7, %v8681_v19 }
 0xa0f   :  { %v8143_v47 = vadd.f32 %v4827_v28, %v8682_v29  ;;  %v6344_v15 = vpop.f32.mrb[60].mxu1  ;;  %4878 = vadd.xlane.f32.xlu0 %v4877_v39 }
 0xa10   :  { %v4842_v40 = vadd.f32 %v6344_v15, %v5846_v54  ;;  %v4836_v57 = vpop.f32.mrb[61].mxu1  ;;  %v4886_v49 = vsel %vm165_vm0, %v8138_v25, 0.0 }
 0xa11   :  { %v4837_v35 = vadd.f32 %v5846_v54, %v4836_v57  ;;  %4887 = vadd.xlane.f32.xlu1 %v4886_v49  ;;  %v4883_v42 = vsel %vm165_vm0, %v8143_v47, 0.0 }
 0xa12   :  { %v8148_v37 = vadd.f32 %v4842_v40, %v8683_v11 }
 0xa13   :  { %v8153_v53 = vadd.f32 %v4837_v35, %v8684_v17  ;;  %4884 = vadd.xlane.f32.xlu0 %v4883_v42  ;;  %v5051_v17 = vld [vmem:[#allocation13] sm:$0xff] }
 0xa14   :  { %v4892_v48 = vsel %vm165_vm0, %v8148_v37, 0.0 }
 0xa15   :  { %4893 = vadd.xlane.f32.xlu1 %v4892_v48  ;;  %v4889_v27 = vsel %vm165_vm0, %v8153_v53, 0.0  ;;  %v5052_v48 = vld [vmem:[#allocation13 + $0x8] sm:$0xff] }
 0xa17   :  { %4890 = vadd.xlane.f32.xlu0 %v4889_v27  ;;  %v6421_v27 = vpack.c.bf16 %v5052_v48, %v5051_v17 }
 0xa19   :  { %6422 = vmatprep.subr.bf16.mxu0 %v6421_v27 }
 0xa1a   :  { %6424 = vmatpush3.bf16.msra.mxu0 %v6421_v27 }
 0xa89   :  { %v4864_v61 = vpop.xlane.xlu1 %4863 }
 0xa8a   :  { %v4896_v56 = vmul.f32 0.03125, %v4864_v61  ;;  %v4861_v32 = vpop.xlane.xlu0 %4860  ;;  %v5054_v61 = vld [vmem:[#allocation13 + $0x18] sm:$0xff] }
 0xa8b   :  { %v4895_v6 = vmul.f32 0.03125, %v4861_v32 }
 0xa8c   :  { %v8159_v33 = vsub.f32 %v4846_v10, %v4896_v56 }
 0xa8d   :  { %v8161_v54 = vsub.f32 %v4845_v30, %v4895_v6 }
 0xa8e   :  { %v4920_v24 = vmul.f32 %v8159_v33, %v8159_v33 }
 0xa8f   :  { %v4919_v59 = vmul.f32 %v8161_v54, %v8161_v54 }
 0xa90   :  { %v4870_v9 = vpop.xlane.xlu0 %4869  ;;  %v4934_v0 = vsel %vm165_vm0, %v4920_v24, 0.0 }
 0xa91   :  { %v4898_v34 = vmul.f32 0.03125, %v4870_v9  ;;  %4935 = vadd.xlane.f32.xlu1 %v4934_v0  ;;  %v4931_v58 = vsel %vm165_vm0, %v4919_v59, 0.0 }
 0xa92   :  { %4932 = vadd.xlane.f32.xlu0 %v4931_v58 }
 0xa93   :  { %v8169_v63 = vsub.f32 %v4848_v16, %v4898_v34 }
 0xa94   :  { %v4867_v10 = vpop.xlane.xlu0 %4866 }
 0xa95   :  { %v4897_v38 = vmul.f32 0.03125, %v4867_v10  ;;  %v4922_v30 = vmul.f32 %v8169_v63, %v8169_v63 }
 0xa96   :  { %v4876_v12 = vpop.xlane.xlu1 %4875 }
 0xa97   :  { %v8174_v62 = vsub.f32 %v8120_v5, %v4897_v38  ;;  %v4900_v55 = vmul.f32 0.03125, %v4876_v12  ;;  %v4940_v22 = vsel %vm165_vm0, %v4922_v30, 0.0 }
 0xa98   :  { %4941 = vadd.xlane.f32.xlu1 %v4940_v22  ;;  %v4873_v26 = vpop.xlane.xlu0 %4872 }
 0xa99   :  { %v8177_v36 = vsub.f32 %v4850_v14, %v4900_v55  ;;  %v4899_v8 = vmul.f32 0.03125, %v4873_v26  ;;  %v4921_v16 = vmul.f32 %v8174_v62, %v8174_v62 }
 0xa9a   :  { %v4882_v60 = vpop.xlane.xlu1 %4881 }
 0xa9b   :  { %v8182_v51 = vsub.f32 %v8127_v20, %v4899_v8  ;;  %v4902_v21 = vmul.f32 0.03125, %v4882_v60  ;;  %v4937_v45 = vsel %vm165_vm0, %v4921_v16, 0.0  ;;  %v4924_v5 = vmul.f32 %v8177_v36, %v8177_v36  ;;  %v8226_v8 = vld [vmem:[#allocation10] ss:$0 sm:$0xff] }
 0xa9c   :  { %4938 = vadd.xlane.f32.xlu0 %v4937_v45  ;;  %v4879_v4 = vpop.xlane.xlu0 %4878 }
 0xa9d   :  { %v8187_v46 = vsub.f32 %v4852_v23, %v4902_v21  ;;  %v4901_v14 = vmul.f32 0.03125, %v4879_v4  ;;  %v4946_v50 = vsel %vm165_vm0, %v4924_v5, 0.0  ;;  %v4923_v18 = vmul.f32 %v8182_v51, %v8182_v51 }
 0xa9e   :  { %v4888_v2 = vpop.xlane.xlu1 %4887  ;;  %4947 = vadd.xlane.f32.xlu1 %v4946_v50  ;;  %v8230_v50 = vld [vmem:[#allocation11] ss:$0 sm:$0xff] }
 0xa9f   :  { %v8193_v20 = vsub.f32 %v8134_v13, %v4901_v14  ;;  %v4904_v41 = vmul.f32 0.03125, %v4888_v2  ;;  %v4943_v52 = vsel %vm165_vm0, %v4923_v18, 0.0  ;;  %v4926_v43 = vmul.f32 %v8187_v46, %v8187_v46 }
 0xaa0   :  { %4944 = vadd.xlane.f32.xlu0 %v4943_v52  ;;  %v4885_v23 = vpop.xlane.xlu0 %4884 }
 0xaa1   :  { %v8199_v44 = vsub.f32 %v8138_v25, %v4904_v41  ;;  %v4903_v1 = vmul.f32 0.03125, %v4885_v23  ;;  %v4952_v7 = vsel %vm165_vm0, %v4926_v43, 0.0  ;;  %v4925_v3 = vmul.f32 %v8193_v20, %v8193_v20 }
 0xaa2   :  { %v4894_v31 = vpop.xlane.xlu1 %4893  ;;  %4953 = vadd.xlane.f32.xlu1 %v4952_v7 }
 0xaa3   :  { %v8205_v13 = vsub.f32 %v8143_v47, %v4903_v1  ;;  %v4906_v28 = vmul.f32 0.03125, %v4894_v31  ;;  %v4949_v19 = vsel %vm165_vm0, %v4925_v3, 0.0  ;;  %v4928_v39 = vmul.f32 %v8199_v44, %v8199_v44 }
 0xaa4   :  { %4950 = vadd.xlane.f32.xlu0 %v4949_v19  ;;  %v4891_v25 = vpop.xlane.xlu0 %4890 }
 0xaa5   :  { %v8211_v29 = vsub.f32 %v8148_v37, %v4906_v28  ;;  %v4905_v15 = vmul.f32 0.03125, %v4891_v25  ;;  %v4958_v40 = vsel %vm165_vm0, %v4928_v39, 0.0  ;;  %v4927_v57 = vmul.f32 %v8205_v13, %v8205_v13 }
 0xaa6   :  { %4959 = vadd.xlane.f32.xlu1 %v4958_v40 }
 0xaa7   :  { %v8217_v47 = vsub.f32 %v8153_v53, %v4905_v15  ;;  %v4955_v49 = vsel %vm165_vm0, %v4927_v57, 0.0  ;;  %v4930_v35 = vmul.f32 %v8211_v29, %v8211_v29  ;;  %v5053_v53 = vld [vmem:[#allocation13 + $0x10] sm:$0xff] }
 0xaa8   :  { %4956 = vadd.xlane.f32.xlu0 %v4955_v49  ;;  %v6425_v56 = vpack.c.bf16 %v5054_v61, %v5053_v53 }
 0xaa9   :  { %v4964_v11 = vsel %vm165_vm0, %v4930_v35, 0.0  ;;  %v4929_v37 = vmul.f32 %v8217_v47, %v8217_v47 }
 0xaaa   :  { %4965 = vadd.xlane.f32.xlu1 %v4964_v11  ;;  %6426 = vmatprep.subr.bf16.mxu0 %v6425_v56 }
 0xaab   :  { %v4961_v42 = vsel %vm165_vm0, %v4929_v37, 0.0  ;;  %6428 = vmatpush3.bf16.msra.mxu0 %v6425_v56 }
 0xaac   :  { %4962 = vadd.xlane.f32.xlu0 %v4961_v42 }
 0xb1e   :  { %v4936_v32 = vpop.xlane.xlu1 %4935 }
 0xb1f   :  { %v4968_v6 = vmul.f32 0.03125, %v4936_v32  ;;  %v4933_v24 = vpop.xlane.xlu0 %4932 }
 0xb20   :  { %v4967_v59 = vmul.f32 0.03125, %v4933_v24 }
 0xb21   :  { %v4980_v9 = vadd.f32 1e-05, %v4968_v6 }
 0xb22   :  { %v4979_v0 = vadd.f32 1e-05, %v4967_v59 }
 0xb23   :  { %6588 = vrsqrt.f32 %v4980_v9 }
 0xb24   :  { %6590 = vrsqrt.f32 %v4979_v0 }
 0xb25   :  { %v4942_v34 = vpop.xlane.xlu1 %4941 }
 0xb26   :  { %v4970_v58 = vmul.f32 0.03125, %v4942_v34 }
 0xb28   :  { %v4982_v10 = vadd.f32 1e-05, %v4970_v58 }
 0xb29   :  { %v4939_v38 = vpop.xlane.xlu0 %4938 }
 0xb2a   :  { %6592 = vrsqrt.f32 %v4982_v10  ;;  %v4969_v30 = vmul.f32 0.03125, %v4939_v38 }
 0xb2b   :  { %v4948_v12 = vpop.xlane.xlu1 %4947 }
 0xb2c   :  { %v4981_v55 = vadd.f32 1e-05, %v4969_v30  ;;  %v4972_v22 = vmul.f32 0.03125, %v4948_v12 }
 0xb2d   :  { %v6589_v26 = vpop.eup %6588  ;;  %v4945_v16 = vpop.xlane.xlu0 %4944 }
 0xb2e   :  { %v6591_v60 = vpop.eup %6590  ;;  %v5004_v21 = vmul.f32 %v6589_v26, %v8159_v33  ;;  %6594 = vrsqrt.f32 %v4981_v55  ;;  %v4984_v45 = vadd.f32 1e-05, %v4972_v22  ;;  %v4971_v5 = vmul.f32 0.03125, %v4945_v16 }
 0xb2f   :  { %v4954_v4 = vpop.xlane.xlu1 %4953  ;;  %v5003_v14 = vmul.f32 %v6591_v60, %v8161_v54 }
 0xb30   :  { %v5022_v18 = vmul.f32 %v8226_v8, %v5004_v21  ;;  %6596 = vrsqrt.f32 %v4984_v45  ;;  %v4983_v2 = vadd.f32 1e-05, %v4971_v5  ;;  %v4974_v41 = vmul.f32 0.03125, %v4954_v4 }
 0xb31   :  { %v4951_v52 = vpop.xlane.xlu0 %4950  ;;  %v5021_v43 = vmul.f32 %v8226_v8, %v5003_v14 }
 0xb32   :  { %6598 = vrsqrt.f32 %v4983_v2  ;;  %v4986_v23 = vadd.f32 1e-05, %v4974_v41  ;;  %v4973_v1 = vmul.f32 0.03125, %v4951_v52  ;;  %v8238_v54 = vadd.f32 %v8230_v50, %v5022_v18  ;;  %v5334_v41 = vld [vmem:[%s8644_s12 + $0x18] sm:$0xff] }
 0xb33   :  { %v4960_v33 = vpop.xlane.xlu1 %4959  ;;  %v8235_v7 = vadd.f32 %v8230_v50, %v5021_v43  ;;  %v5335_v43 = vld [vmem:[%s8644_s12 + $0x20] sm:$0xff] }
 0xb34   :  { %v6593_v3 = vpop.eup %6592  ;;  %6600 = vrsqrt.f32 %v4986_v23  ;;  %v4985_v31 = vadd.f32 1e-05, %v4973_v1  ;;  %v4976_v28 = vmul.f32 0.03125, %v4960_v33  ;;  %v5336_v23 = vld [vmem:[%s8644_s12 + $0x28] sm:$0xff]  ;;  %v5337_v33 = vld [vmem:[%s8644_s12 + $0x30] sm:$0xff] }
 0xb35   :  { %6353 = vmatprep.mubr.msk.f32.mxu0 %vm165_vm0, %v8235_v7  ;;  %v4957_v19 = vpop.xlane.xlu0 %4956  ;;  %v5006_v15 = vmul.f32 %v6593_v3, %v8169_v63  ;;  %v6437_v1 = vpack.c.bf16 %v5336_v23, %v5335_v43  ;;  %v5338_v3 = vld [vmem:[%s8644_s12 + $0x38] sm:$0xff] }
 0xb36   :  { %6602 = vrsqrt.f32 %v4985_v31  ;;  %v4988_v39 = vadd.f32 1e-05, %v4976_v28  ;;  %v4975_v25 = vmul.f32 0.03125, %v4957_v19  ;;  %6354 = vmatmul.mubr.msk.f32.vlgmr.msra.gmra.mrb[58].mxu0 %vm165_vm0, %v8238_v54  ;;  %v6441_v31 = vpack.c.bf16 %v5338_v3, %v5337_v33  ;;  %v8338_v28 = vld [vmem:[#allocation14] ss:$0 sm:$0xff] }
 0xb37   :  { %v4966_v40 = vpop.xlane.xlu1 %4965  ;;  %v5024_v27 = vmul.f32 %v8226_v8, %v5006_v15 }
 0xb38   :  { %v6595_v57 = vpop.eup %6594  ;;  %6604 = vrsqrt.f32 %v4988_v39  ;;  %v4987_v49 = vadd.f32 1e-05, %v4975_v25  ;;  %v4978_v35 = vmul.f32 0.03125, %v4966_v40 }
 0xb39   :  { %v4963_v11 = vpop.xlane.xlu0 %4962  ;;  %v5005_v37 = vmul.f32 %v6595_v57, %v8174_v62  ;;  %v8254_v62 = vadd.f32 %v8230_v50, %v5024_v27 }
 0xb3a   :  { %v6597_v42 = vpop.eup %6596  ;;  %6606 = vrsqrt.f32 %v4987_v49  ;;  %v4990_v17 = vadd.f32 1e-05, %v4978_v35  ;;  %v4977_v48 = vmul.f32 0.03125, %v4963_v11 }
 0xb3b   :  { %v5023_v53 = vmul.f32 %v8226_v8, %v5005_v37  ;;  %v5008_v61 = vmul.f32 %v6597_v42, %v8177_v36 }
 0xb3c   :  { %v6599_v56 = vpop.eup %6598  ;;  %6608 = vrsqrt.f32 %v4990_v17  ;;  %v4989_v63 = vadd.f32 1e-05, %v4977_v48 }
 0xb3d   :  { %v8250_v32 = vadd.f32 %v8230_v50, %v5023_v53  ;;  %v5007_v6 = vmul.f32 %v6599_v56, %v8182_v51  ;;  %v5026_v59 = vmul.f32 %v8226_v8, %v5008_v61 }
 0xb3e   :  { %v6601_v24 = vpop.eup %6600  ;;  %6610 = vrsqrt.f32 %v4989_v63 }
 0xb3f   :  { %6356 = vmatprep.mubr.msk.f32.mxu0 %vm165_vm0, %v8250_v32  ;;  %v5025_v36 = vmul.f32 %v8226_v8, %v5007_v6  ;;  %v5010_v9 = vmul.f32 %v6601_v24, %v8187_v46  ;;  %v8268_v10 = vadd.f32 %v8230_v50, %v5026_v59 }
 0xb40   :  { %v6603_v0 = vpop.eup %6602  ;;  %6357 = vmatmul.mubr.msk.f32.gmra.mrb[60].mxu0 %vm165_vm0, %v8254_v62 }
 0xb41   :  { %v8264_v51 = vadd.f32 %v8230_v50, %v5025_v36  ;;  %v5009_v34 = vmul.f32 %v6603_v0, %v8193_v20  ;;  %v5028_v38 = vmul.f32 %v8226_v8, %v5010_v9 }
 0xb42   :  { %v6605_v58 = vpop.eup %6604 }
 0xb43   :  { %6359 = vmatprep.mubr.msk.f32.mxu0 %vm165_vm0, %v8264_v51  ;;  %v5027_v46 = vmul.f32 %v8226_v8, %v5009_v34  ;;  %v5012_v30 = vmul.f32 %v6605_v58, %v8199_v44  ;;  %v8282_v26 = vadd.f32 %v8230_v50, %v5028_v38 }
 0xb44   :  { %v6607_v12 = vpop.eup %6606  ;;  %6360 = vmatmul.mubr.msk.f32.gmra.mrb[62].mxu0 %vm165_vm0, %v8268_v10 }
 0xb45   :  { %v8278_v55 = vadd.f32 %v8230_v50, %v5027_v46  ;;  %v5011_v20 = vmul.f32 %v6607_v12, %v8205_v13  ;;  %v5030_v16 = vmul.f32 %v8226_v8, %v5012_v30 }
 0xb46   :  { %v6609_v22 = vpop.eup %6608 }
 0xb47   :  { %6362 = vmatprep.mubr.msk.f32.mxu0 %vm165_vm0, %v8278_v55  ;;  %v5029_v44 = vmul.f32 %v8226_v8, %v5011_v20  ;;  %v5014_v60 = vmul.f32 %v6609_v22, %v8211_v29  ;;  %v8296_v5 = vadd.f32 %v8230_v50, %v5030_v16 }
 0xb48   :  { %v6611_v21 = vpop.eup %6610  ;;  %6363 = vmatmul.mubr.msk.f32.gmra.mrb[64].mxu0 %vm165_vm0, %v8282_v26 }
 0xb49   :  { %v8292_v45 = vadd.f32 %v8230_v50, %v5029_v44  ;;  %v5013_v13 = vmul.f32 %v6611_v21, %v8217_v47  ;;  %v5032_v4 = vmul.f32 %v8226_v8, %v5014_v60  ;;  %v5331_v47 = vld [vmem:[%s8644_s12] sm:$0xff] }
 0xb4b   :  { %6365 = vmatprep.mubr.msk.f32.mxu0 %vm165_vm0, %v8292_v45  ;;  %v5031_v14 = vmul.f32 %v8226_v8, %v5013_v13  ;;  %v8308_v18 = vadd.f32 %v8230_v50, %v5032_v4  ;;  %v5332_v8 = vld [vmem:[%s8644_s12 + $0x8] sm:$0xff] }
 0xb4c   :  { %6366 = vmatmul.mubr.msk.f32.gmra.mrb[66].mxu0 %vm165_vm0, %v8296_v5  ;;  %v6429_v2 = vpack.c.bf16 %v5332_v8, %v5331_v47 }
 0xb4d   :  { %v8305_v29 = vadd.f32 %v8230_v50, %v5031_v14  ;;  %v5333_v50 = vld [vmem:[%s8644_s12 + $0x10] sm:$0xff] }
 0xb4e   :  { %6430 = vmatprep.subr.bf16.mxu1 %v6429_v2  ;;  %v6433_v52 = vpack.c.bf16 %v5334_v41, %v5333_v50 }
 0xb4f   :  { %6368 = vmatprep.mubr.msk.f32.mxu0 %vm165_vm0, %v8305_v29  ;;  %6432 = vmatpush3.bf16.msra.mxu1 %v6429_v2 }
 0xb50   :  { %6369 = vmatmul.mubr.msk.f32.gmra.mrb[68].mxu0 %vm165_vm0, %v8308_v18  ;;  %6434 = vmatprep.subr.bf16.mxu1 %v6433_v52 }
 0xb53   :  { %6436 = vmatpush3.bf16.msra.mxu1 %v6433_v52 }
 0xb54   :  { %6438 = vmatprep.subr.bf16.mxu1 %v6437_v1 }
 0xb57   :  { %6440 = vmatpush3.bf16.msra.mxu1 %v6437_v1 }
 0xb58   :  { %6442 = vmatprep.subr.bf16.mxu1 %v6441_v31 }
 0xb5b   :  { %6444 = vmatpush3.bf16.msra.mxu1 %v6441_v31 }
 0xc09   :  { %v6355_v19 = vpop.f32.mrb[58].mxu0 }
 0xc0a   :  { %v8341_v39 = vadd.f32 %v6355_v19, %v8338_v28  ;;  %v5164_v25 = vpop.f32.mrb[59].mxu0 }
 0xc0b   :  { %v8344_v15 = vadd.f32 %v8338_v28, %v5164_v25 }
 0xc0c   :  { %v5224_v40 = vmul.f32 %v8341_v39, %v8341_v39 }
 0xc0d   :  { %v5223_v57 = vmul.f32 %v8344_v15, %v8344_v15 }
 0xc0e   :  { %v5236_v49 = vmul.f32 %v5224_v40, %v8341_v39 }
 0xc0f   :  { %v5235_v35 = vmul.f32 %v5223_v57, %v8344_v15 }
 0xc10   :  { %v5248_v11 = vmul.f32 0.044715, %v5236_v49 }
 0xc11   :  { %v5247_v37 = vmul.f32 0.044715, %v5235_v35 }
 0xc12   :  { %v5260_v42 = vadd.f32 %v5248_v11, %v8341_v39 }
 0xc13   :  { %v5259_v17 = vadd.f32 %v5247_v37, %v8344_v15  ;;  %v6358_v48 = vpop.f32.mrb[60].mxu0 }
 0xc14   :  { %v5272_v27 = vmul.f32 0.7978846, %v5260_v42  ;;  %v8355_v53 = vadd.f32 %v6358_v48, %v8338_v28  ;;  %v5174_v61 = vpop.f32.mrb[61].mxu0 }
 0xc15   :  { %v8358_v56 = vadd.f32 %v8338_v28, %v5174_v61  ;;  %v5271_v63 = vmul.f32 0.7978846, %v5259_v17 }
 0xc16   :  { %6612 = vtanh.f32 %v5272_v27  ;;  %v5226_v6 = vmul.f32 %v8355_v53, %v8355_v53 }
 0xc17   :  { %v5225_v24 = vmul.f32 %v8358_v56, %v8358_v56  ;;  %v6361_v59 = vpop.f32.mrb[62].mxu0  ;;  %6614 = vtanh.f32 %v5271_v63 }
 0xc18   :  { %v5238_v36 = vmul.f32 %v5226_v6, %v8355_v53  ;;  %v8366_v9 = vadd.f32 %v6361_v59, %v8338_v28  ;;  %v5184_v0 = vpop.f32.mrb[63].mxu0 }
 0xc19   :  { %v5237_v34 = vmul.f32 %v5225_v24, %v8358_v56  ;;  %v8370_v58 = vadd.f32 %v8338_v28, %v5184_v0 }
 0xc1a   :  { %v5250_v38 = vmul.f32 0.044715, %v5238_v36  ;;  %v5228_v46 = vmul.f32 %v8366_v9, %v8366_v9 }
 0xc1b   :  { %v5249_v30 = vmul.f32 0.044715, %v5237_v34  ;;  %v5227_v12 = vmul.f32 %v8370_v58, %v8370_v58  ;;  %v6364_v20 = vpop.f32.mrb[64].mxu0 }
 0xc1c   :  { %v5262_v22 = vadd.f32 %v5250_v38, %v8355_v53  ;;  %v5240_v16 = vmul.f32 %v5228_v46, %v8366_v9  ;;  %v8379_v44 = vadd.f32 %v6364_v20, %v8338_v28  ;;  %v5194_v60 = vpop.f32.mrb[65].mxu0 }
 0xc1d   :  { %v5261_v21 = vadd.f32 %v5249_v30, %v8358_v56  ;;  %v5239_v13 = vmul.f32 %v5227_v12, %v8370_v58  ;;  %v8384_v4 = vadd.f32 %v8338_v28, %v5194_v60 }
 0xc1e   :  { %v5274_v14 = vmul.f32 0.7978846, %v5262_v22  ;;  %v5252_v47 = vmul.f32 0.044715, %v5240_v16  ;;  %v5230_v8 = vmul.f32 %v8379_v44, %v8379_v44 }
 0xc1f   :  { %v5273_v2 = vmul.f32 0.7978846, %v5261_v21  ;;  %v5251_v50 = vmul.f32 0.044715, %v5239_v13  ;;  %v5229_v41 = vmul.f32 %v8384_v4, %v8384_v4  ;;  %v6367_v52 = vpop.f32.mrb[66].mxu0 }
 0xc20   :  { %v6613_v43 = vpop.eup %6612  ;;  %6616 = vtanh.f32 %v5274_v14  ;;  %v5264_v23 = vadd.f32 %v5252_v47, %v8366_v9  ;;  %v5242_v1 = vmul.f32 %v5230_v8, %v8379_v44  ;;  %v8393_v33 = vadd.f32 %v6367_v52, %v8338_v28  ;;  %v5204_v3 = vpop.f32.mrb[67].mxu0 }
 0xc21   :  { %6618 = vtanh.f32 %v5273_v2  ;;  %v5263_v31 = vadd.f32 %v5251_v50, %v8370_v58  ;;  %v5241_v19 = vmul.f32 %v5229_v41, %v8384_v4  ;;  %v8400_v49 = vadd.f32 %v8338_v28, %v5204_v3  ;;  %v6615_v17 = vpop.eup %6614 }
 0xc22   :  { %v5276_v25 = vmul.f32 0.7978846, %v5264_v23  ;;  %v5254_v40 = vmul.f32 0.044715, %v5242_v1  ;;  %v5232_v57 = vmul.f32 %v8393_v33, %v8393_v33  ;;  %v5296_v35 = vadd.f32 1.0, %v6613_v43 }
 0xc23   :  { %v5275_v11 = vmul.f32 0.7978846, %v5263_v31  ;;  %v5253_v37 = vmul.f32 0.044715, %v5241_v19  ;;  %v6370_v42 = vpop.f32.mrb[68].mxu0  ;;  %v5231_v61 = vmul.f32 %v8400_v49, %v8400_v49  ;;  %v5295_v12 = vadd.f32 1.0, %v6615_v17 }
 0xc24   :  { %6620 = vtanh.f32 %v5276_v25  ;;  %v5266_v48 = vadd.f32 %v5254_v40, %v8379_v44  ;;  %v5244_v27 = vmul.f32 %v5232_v57, %v8393_v33  ;;  %v5214_v63 = vpop.f32.mrb[69].mxu0  ;;  %v8408_v24 = vadd.f32 %v6370_v42, %v8338_v28 }
 0xc25   :  { %6622 = vtanh.f32 %v5275_v11  ;;  %v5265_v6 = vadd.f32 %v5253_v37, %v8384_v4  ;;  %v5243_v0 = vmul.f32 %v5231_v61, %v8400_v49  ;;  %v8412_v34 = vadd.f32 %v8338_v28, %v5214_v63 }
 0xc26   :  { %v5278_v59 = vmul.f32 0.7978846, %v5266_v48  ;;  %v5256_v36 = vmul.f32 0.044715, %v5244_v27  ;;  %v5308_v38 = vmul.f32 0.5, %v5296_v35  ;;  %v5234_v30 = vmul.f32 %v8408_v24, %v8408_v24 }
 0xc27   :  { %v5277_v46 = vmul.f32 0.7978846, %v5265_v6  ;;  %v5255_v22 = vmul.f32 0.044715, %v5243_v0  ;;  %v5233_v16 = vmul.f32 %v8412_v34, %v8412_v34  ;;  %v5307_v21 = vmul.f32 0.5, %v5295_v12 }
 0xc28   :  { %6624 = vtanh.f32 %v5278_v59  ;;  %v5268_v20 = vadd.f32 %v5256_v36, %v8393_v33  ;;  %v5246_v60 = vmul.f32 %v5234_v30, %v8408_v24  ;;  %v5320_v2 = vmul.f32 %v5308_v38, %v8341_v39 }
 0xc29   :  { %6626 = vtanh.f32 %v5277_v46  ;;  %v5267_v14 = vadd.f32 %v5255_v22, %v8400_v49  ;;  %v5245_v47 = vmul.f32 %v5233_v16, %v8412_v34  ;;  %v5319_v41 = vmul.f32 %v5307_v21, %v8344_v15 }
 0xc2a   :  { %v6617_v13 = vpop.eup %6616  ;;  %v5280_v28 = vmul.f32 0.7978846, %v5268_v20  ;;  %v5258_v50 = vmul.f32 0.044715, %v5246_v60 }
 0xc2b   :  { %v6619_v8 = vpop.eup %6618  ;;  %v5298_v52 = vadd.f32 1.0, %v6617_v13  ;;  %v5279_v43 = vmul.f32 0.7978846, %v5267_v14  ;;  %v5257_v23 = vmul.f32 0.044715, %v5245_v47  ;;  %6387 = vmatprep.mubr.msk.f32.mxu1 %vm5346_vm4, %v5319_v41 }
 0xc2c   :  { %6628 = vtanh.f32 %v5280_v28  ;;  %v5297_v1 = vadd.f32 1.0, %v6619_v8  ;;  %v5270_v3 = vadd.f32 %v5258_v50, %v8408_v24  ;;  %6388 = vmatmul.mubr.msk.f32.vlgmr.msra.gmra.mrb[62].mxu1 %vm5346_vm4, %v5320_v2 }
 0xc2d   :  { %v5310_v31 = vmul.f32 0.5, %v5298_v52  ;;  %6630 = vtanh.f32 %v5279_v43  ;;  %v5269_v25 = vadd.f32 %v5257_v23, %v8412_v34 }
 0xc2e   :  { %v6621_v19 = vpop.eup %6620  ;;  %v5309_v39 = vmul.f32 0.5, %v5297_v1  ;;  %v5282_v57 = vmul.f32 0.7978846, %v5270_v3 }
 0xc2f   :  { %v6623_v40 = vpop.eup %6622  ;;  %v5300_v15 = vadd.f32 1.0, %v6621_v19  ;;  %v5281_v35 = vmul.f32 0.7978846, %v5269_v25  ;;  %v5322_v42 = vmul.f32 %v5310_v31, %v8355_v53 }
 0xc30   :  { %v5321_v11 = vmul.f32 %v5309_v39, %v8358_v56  ;;  %v5299_v37 = vadd.f32 1.0, %v6623_v40  ;;  %6632 = vtanh.f32 %v5282_v57 }
 0xc31   :  { %v5312_v17 = vmul.f32 0.5, %v5300_v15  ;;  %6634 = vtanh.f32 %v5281_v35 }
 0xc32   :  { %v6625_v48 = vpop.eup %6624  ;;  %6390 = vmatprep.mubr.msk.f32.mxu1 %vm5346_vm4, %v5321_v11  ;;  %v5311_v27 = vmul.f32 0.5, %v5299_v37 }
 0xc33   :  { %v6627_v61 = vpop.eup %6626  ;;  %6391 = vmatmul.mubr.msk.f32.gmra.mrb[64].mxu1 %vm5346_vm4, %v5322_v42  ;;  %v5302_v63 = vadd.f32 1.0, %v6625_v48  ;;  %v5324_v36 = vmul.f32 %v5312_v17, %v8366_v9 }
 0xc34   :  { %v5323_v6 = vmul.f32 %v5311_v27, %v8370_v58  ;;  %v5301_v59 = vadd.f32 1.0, %v6627_v61 }
 0xc35   :  { %v5314_v56 = vmul.f32 0.5, %v5302_v63 }
 0xc36   :  { %v6629_v0 = vpop.eup %6628  ;;  %6393 = vmatprep.mubr.msk.f32.mxu1 %vm5346_vm4, %v5323_v6  ;;  %v5313_v53 = vmul.f32 0.5, %v5301_v59 }
 0xc37   :  { %6394 = vmatmul.mubr.msk.f32.gmra.mrb[66].mxu1 %vm5346_vm4, %v5324_v36  ;;  %v5304_v38 = vadd.f32 1.0, %v6629_v0  ;;  %v6631_v46 = vpop.eup %6630  ;;  %v5326_v12 = vmul.f32 %v5314_v56, %v8379_v44 }
 0xc38   :  { %v5325_v30 = vmul.f32 %v5313_v53, %v8384_v4  ;;  %v5303_v20 = vadd.f32 1.0, %v6631_v46 }
 0xc39   :  { %v5316_v58 = vmul.f32 0.5, %v5304_v38 }
 0xc3a   :  { %6396 = vmatprep.mubr.msk.f32.mxu1 %vm5346_vm4, %v5325_v30  ;;  %v6633_v22 = vpop.eup %6632  ;;  %v5315_v9 = vmul.f32 0.5, %v5303_v20 }
 0xc3b   :  { %6397 = vmatmul.mubr.msk.f32.gmra.mrb[68].mxu1 %vm5346_vm4, %v5326_v12  ;;  %v6635_v16 = vpop.eup %6634  ;;  %v5306_v60 = vadd.f32 1.0, %v6633_v22  ;;  %v5328_v28 = vmul.f32 %v5316_v58, %v8393_v33 }
 0xc3c   :  { %v5327_v21 = vmul.f32 %v5315_v9, %v8400_v49  ;;  %v5305_v13 = vadd.f32 1.0, %v6635_v16  ;;  %v5874_v49 = vld [vmem:[%s8645_s13] ss:$0 sm:$0xff] }
 0xc3d   :  { %v5318_v14 = vmul.f32 0.5, %v5306_v60 }
 0xc3e   :  { %6399 = vmatprep.mubr.msk.f32.mxu1 %vm5346_vm4, %v5327_v21  ;;  %v5317_v4 = vmul.f32 0.5, %v5305_v13 }
 0xc3f   :  { %6400 = vmatmul.mubr.msk.f32.gmra.mrb[70].mxu1 %vm5346_vm4, %v5328_v28  ;;  %v5330_v47 = vmul.f32 %v5318_v14, %v8408_v24 }
 0xc40   :  { %v5329_v44 = vmul.f32 %v5317_v4, %v8412_v34 }
 0xc42   :  { %6402 = vmatprep.mubr.msk.f32.mxu1 %vm5346_vm4, %v5329_v44 }
 0xc43   :  { %6403 = vmatmul.mubr.msk.f32.gmra.mrb[72].mxu1 %vm5346_vm4, %v5330_v47 }
 0xcff   :  { %v6389_v8 = vpop.f32.mrb[62].mxu1 }
 0xd00   :  { %v5455_v33 = vadd.f32 %v6389_v8, %v5874_v49  ;;  %v5449_v2 = vpop.f32.mrb[63].mxu1 }
 0xd01   :  { %v5450_v50 = vadd.f32 %v5874_v49, %v5449_v2 }
 0xd02   :  { %v5509_v41 = vadd.f32 %v5455_v33, %v8238_v54 }
 0xd03   :  { %v5508_v52 = vadd.f32 %v5450_v50, %v8235_v7 }
 0xd04   :  { %v5525_v34 = vsel %vm165_vm0, %v5509_v41, 0.0 }
 0xd05   :  { %5526 = vadd.xlane.f32.xlu1 %v5525_v34  ;;  %v5522_v24 = vsel %vm165_vm0, %v5508_v52, 0.0 }
 0xd06   :  { %v6392_v43 = vpop.f32.mrb[64].mxu1  ;;  %5523 = vadd.xlane.f32.xlu0 %v5522_v24 }
 0xd07   :  { %v5465_v23 = vadd.f32 %v6392_v43, %v5874_v49  ;;  %v5459_v1 = vpop.f32.mrb[65].mxu1 }
 0xd08   :  { %v5460_v3 = vadd.f32 %v5874_v49, %v5459_v1 }
 0xd09   :  { %v5511_v31 = vadd.f32 %v5465_v23, %v8254_v62 }
 0xd0a   :  { %v5510_v19 = vadd.f32 %v5460_v3, %v8250_v32  ;;  %v6395_v25 = vpop.f32.mrb[66].mxu1 }
 0xd0b   :  { %v5475_v39 = vadd.f32 %v6395_v25, %v5874_v49  ;;  %v5469_v40 = vpop.f32.mrb[67].mxu1  ;;  %v5531_v54 = vsel %vm165_vm0, %v5511_v31, 0.0 }
 0xd0c   :  { %v5470_v7 = vadd.f32 %v5874_v49, %v5469_v40  ;;  %5532 = vadd.xlane.f32.xlu1 %v5531_v54  ;;  %v5528_v57 = vsel %vm165_vm0, %v5510_v19, 0.0 }
 0xd0d   :  { %v5513_v15 = vadd.f32 %v5475_v39, %v8268_v10  ;;  %5529 = vadd.xlane.f32.xlu0 %v5528_v57 }
 0xd0e   :  { %v5512_v35 = vadd.f32 %v5470_v7, %v8264_v51  ;;  %v6398_v11 = vpop.f32.mrb[68].mxu1 }
 0xd0f   :  { %v5485_v37 = vadd.f32 %v6398_v11, %v5874_v49  ;;  %v5479_v42 = vpop.f32.mrb[69].mxu1  ;;  %v5537_v62 = vsel %vm165_vm0, %v5513_v15, 0.0 }
 0xd10   :  { %v5480_v32 = vadd.f32 %v5874_v49, %v5479_v42  ;;  %5538 = vadd.xlane.f32.xlu1 %v5537_v62  ;;  %v5534_v17 = vsel %vm165_vm0, %v5512_v35, 0.0 }
 0xd11   :  { %v8464_v48 = vadd.f32 %v5485_v37, %v8282_v26  ;;  %5535 = vadd.xlane.f32.xlu0 %v5534_v17 }
 0xd12   :  { %v8467_v27 = vadd.f32 %v5480_v32, %v8278_v55  ;;  %v6401_v10 = vpop.f32.mrb[70].mxu1 }
 0xd13   :  { %v5543_v51 = vsel %vm165_vm0, %v8464_v48, 0.0  ;;  %v5495_v61 = vadd.f32 %v6401_v10, %v5874_v49  ;;  %v5489_v63 = vpop.f32.mrb[71].mxu1 }
 0xd14   :  { %5544 = vadd.xlane.f32.xlu1 %v5543_v51  ;;  %v5540_v6 = vsel %vm165_vm0, %v8467_v27, 0.0  ;;  %v5490_v59 = vadd.f32 %v5874_v49, %v5489_v63 }
 0xd15   :  { %5541 = vadd.xlane.f32.xlu0 %v5540_v6  ;;  %v8474_v36 = vadd.f32 %v5495_v61, %v8296_v5 }
 0xd16   :  { %v8477_v26 = vadd.f32 %v5490_v59, %v8292_v45  ;;  %v6404_v55 = vpop.f32.mrb[72].mxu1 }
 0xd17   :  { %v5505_v56 = vadd.f32 %v6404_v55, %v5874_v49  ;;  %v5499_v0 = vpop.f32.mrb[73].mxu1  ;;  %v5549_v53 = vsel %vm165_vm0, %v8474_v36, 0.0 }
 0xd18   :  { %v5500_v38 = vadd.f32 %v5874_v49, %v5499_v0  ;;  %5550 = vadd.xlane.f32.xlu1 %v5549_v53  ;;  %v5546_v46 = vsel %vm165_vm0, %v8477_v26, 0.0 }
 0xd19   :  { %v8484_v30 = vadd.f32 %v5505_v56, %v8308_v18  ;;  %5547 = vadd.xlane.f32.xlu0 %v5546_v46 }
 0xd1a   :  { %v8487_v5 = vadd.f32 %v5500_v38, %v8305_v29 }
 0xd1b   :  { %v5555_v45 = vsel %vm165_vm0, %v8484_v30, 0.0 }
 0xd1c   :  { %5556 = vadd.xlane.f32.xlu1 %v5555_v45  ;;  %v5552_v12 = vsel %vm165_vm0, %v8487_v5, 0.0 }
 0xd1d   :  { %5553 = vadd.xlane.f32.xlu0 %v5552_v12 }
 0xd92   :  { %v5527_v20 = vpop.xlane.xlu1 %5526 }
 0xd93   :  { %v5559_v58 = vmul.f32 0.03125, %v5527_v20  ;;  %v5524_v22 = vpop.xlane.xlu0 %5523 }
 0xd94   :  { %v5558_v9 = vmul.f32 0.03125, %v5524_v22 }
 0xd95   :  { %v8493_v16 = vsub.f32 %v5509_v41, %v5559_v58 }
 0xd96   :  { %v8495_v18 = vsub.f32 %v5508_v52, %v5558_v9 }
 0xd97   :  { %v5583_v29 = vmul.f32 %v8493_v16, %v8493_v16 }
 0xd98   :  { %v5582_v21 = vmul.f32 %v8495_v18, %v8495_v18 }
 0xd99   :  { %v5533_v60 = vpop.xlane.xlu1 %5532  ;;  %v5597_v14 = vsel %vm165_vm0, %v5583_v29, 0.0 }
 0xd9a   :  { %v5561_v13 = vmul.f32 0.03125, %v5533_v60  ;;  %v5530_v28 = vpop.xlane.xlu0 %5529  ;;  %5598 = vadd.xlane.f32.xlu1 %v5597_v14  ;;  %v5594_v44 = vsel %vm165_vm0, %v5582_v21, 0.0 }
 0xd9b   :  { %v5560_v4 = vmul.f32 0.03125, %v5530_v28  ;;  %5595 = vadd.xlane.f32.xlu0 %v5594_v44 }
 0xd9c   :  { %v8503_v47 = vsub.f32 %v5511_v31, %v5561_v13 }
 0xd9d   :  { %v8505_v49 = vsub.f32 %v5510_v19, %v5560_v4  ;;  %v5539_v8 = vpop.xlane.xlu1 %5538 }
 0xd9e   :  { %v5563_v33 = vmul.f32 0.03125, %v5539_v8  ;;  %v5536_v2 = vpop.xlane.xlu0 %5535  ;;  %v5585_v50 = vmul.f32 %v8503_v47, %v8503_v47 }
 0xd9f   :  { %v5562_v41 = vmul.f32 0.03125, %v5536_v2  ;;  %v5584_v52 = vmul.f32 %v8505_v49, %v8505_v49 }
 0xda0   :  { %v8511_v34 = vsub.f32 %v5513_v15, %v5563_v33  ;;  %v5603_v43 = vsel %vm165_vm0, %v5585_v50, 0.0 }
 0xda1   :  { %v8514_v24 = vsub.f32 %v5512_v35, %v5562_v41  ;;  %v5545_v23 = vpop.xlane.xlu1 %5544  ;;  %5604 = vadd.xlane.f32.xlu1 %v5603_v43  ;;  %v5600_v1 = vsel %vm165_vm0, %v5584_v52, 0.0  ;;  %v8562_v43 = vld [vmem:[%s8646_s14] ss:$0 sm:$0xff]  ;;  %s6888_s14 = smov [#allocation16]  }
 0xda2   :  { %v5565_v3 = vmul.f32 0.03125, %v5545_v23  ;;  %5601 = vadd.xlane.f32.xlu0 %v5600_v1  ;;  %v5542_v31 = vpop.xlane.xlu0 %5541  ;;  %v5587_v19 = vmul.f32 %v8511_v34, %v8511_v34 }
 0xda3   :  { %v5564_v25 = vmul.f32 0.03125, %v5542_v31  ;;  %v5586_v39 = vmul.f32 %v8514_v24, %v8514_v24 }
 0xda4   :  { %v8522_v40 = vsub.f32 %v8464_v48, %v5565_v3  ;;  %v5609_v54 = vsel %vm165_vm0, %v5587_v19, 0.0  ;;  %v8568_v19 = vld [vmem:[%s8647_s15] ss:$0 sm:$0xff]  ;;  %s5731_s15 = sshll.u32 %s6888_s14, 4  ;;  %s5732_s15 = int_to_ptr.vmem [resolvable:$true] %s5731_s15 }
 0xda5   :  { %v8526_v7 = vsub.f32 %v8467_v27, %v5564_v25  ;;  %5610 = vadd.xlane.f32.xlu1 %v5609_v54  ;;  %v5606_v57 = vsel %vm165_vm0, %v5586_v39, 0.0  ;;  %v5551_v15 = vpop.xlane.xlu1 %5550  ;;  %s6836_s17 = scalar_lea.vmem %s5732_s15, 1536  ;;  %p6841_p9 = scmp.lt.s32.totalorder %s5732_s15, %s5732_s15 }
 0xda6   :  { %5607 = vadd.xlane.f32.xlu0 %v5606_v57  ;;  %v5589_v35 = vmul.f32 %v8522_v40, %v8522_v40  ;;  %v5567_v11 = vmul.f32 0.03125, %v5551_v15  ;;  %v5548_v37 = vpop.xlane.xlu0 %5547  ;;  %p6837_p8 = scmp.ne.s32.totalorder %s5732_s15, %s6836_s17  ;;  %p6842_p10 = scmp.lt.s32.totalorder %s6836_s17, %s6836_s17 }
 0xda7   :  { %v5588_v42 = vmul.f32 %v8526_v7, %v8526_v7  ;;  %v5566_v62 = vmul.f32 0.03125, %v5548_v37 }
 0xda8   :  { %v5615_v32 = vsel %vm165_vm0, %v5589_v35, 0.0  ;;  %v8535_v17 = vsub.f32 %v8474_v36, %v5567_v11  ;;  %p6843_p11 = por %p6842_p10, %p6841_p9 }
 0xda9   :  { %5616 = vadd.xlane.f32.xlu1 %v5615_v32  ;;  %v5612_v48 = vsel %vm165_vm0, %v5588_v42, 0.0  ;;  %v8539_v27 = vsub.f32 %v8477_v26, %v5566_v62  ;;  %v5557_v10 = vpop.xlane.xlu1 %5556 }
 0xdaa   :  { %5613 = vadd.xlane.f32.xlu0 %v5612_v48  ;;  %v5569_v51 = vmul.f32 0.03125, %v5557_v10  ;;  %v5554_v61 = vpop.xlane.xlu0 %5553  ;;  %v5591_v63 = vmul.f32 %v8535_v17, %v8535_v17  ;;  %p6844_p12 = pnand %p6843_p11, %p6837_p8 }
 0xdab   :  { %v5568_v6 = vmul.f32 0.03125, %v5554_v61  ;;  %v5590_v59 = vmul.f32 %v8539_v27, %v8539_v27 }
 0xdac   :  { %v8546_v36 = vsub.f32 %v8484_v30, %v5569_v51  ;;  %v5621_v55 = vsel %vm165_vm0, %v5591_v63, 0.0 }
 0xdad   :  { %v8550_v56 = vsub.f32 %v8487_v5, %v5568_v6  ;;  %5622 = vadd.xlane.f32.xlu1 %v5621_v55  ;;  %v5618_v26 = vsel %vm165_vm0, %v5590_v59, 0.0 }
 0xdae   :  { %5619 = vadd.xlane.f32.xlu0 %v5618_v26  ;;  %v5593_v0 = vmul.f32 %v8546_v36, %v8546_v36 }
 0xdaf   :  { %v5592_v53 = vmul.f32 %v8550_v56, %v8550_v56 }
 0xdb0   :  { %v5627_v38 = vsel %vm165_vm0, %v5593_v0, 0.0 }
 0xdb1   :  { %5628 = vadd.xlane.f32.xlu1 %v5627_v38  ;;  %v5624_v46 = vsel %vm165_vm0, %v5592_v53, 0.0 }
 0xdb2   :  { %5625 = vadd.xlane.f32.xlu0 %v5624_v46 }
 0xe27   :  { %v5599_v30 = vpop.xlane.xlu1 %5598 }
 0xe28   :  { %v5631_v45 = vmul.f32 0.03125, %v5599_v30  ;;  %v5596_v5 = vpop.xlane.xlu0 %5595 }
 0xe29   :  { %v5630_v12 = vmul.f32 0.03125, %v5596_v5 }
 0xe2a   :  { %v5643_v20 = vadd.f32 1e-05, %v5631_v45 }
 0xe2b   :  { %v5642_v58 = vadd.f32 1e-05, %v5630_v12 }
 0xe2c   :  { %6636 = vrsqrt.f32 %v5643_v20 }
 0xe2d   :  { %6638 = vrsqrt.f32 %v5642_v58 }
 0xe2e   :  { %v5605_v22 = vpop.xlane.xlu1 %5604 }
 0xe2f   :  { %v5633_v9 = vmul.f32 0.03125, %v5605_v22  ;;  %v5602_v29 = vpop.xlane.xlu0 %5601 }
 0xe30   :  { %v5632_v60 = vmul.f32 0.03125, %v5602_v29 }
 0xe31   :  { %v5645_v21 = vadd.f32 1e-05, %v5633_v9 }
 0xe32   :  { %v5644_v13 = vadd.f32 1e-05, %v5632_v60  ;;  %v5611_v28 = vpop.xlane.xlu1 %5610 }
 0xe33   :  { %6640 = vrsqrt.f32 %v5645_v21  ;;  %v5635_v14 = vmul.f32 0.03125, %v5611_v28  ;;  %v5608_v4 = vpop.xlane.xlu0 %5607 }
 0xe34   :  { %6642 = vrsqrt.f32 %v5644_v13  ;;  %v5634_v44 = vmul.f32 0.03125, %v5608_v4 }
 0xe35   :  { %v5647_v8 = vadd.f32 1e-05, %v5635_v14 }
 0xe36   :  { %v5646_v33 = vadd.f32 1e-05, %v5634_v44  ;;  %v5617_v2 = vpop.xlane.xlu1 %5616  ;;  %v6637_v52 = vpop.eup %6636 }
 0xe37   :  { %6644 = vrsqrt.f32 %v5647_v8  ;;  %v5637_v50 = vmul.f32 0.03125, %v5617_v2  ;;  %v5614_v41 = vpop.xlane.xlu0 %5613  ;;  %v6639_v1 = vpop.eup %6638  ;;  %v5667_v3 = vmul.f32 %v6637_v52, %v8493_v16 }
 0xe38   :  { %6646 = vrsqrt.f32 %v5646_v33  ;;  %v5636_v23 = vmul.f32 0.03125, %v5614_v41  ;;  %v5666_v25 = vmul.f32 %v6639_v1, %v8495_v18 }
 0xe39   :  { %v5649_v31 = vadd.f32 1e-05, %v5637_v50  ;;  %v5685_v54 = vmul.f32 %v8562_v43, %v5667_v3 }
 0xe3a   :  { %v5648_v39 = vadd.f32 1e-05, %v5636_v23  ;;  %v5623_v57 = vpop.xlane.xlu1 %5622  ;;  %v5684_v15 = vmul.f32 %v8562_v43, %v5666_v25 }
 0xe3b   :  { %6648 = vrsqrt.f32 %v5649_v31  ;;  %v5639_v35 = vmul.f32 0.03125, %v5623_v57  ;;  %v5620_v11 = vpop.xlane.xlu0 %5619  ;;  %v5703_v16 = vadd.f32 %v8568_v19, %v5685_v54 }
 0xe3c   :  { %6650 = vrsqrt.f32 %v5648_v39  ;;  %v5638_v42 = vmul.f32 0.03125, %v5620_v11  ;;  %v5702_v32 = vadd.f32 %v8568_v19, %v5684_v15 }
 0xe3d   :  { %v6641_v37 = vpop.eup %6640  ;;  %v5651_v18 = vadd.f32 1e-05, %v5639_v35  ;;  %5715 = vst.msk [vmem:[#allocation16 + $0x8] sm:$0xff] %vm165_vm0, %v5703_v16 }
 0xe3e   :  { %v6643_v62 = vpop.eup %6642  ;;  %v5669_v48 = vmul.f32 %v6641_v37, %v8503_v47  ;;  %v5650_v51 = vadd.f32 1e-05, %v5638_v42  ;;  %v5629_v61 = vpop.xlane.xlu1 %5628  ;;  %5714 = vst.msk [vmem:[#allocation16] sm:$0xff] %vm165_vm0, %v5702_v32 }
 0xe3f   :  { %v5668_v10 = vmul.f32 %v6643_v62, %v8505_v49  ;;  %6652 = vrsqrt.f32 %v5651_v18  ;;  %v5641_v6 = vmul.f32 0.03125, %v5629_v61  ;;  %v5626_v59 = vpop.xlane.xlu0 %5625 }
 0xe40   :  { %v5687_v63 = vmul.f32 %v8562_v43, %v5669_v48  ;;  %6654 = vrsqrt.f32 %v5650_v51  ;;  %v5640_v0 = vmul.f32 0.03125, %v5626_v59 }
 0xe41   :  { %v6645_v55 = vpop.eup %6644  ;;  %v5686_v26 = vmul.f32 %v8562_v43, %v5668_v10  ;;  %v5653_v49 = vadd.f32 1e-05, %v5641_v6 }
 0xe42   :  { %v6647_v47 = vpop.eup %6646  ;;  %v5705_v53 = vadd.f32 %v8568_v19, %v5687_v63  ;;  %v5671_v38 = vmul.f32 %v6645_v55, %v8511_v34  ;;  %v5652_v45 = vadd.f32 1e-05, %v5640_v0 }
 0xe43   :  { %v5704_v46 = vadd.f32 %v8568_v19, %v5686_v26  ;;  %v5670_v30 = vmul.f32 %v6647_v47, %v8514_v24  ;;  %6656 = vrsqrt.f32 %v5653_v49 }
 0xe44   :  { %5717 = vst.msk [vmem:[#allocation16 + $0x18] sm:$0xff] %vm165_vm0, %v5705_v53  ;;  %v5689_v5 = vmul.f32 %v8562_v43, %v5671_v38  ;;  %6658 = vrsqrt.f32 %v5652_v45 }
 0xe45   :  { %v6649_v12 = vpop.eup %6648  ;;  %5716 = vst.msk [vmem:[#allocation16 + $0x10] sm:$0xff] %vm165_vm0, %v5704_v46  ;;  %v5688_v20 = vmul.f32 %v8562_v43, %v5670_v30 }
 0xe46   :  { %v6651_v58 = vpop.eup %6650  ;;  %v5707_v34 = vadd.f32 %v8568_v19, %v5689_v5  ;;  %v5673_v22 = vmul.f32 %v6649_v12, %v8522_v40 }
 0xe47   :  { %v5706_v9 = vadd.f32 %v8568_v19, %v5688_v20  ;;  %v5672_v24 = vmul.f32 %v6651_v58, %v8526_v7 }
 0xe48   :  { %5719 = vst.msk [vmem:[#allocation16 + $0x28] sm:$0xff] %vm165_vm0, %v5707_v34  ;;  %v5691_v29 = vmul.f32 %v8562_v43, %v5673_v22 }
 0xe49   :  { %5718 = vst.msk [vmem:[#allocation16 + $0x20] sm:$0xff] %vm165_vm0, %v5706_v9  ;;  %v5690_v60 = vmul.f32 %v8562_v43, %v5672_v24  ;;  %v6653_v21 = vpop.eup %6652 }
 0xe4a   :  { %v5709_v13 = vadd.f32 %v8568_v19, %v5691_v29  ;;  %v6655_v28 = vpop.eup %6654  ;;  %v5675_v40 = vmul.f32 %v6653_v21, %v8535_v17 }
 0xe4b   :  { %v5708_v14 = vadd.f32 %v8568_v19, %v5690_v60  ;;  %v5674_v7 = vmul.f32 %v6655_v28, %v8539_v27 }
 0xe4c   :  { %5721 = vst.msk [vmem:[#allocation16 + $0x38] sm:$0xff] %vm165_vm0, %v5709_v13  ;;  %v5693_v4 = vmul.f32 %v8562_v43, %v5675_v40 }
 0xe4d   :  { %5720 = vst.msk [vmem:[#allocation16 + $0x30] sm:$0xff] %vm165_vm0, %v5708_v14  ;;  %v6657_v44 = vpop.eup %6656  ;;  %v5692_v8 = vmul.f32 %v8562_v43, %v5674_v7 }
 0xe4e   :  { %v6659_v33 = vpop.eup %6658  ;;  %v5711_v2 = vadd.f32 %v8568_v19, %v5693_v4  ;;  %v5677_v50 = vmul.f32 %v6657_v44, %v8546_v36 }
 0xe4f   :  { %v5710_v41 = vadd.f32 %v8568_v19, %v5692_v8  ;;  %v5676_v17 = vmul.f32 %v6659_v33, %v8550_v56 }
 0xe50   :  { %5723 = vst.msk [vmem:[#allocation16 + $0x48] sm:$0xff] %vm165_vm0, %v5711_v2  ;;  %v5695_v27 = vmul.f32 %v8562_v43, %v5677_v50 }
 0xe51   :  { %5722 = vst.msk [vmem:[#allocation16 + $0x40] sm:$0xff] %vm165_vm0, %v5710_v41  ;;  %v5694_v52 = vmul.f32 %v8562_v43, %v5676_v17 }
 0xe52   :  { %v5713_v23 = vadd.f32 %v8568_v19, %v5695_v27 }
 0xe53   :  { %v5712_v1 = vadd.f32 %v8568_v19, %v5694_v52 }
 0xe54   :  { %5725 = vst.msk [vmem:[#allocation16 + $0x58] sm:$0xff] %vm165_vm0, %v5713_v23 }
 0xe55   :  { %5724 = vst.msk [vmem:[#allocation16 + $0x50] sm:$0xff] %vm165_vm0, %v5712_v1 }
 0xe56   :  { %6847 = shalt.err (!%p6844_p12)
}
 0xe57   :  { %s6848_s21 = scalar_lea.hbm %s8648_s16, 1536 }
 0xe58   :  { %p6849_p13 = scmp.ne.s32.totalorder %s8648_s16, %s6848_s21  ;;  %p6852_p0 = scmp.lt.u32.totalorder %s6848_s21, %s8648_s16 }
 0xe5a   :  { %p6854_p1 = pnand %p6852_p0, %p6849_p13 }
 0xe5c   :  { %6857 = shalt.err (!%p6854_p1)
}
 0xe5d   :  { %5737 = dma.vmem_to_hbm [thread:$0]  %s5732_s15, 1536, %s8648_s16, [#allocation4], %s6875_s3, %s6875_s3, %s6876_s20  }
 0xe5e   :  { %6868 = dma.done.wait [#allocation4], 1536  }
 0xe5f   :  { %6869 = vsyncadd [#allocation4], 4294965760 }
 0xe60   :  { %5741 = vsyncpa [#allocation3], 1 }
 0xe61   :  { %5742 = vsyncpa [#allocation6], 1 }
 0xe62   :  { %5743 = vsyncpa [#allocation9], 1 }
 0xe63   :  { %5744 = vsyncpa [#allocation12], 1 }
 0xe64   :  { %5745 = vsyncpa [#allocation15], 1 }
 0xe65   :  { %5746 = vsyncpa [#allocation4], 1 }

</bundles_post_ra>
